<compile_context>
chip_gen: v7x
topology: tpu7x:2x2x1
jax: 0.10.0
libtpu: 0.0.40
codegen_flags: <defaults>
</compile_context>

<pallas_src>
import numpy as np
import jax
import jax.numpy as jnp
from jax.experimental import pallas as pl
from jax.experimental.pallas import tpu as pltpu


# ---------------------------------------------------------------------------
# in-kernel math helpers (plain jnp, traced inside the Pallas kernels)
# ---------------------------------------------------------------------------
def _gelu(x):
    # TODO(synk): torch nn.GELU() uses the exact erf form; tanh approximation is
    # used here for guaranteed Mosaic lowering (max abs deviation ~3e-4).
    c = jnp.float32(0.7978845608028654)  # sqrt(2/pi)
    return 0.5 * x * (1.0 + jnp.tanh(c * (x + 0.044715 * x * x * x)))


def _layernorm(x, g, b, eps=1e-5):
    mu = jnp.mean(x, axis=-1, keepdims=True)
    var = jnp.mean((x - mu) ** 2, axis=-1, keepdims=True)
    return (x - mu) * jax.lax.rsqrt(var + eps) * g + b


# ---------------------------------------------------------------------------
# Kernel 1: EdgeFeatEncoder  (TimeEncode + concat + Linear, concat fused away)
#   out = cos(et * tw) @ W_t + ef @ W_ef + b
# ---------------------------------------------------------------------------
def edge_enc_kernel(et_ref, ef_ref, tw_ref, w_ef_ref, w_t_ref, b_ref, o_ref):
    t_enc = jnp.cos(et_ref[...] * tw_ref[...])                       # (tE, Dt)
    o = jnp.dot(ef_ref[...], w_ef_ref[...], preferred_element_type=jnp.float32)
    o = o + jnp.dot(t_enc, w_t_ref[...], preferred_element_type=jnp.float32)
    o_ref[...] = (o + b_ref[...]).astype(o_ref.dtype)


def edge_encoder(et, ef, tw, w_ef, w_t, b, *, tile_e=256):
    E, De = ef.shape
    Dt = tw.shape[1]
    H = w_ef.shape[1]

    e_pad = pl.cdiv(E, tile_e) * tile_e
    if e_pad != E:                                    # pad -> no silently dropped edges
        et = jnp.pad(et, (0, e_pad - E))
        ef = jnp.pad(ef, ((0, e_pad - E), (0, 0)))

    out = pl.pallas_call(
        edge_enc_kernel,
        out_shape=jax.ShapeDtypeStruct((e_pad, H), jnp.float32),
        grid_spec=pltpu.PrefetchScalarGridSpec(
            num_scalar_prefetch=0,
            grid=(e_pad // tile_e,),
            in_specs=[
                pl.BlockSpec((tile_e, 1), lambda i: (i, 0)),
                pl.BlockSpec((tile_e, De), lambda i: (i, 0)),
                pl.BlockSpec((1, Dt), lambda i: (0, 0)),
                pl.BlockSpec((De, H), lambda i: (0, 0)),
                pl.BlockSpec((Dt, H), lambda i: (0, 0)),
                pl.BlockSpec((1, H), lambda i: (0, 0)),
            ],
            out_specs=pl.BlockSpec((tile_e, H), lambda i: (i, 0)),
        ),
        compiler_params=pltpu.CompilerParams(dimension_semantics=("parallel",)),
    )(et.reshape(e_pad, 1), ef, tw, w_ef, w_t, b)
    return out[:E]


# ---------------------------------------------------------------------------
# Kernel 2: fused mixer stack + head.
#   input x: (K, N_pad, H)  -> per grid step one (K, TN, H) tile, TN nodes.
#   all L mixer layers run in-kernel on K resident (TN, H) planes, then
#   LayerNorm(H) + mean over K + out_proj produce a lane-dense (TN, O) tile.
# ---------------------------------------------------------------------------
def mixer_head_kernel(x_ref,
                      cg_ref, cb_ref, cw1_ref, cb1_ref, cw2_ref, cb2_ref,   # SMEM
                      rg_ref, rb_ref, rw1_ref, rb1_ref, rw2_ref, rb2_ref,   # VMEM
                      ng_ref, nb_ref, wo_ref, bo_ref,                       # VMEM (head)
                      o_ref):
    K = x_ref.shape[0]
    L = rw1_ref.shape[0]
    J = cb1_ref.shape[1]
    inv_k = 1.0 / K

    # per-context-slot planes, each (TN, H); H stays on lanes, no transposes anywhere
    planes = [x_ref[k] for k in range(K)]

    for l in range(L):
        # ---- token (column) mixing: LayerNorm over K + MLP(K -> J -> K) ----
        mu = planes[0]
        for k in range(1, K):
            mu = mu + planes[k]
        mu = mu * inv_k
        cent = [p - mu for p in planes]
        var = cent[0] * cent[0]
        for k in range(1, K):
            var = var + cent[k] * cent[k]
        rstd = jax.lax.rsqrt(var * inv_k + 1e-5)
        xn = [cent[k] * rstd * cg_ref[l, k] + cb_ref[l, k] for k in range(K)]

        hid = []
        for j in range(J):
            acc = xn[0] * cw1_ref[l, j]
            for k in range(1, K):
                acc = acc + xn[k] * cw1_ref[l, k * J + j]
            hid.append(_gelu(acc + cb1_ref[l, j]))

        for k in range(K):
            acc = hid[0] * cw2_ref[l, k]
            for j in range(1, J):
                acc = acc + hid[j] * cw2_ref[l, j * K + k]
            planes[k] = planes[k] + acc + cb2_ref[l, k]

        # ---- channel (row) mixing: LayerNorm over H + MLP(H -> Hh -> H), MXU ----
        rg, rb = rg_ref[l], rb_ref[l]
        rw1, rb1 = rw1_ref[l], rb1_ref[l]
        rw2, rb2 = rw2_ref[l], rb2_ref[l]
        for k in range(K):
            h = _layernorm(planes[k], rg, rb)
            h = _gelu(jnp.dot(h, rw1, preferred_element_type=jnp.float32) + rb1)
            h = jnp.dot(h, rw2, preferred_element_type=jnp.float32) + rb2
            planes[k] = planes[k] + h

    # ---- head: LayerNorm(H) + mean over K + out_proj (lane-dense (TN, O) store) ----
    ng, nb = ng_ref[...], nb_ref[...]
    acc = _layernorm(planes[0], ng, nb)
    for k in range(1, K):
        acc = acc + _layernorm(planes[k], ng, nb)
    m = acc * inv_k
    o_ref[...] = (jnp.dot(m, wo_ref[...], preferred_element_type=jnp.float32)
                  + bo_ref[...]).astype(o_ref.dtype)


def mixer_head_stack(x, cg, cb, cw1, cb1, cw2, cb2,
                     rg, rb, rw1, rb1, rw2, rb2, ng, nb, wo, bo, *, tile_n=128):
    K, n_pad, H = x.shape
    L, _, Hh = rw1.shape
    O = wo.shape[1]

    def rep(shape):                                  # broadcast (grid-invariant) operand
        return pl.BlockSpec(shape, lambda i, _n=len(shape): (0,) * _n)

    smem = pl.BlockSpec(memory_space=pltpu.MemorySpace.SMEM)

    return pl.pallas_call(
        mixer_head_kernel,
        out_shape=jax.ShapeDtypeStruct((n_pad, O), jnp.float32),
        grid_spec=pltpu.PrefetchScalarGridSpec(
            num_scalar_prefetch=0,
            grid=(n_pad // tile_n,),
            in_specs=[
                pl.BlockSpec((K, tile_n, H), lambda i: (0, i, 0)),
                smem, smem, smem, smem, smem, smem,
                rep((L, 1, H)), rep((L, 1, H)),
                rep((L, H, Hh)), rep((L, 1, Hh)),
                rep((L, Hh, H)), rep((L, 1, H)),
                rep((1, H)), rep((1, H)),
                rep((H, O)), rep((1, O)),
            ],
            out_specs=pl.BlockSpec((tile_n, O), lambda i: (i, 0)),
        ),
        compiler_params=pltpu.CompilerParams(dimension_semantics=("parallel",)),
    )(x, cg, cb, cw1, cb1, cw2, cb2, rg, rb, rw1, rb1, rw2, rb2, ng, nb, wo, bo)


# ---------------------------------------------------------------------------
# Parameter construction (deterministic, matching the PyTorch module shapes)
# ---------------------------------------------------------------------------
def _linear_init(key, in_d, out_d):
    # torch nn.Linear default init: U(-1/sqrt(in_d), 1/sqrt(in_d))
    k1, k2 = jax.random.split(key)
    bound = 1.0 / np.sqrt(in_d)
    w = jax.random.uniform(k1, (in_d, out_d), jnp.float32, -bound, bound)
    b = jax.random.uniform(k2, (1, out_d), jnp.float32, -bound, bound)
    return w, b


def init_params(key, edge_feats, hidden, time_dim, out_dim, layers, K):
    keys = iter(jax.random.split(key, 2 + 4 * layers))
    params = {}

    # TimeEncode: fixed (non-trainable) weight 1 / 10**linspace(0, 9, dim), zero bias
    params["tw"] = jnp.asarray(
        1.0 / 10.0 ** np.linspace(0, 9, time_dim, dtype=np.float32)
    ).reshape(1, time_dim)

    # EdgeFeatEncoder.lin : Linear(edge_feats + time_dim, hidden), split by input block
    w_enc, b_enc = _linear_init(next(keys), edge_feats + time_dim, hidden)
    params["w_ef"] = w_enc[:edge_feats]
    params["w_t"] = w_enc[edge_feats:]
    params["b_enc"] = b_enc

    kh = int(0.5 * K)
    hh = int(4 * hidden)
    mixers = []
    for _ in range(layers):
        lp = {}
        lp["cg"] = jnp.ones((1, K), jnp.float32)
        lp["cb"] = jnp.zeros((1, K), jnp.float32)
        lp["cw1"], lp["cb1"] = _linear_init(next(keys), K, kh)
        lp["cw2"], lp["cb2"] = _linear_init(next(keys), kh, K)
        lp["rg"] = jnp.ones((1, hidden), jnp.float32)
        lp["rb"] = jnp.zeros((1, hidden), jnp.float32)
        lp["rw1"], lp["rb1"] = _linear_init(next(keys), hidden, hh)
        lp["rw2"], lp["rb2"] = _linear_init(next(keys), hh, hidden)
        mixers.append(lp)
    params["mixers"] = mixers

    params["norm_g"] = jnp.ones((1, hidden), jnp.float32)
    params["norm_b"] = jnp.zeros((1, hidden), jnp.float32)
    params["w_out"], params["b_out"] = _linear_init(next(keys), hidden, out_dim)
    return params


# ---------------------------------------------------------------------------
# Full GraphMixer forward (Pallas kernels + JAX glue for the scatter)
# ---------------------------------------------------------------------------
def graph_mixer_forward(params, et, ef, nid, idx, num_nodes, K, hidden,
                        *, tile_e=256, tile_n=128):
    enc = edge_encoder(et, ef, params["tw"], params["w_ef"], params["w_t"],
                       params["b_enc"], tile_e=tile_e)

    # scatter edges into (K, N_pad, H) slot-major layout so the fused kernel can
    # read each context slot as a contiguous plane.
    # TODO(synk): this scatter could be folded into the fused kernel's input DMA via
    # a scalar-prefetch gather index_map; kept as an XLA scatter-add for simplicity.
    n_pad = pl.cdiv(num_nodes, tile_n) * tile_n
    positions = idx * n_pad + nid
    split = jnp.zeros((K * n_pad, hidden), jnp.float32).at[positions].add(enc)
    x = split.reshape(K, n_pad, hidden)

    # stack per-layer params (leading dim = L); tiny token-mix params flattened for SMEM
    mixers = params["mixers"]
    cg = jnp.stack([lp["cg"].reshape(-1) for lp in mixers])      # (L, K)
    cb = jnp.stack([lp["cb"].reshape(-1) for lp in mixers])      # (L, K)
    cw1 = jnp.stack([lp["cw1"].reshape(-1) for lp in mixers])    # (L, K*J), row-major (k, j)
    cb1 = jnp.stack([lp["cb1"].reshape(-1) for lp in mixers])    # (L, J)
    cw2 = jnp.stack([lp["cw2"].reshape(-1) for lp in mixers])    # (L, J*K), row-major (j, k)
    cb2 = jnp.stack([lp["cb2"].reshape(-1) for lp in mixers])    # (L, K)
    rg = jnp.stack([lp["rg"] for lp in mixers])                  # (L, 1, H)
    rb = jnp.stack([lp["rb"] for lp in mixers])                  # (L, 1, H)
    rw1 = jnp.stack([lp["rw1"] for lp in mixers])                # (L, H, Hh)
    rb1 = jnp.stack([lp["rb1"] for lp in mixers])                # (L, 1, Hh)
    rw2 = jnp.stack([lp["rw2"] for lp in mixers])                # (L, Hh, H)
    rb2 = jnp.stack([lp["rb2"] for lp in mixers])                # (L, 1, H)

    out = mixer_head_stack(x, cg, cb, cw1, cb1, cw2, cb2,
                           rg, rb, rw1, rb1, rw2, rb2,
                           params["norm_g"], params["norm_b"],
                           params["w_out"], params["b_out"],
                           tile_n=tile_n)
    return out[:num_nodes]


# Pure-JAX reference (same math, faithful to the PyTorch module) for verification.
def reference_forward(params, et, ef, nid, idx, num_nodes, K, hidden):
    t_enc = jnp.cos(et.reshape(-1, 1) * params["tw"])
    x = ef @ params["w_ef"] + t_enc @ params["w_t"] + params["b_enc"]
    positions = nid * K + idx
    split = jnp.zeros((K * num_nodes, hidden), jnp.float32).at[positions].add(x)
    x = split.reshape(num_nodes, K, hidden)
    for lp in params["mixers"]:
        xt = jnp.swapaxes(x, 1, 2)                                # (N, H, K)
        h = _layernorm(xt, lp["cg"], lp["cb"])
        h = _gelu(h @ lp["cw1"] + lp["cb1"]) @ lp["cw2"] + lp["cb2"]
        x = x + jnp.swapaxes(h, 1, 2)
        h = _layernorm(x, lp["rg"], lp["rb"])
        h = _gelu(h @ lp["rw1"] + lp["rb1"]) @ lp["rw2"] + lp["rb2"]
        x = x + h
    x = _layernorm(x, params["norm_g"], params["norm_b"])
    x = x.mean(axis=1)
    return x @ params["w_out"] + params["b_out"]


if __name__ == "__main__":
    EDGE_FEATS, HIDDEN, TIME_DIM, OUT_DIM, LAYERS, K = 16, 128, 32, 128, 2, 8
    NUM_NODES = 256
    E = NUM_NODES * K

    key = jax.random.PRNGKey(0)
    k_param, k_et, k_ef, k_perm = jax.random.split(key, 4)

    params = init_params(k_param, EDGE_FEATS, HIDDEN, TIME_DIM, OUT_DIM, LAYERS, K)

    et = jax.random.uniform(k_et, (E,), jnp.float32, 0.0, 100.0)      # edge timestamps
    ef = jax.random.normal(k_ef, (E, EDGE_FEATS), jnp.float32)        # edge features
    # unique (node, slot) assignment for every edge, in shuffled order
    perm = jax.random.permutation(k_perm, E)
    nid = (perm // K).astype(jnp.int32)
    idx = (perm % K).astype(jnp.int32)

    out = graph_mixer_forward(params, et, ef, nid, idx, NUM_NODES, K, HIDDEN,
                              tile_e=256, tile_n=128)
    out = jax.block_until_ready(out)

    ref = reference_forward(params, et, ef, nid, idx, NUM_NODES, K, HIDDEN)
    np.testing.assert_allclose(np.asarray(out), np.asarray(ref),
                               rtol=2e-3, atol=2e-3)
    print("KERNEL_OK")
</pallas_src>

<mosaic_0001>
module attributes {stable_mosaic.version = 11 : i64} {
  func.func @edge_enc_kernel(%arg0: i32, %arg1: memref<256x1xf32, #tpu.memory_space<vmem>>, %arg2: memref<256x16xf32, #tpu.memory_space<vmem>>, %arg3: memref<1x32xf32, #tpu.memory_space<vmem>>, %arg4: memref<16x128xf32, #tpu.memory_space<vmem>>, %arg5: memref<32x128xf32, #tpu.memory_space<vmem>>, %arg6: memref<1x128xf32, #tpu.memory_space<vmem>>, %arg7: memref<256x128xf32, #tpu.memory_space<vmem>>) attributes {dimension_semantics = [#tpu.dimension_semantics<parallel>], iteration_bounds = array<i64: 8>, scalar_prefetch = 0 : i64, scratch_operands = 0 : i64, tpu.core_type = #tpu.core_type<tc>, window_params = [{transform_indices = @transform_0, window_bounds = array<i64: 256, 1>}, {transform_indices = @transform_1, window_bounds = array<i64: 256, 16>}, {pipeline_mode = #tpu.pipeline_mode<synchronous>, transform_indices = @transform_2, window_bounds = array<i64: 1, 32>}, {pipeline_mode = #tpu.pipeline_mode<synchronous>, transform_indices = @transform_3, window_bounds = array<i64: 16, 128>}, {pipeline_mode = #tpu.pipeline_mode<synchronous>, transform_indices = @transform_4, window_bounds = array<i64: 32, 128>}, {pipeline_mode = #tpu.pipeline_mode<synchronous>, transform_indices = @transform_5, window_bounds = array<i64: 1, 128>}, {transform_indices = @transform_6, window_bounds = array<i64: 256, 128>}]} {
    %c0 = arith.constant 0 : index
    %c0_0 = arith.constant 0 : index
    %0 = vector.load %arg1[%c0, %c0_0] : memref<256x1xf32, #tpu.memory_space<vmem>>, vector<256x1xf32>
    %c0_1 = arith.constant 0 : index
    %c0_2 = arith.constant 0 : index
    %1 = vector.load %arg3[%c0_1, %c0_2] : memref<1x32xf32, #tpu.memory_space<vmem>>, vector<1x32xf32>
    %2 = vector.broadcast %0 : vector<256x1xf32> to vector<256x32xf32>
    %3 = vector.broadcast %1 : vector<1x32xf32> to vector<256x32xf32>
    %4 = arith.mulf %2, %3 : vector<256x32xf32>
    %5 = math.cos %4 : vector<256x32xf32>
    %c0_3 = arith.constant 0 : index
    %c0_4 = arith.constant 0 : index
    %6 = vector.load %arg2[%c0_3, %c0_4] : memref<256x16xf32, #tpu.memory_space<vmem>>, vector<256x16xf32>
    %c0_5 = arith.constant 0 : index
    %c0_6 = arith.constant 0 : index
    %7 = vector.load %arg4[%c0_5, %c0_6] : memref<16x128xf32, #tpu.memory_space<vmem>>, vector<16x128xf32>
    %cst = arith.constant dense<0.000000e+00> : vector<256x128xf32>
    %8 = tpu.matmul %6, %7, %cst {dimension_numbers = #tpu.dot_dimension_numbers<[1], [0], [0], [1], [0, 0, 1, 1], [], []>} : vector<256x16xf32>, vector<16x128xf32>, vector<256x128xf32> -> vector<256x128xf32>
    %c0_7 = arith.constant 0 : index
    %c0_8 = arith.constant 0 : index
    %9 = vector.load %arg5[%c0_7, %c0_8] : memref<32x128xf32, #tpu.memory_space<vmem>>, vector<32x128xf32>
    %cst_9 = arith.constant dense<0.000000e+00> : vector<256x128xf32>
    %10 = tpu.matmul %5, %9, %cst_9 {dimension_numbers = #tpu.dot_dimension_numbers<[1], [0], [0], [1], [0, 0, 1, 1], [], []>} : vector<256x32xf32>, vector<32x128xf32>, vector<256x128xf32> -> vector<256x128xf32>
    %11 = arith.addf %8, %10 : vector<256x128xf32>
    %c0_10 = arith.constant 0 : index
    %c0_11 = arith.constant 0 : index
    %12 = vector.load %arg6[%c0_10, %c0_11] : memref<1x128xf32, #tpu.memory_space<vmem>>, vector<1x128xf32>
    %13 = vector.broadcast %12 : vector<1x128xf32> to vector<256x128xf32>
    %14 = arith.addf %11, %13 : vector<256x128xf32>
    %c0_12 = arith.constant 0 : index
    %c0_13 = arith.constant 0 : index
    %15 = vector.load %arg7[%c0_12, %c0_13] : memref<256x128xf32, #tpu.memory_space<vmem>>, vector<256x128xf32>
    tpu.vector_store %arg7[%c0_12, %c0_13], %14 {strides = array<i32>} : memref<256x128xf32, #tpu.memory_space<vmem>>, vector<256x128xf32>,
    return
  }
  func.func @transform_0(%arg0: i32) -> (i32, i32) {
    %c0_i32 = arith.constant 0 : i32
    %c0_i32_0 = arith.constant 0 : i32
    return %arg0, %c0_i32 : i32, i32
  }
  func.func @transform_1(%arg0: i32) -> (i32, i32) {
    %c0_i32 = arith.constant 0 : i32
    %c0_i32_0 = arith.constant 0 : i32
    return %arg0, %c0_i32 : i32, i32
  }
  func.func @transform_2(%arg0: i32) -> (i32, i32) {
    %c0_i32 = arith.constant 0 : i32
    %c0_i32_0 = arith.constant 0 : i32
    %c0_i32_1 = arith.constant 0 : i32
    return %c0_i32, %c0_i32_0 : i32, i32
  }
  func.func @transform_3(%arg0: i32) -> (i32, i32) {
    %c0_i32 = arith.constant 0 : i32
    %c0_i32_0 = arith.constant 0 : i32
    %c0_i32_1 = arith.constant 0 : i32
    return %c0_i32, %c0_i32_0 : i32, i32
  }
  func.func @transform_4(%arg0: i32) -> (i32, i32) {
    %c0_i32 = arith.constant 0 : i32
    %c0_i32_0 = arith.constant 0 : i32
    %c0_i32_1 = arith.constant 0 : i32
    return %c0_i32, %c0_i32_0 : i32, i32
  }
  func.func @transform_5(%arg0: i32) -> (i32, i32) {
    %c0_i32 = arith.constant 0 : i32
    %c0_i32_0 = arith.constant 0 : i32
    %c0_i32_1 = arith.constant 0 : i32
    return %c0_i32, %c0_i32_0 : i32, i32
  }
  func.func @transform_6(%arg0: i32) -> (i32, i32) {
    %c0_i32 = arith.constant 0 : i32
    %c0_i32_0 = arith.constant 0 : i32
    return %arg0, %c0_i32 : i32, i32
  }
}

</mosaic_0001>

<bundles_post_ra>
// kernel: tpu_custom_call.1
= control target key start
LH: loop header
LB: loop body
LE: loop exit
PB: predicated region body
PF: predicated region fallthrough
CT: control target
= control target key end

     0   :  { %11 = vsyncpa [#allocation3], 0  ;;  %s8774_s0 = inlined_call_operand.vmem [shape: f32[2048,1], index: 0, kind: input, shape index: {}]   ;;  %s8775_s1 = inlined_call_operand.vmem [shape: f32[2048,16], index: 1, kind: input, shape index: {}]   ;;  %s8776_s2 = inlined_call_operand.vmem [shape: f32[1,32], index: 2, kind: input, shape index: {}]   ;;  %s8777_s3 = inlined_call_operand.vmem [shape: f32[16,128], index: 3, kind: input, shape index: {}]   ;;  %s8778_s4 = inlined_call_operand.vmem [shape: f32[32,128], index: 4, kind: input, shape index: {}]   ;;  %s8779_s5 = inlined_call_operand.vmem [shape: f32[1,128], index: 5, kind: input, shape index: {}]   ;;  %s8780_s6 = inlined_call_operand.hbm [shape: f32[2048,128], index: 6, kind: output, shape index: {}]  }
   0x1   :  { %13 = vsyncpa [#allocation3 + $0x1], 0  ;;  %s5493_s21 = smov 0   ;;  %s5495_s22 = smov 0  }
   0x2   :  { %s5497_s23 = smov 0   ;;  %s5499_s24 = smov 0  }
   0x3 LB: > { %s5514_s25 = sadd.s32 4294967295, %s5446_s24   ;;  %s4643_s26 = sadd.s32 4294967294, %s5446_s24   ;;  %s5446_s24 = sphi %s5499_s24, %s9279_s24   ;;  %s5442_s23 = sphi %s5497_s23, %s9278_s23   ;;  %s5438_s22 = sphi %s5495_s22, %s9277_s22   ;;  %s5434_s21 = sphi %s5493_s21, %s9276_s21  }
   0x4   : > { %s5518_s27 = sadd.s32 1, %s5446_s24   ;;  %s162_s28 = sadd.s32 1, %s5442_s23 }
   0x5   : > { %s159_s29 = ssub.s32 %s5446_s24, %s5518_s27  ;;  %p172_p0 = scmp.ne.s32.totalorder %s5442_s23, %s5438_s22 }
   0x6   : > { %p160_p1 = scmp.eq.s32.totalorder %s159_s29, 0  ;;  %p173_p2 = scmp.eq.s32.totalorder %s5514_s25, 7 }
   0x7   : > { %p178_p3 = scmp.ne.s32.totalorder %s5438_s22, %s5434_s21  ;;  %p179_p4 = scmp.eq.s32.totalorder %s4643_s26, 7 }
   0x8   : > { %s5529_s30 = scalar_select %p160_p1, %s5442_s23, %s162_s28  }
   0x9   : > { %p5531_p5 = por %p173_p2, %p172_p0  ;;  %p5535_p6 = por %p179_p4, %p178_p3 }
   0xa   : > { %p4646_p7 = scmp.ge.s32.totalorder %s5446_s24, 1  ;;  %p227_p8 = scmp.lt.s32.totalorder %s5446_s24, 9 }
   0xc   : > { %p228_p9 = pnand %p4646_p7, %p227_p8 }
   0xe   : > { %231 = sbr.rel (%p228_p9) target bundleno = 1204 (0x4b4), region = 44 }
  0x15   : > { %s4648_s9 = sshll.u32 %s5514_s25, 5  ;;  %v5448_v0 = vmov 0   ;;  %v5587_v33 = vld [vmem:[%s8776_s2] ss:$0 sm:$0xff]  ;;  %v8799_v56 = vmov 683565275  }
  0x16   : > { %5251 = vset.pattern.permute.xlu1 %v5448_v0  ;;  %5250 = vset.pattern.permute.xlu0 %v5448_v0  ;;  %p263_p10 = scmp.lt.s32.totalorder %s4648_s9, 255  ;;  %v8796_v58 = vmov 2475754826   ;;  %v8794_v60 = vmov 2131351028   ;;  %s4851_s16 = sshll.u32 %s5514_s25, 12 }
  0x17   : > { %v8792_v62 = vmov 2102212464   ;;  %v8789_v0 = vmov 920167782   ;;  %s8724_s20 = scalar_lea.hbm %s8780_s6, %s4851_s16  ;;  %s5455_s28 = smov [#allocation2]  }
  0x18   : > { %s9281_s9 = smov (!%p263_p10, %s4648_s9), 255  ;;  %s5388_s29 = sshll.u32 %s5455_s28, 4  ;;  %s5389_s29 = int_to_ptr.vmem [resolvable:$false] %s5388_s29 }
  0x19   : > { %s4649_s10 = sshll.u32 %s9281_s9, 3  ;;  %s259_s9 = sand.u32 1, %s5438_s22  }
  0x1a   : > { %s5550_s13 = scalar_lea.vmem %s8774_s0, %s4649_s10  ;;  %s7711_s12 = scalar_lea.vmem %s8775_s1, %s4649_s10 }
  0x1b   : > { %v277_v1 = vld [vmem:[%s5550_s13 + $0x10] sm:$0xff]  ;;  %v275_v2 = vld [vmem:[%s5550_s13] sm:$0xff]  ;;  %v278_v3 = vld [vmem:[%s5550_s13 + $0x18] sm:$0xff]  ;;  %s4647_s10 = sshll.u32 %s259_s9, 8  ;;  %s8733_s25 = scalar_lea.sflag [#allocation3], %s259_s9 }
  0x1c   : > { %320 = vperm.xlu1 %5251, %v277_v1   ;;  %310 = vperm.xlu0 %5250, %v275_v2   ;;  %v276_v4 = vld [vmem:[%s5550_s13 + $0x8] sm:$0xff]  ;;  %v279_v6 = vld [vmem:[%s5550_s13 + $0x20] sm:$0xff]  ;;  %v282_v7 = vld [vmem:[%s5550_s13 + $0x38] sm:$0xff]  ;;  %s8636_s15 = scalar_lea.vmem [#allocation2], %s4647_s10  ;;  %s5390_s11 = scalar_lea.vmem %s5389_s29, 8192 }
  0x1d   : > { %v280_v5 = vld [vmem:[%s5550_s13 + $0x28] sm:$0xff]  ;;  %v281_v8 = vld [vmem:[%s5550_s13 + $0x30] sm:$0xff]  ;;  %v283_v10 = vld [vmem:[%s5550_s13 + $0x40] sm:$0xff]  ;;  %s4569_s17 = sshll.u32 %s8636_s15, 4  ;;  %s8726_s17 = int_to_ptr.vmem [resolvable:$true] %s4569_s17 }
  0x1e   : > { %v284_v9 = vld [vmem:[%s5550_s13 + $0x48] sm:$0xff]  ;;  %v286_v11 = vld [vmem:[%s5550_s13 + $0x58] sm:$0xff]  ;;  %v285_v12 = vld [vmem:[%s5550_s13 + $0x50] sm:$0xff]  ;;  %s5384_s26 = scalar_lea.vmem %s8726_s17, 4096  ;;  %p5391_p0 = scmp.lt.s32.totalorder %s8726_s17, %s5389_s29 }
  0x1f   : > { %v288_v13 = vld [vmem:[%s5550_s13 + $0x68] sm:$0xff]  ;;  %v287_v14 = vld [vmem:[%s5550_s13 + $0x60] sm:$0xff]  ;;  %v290_v15 = vld [vmem:[%s5550_s13 + $0x78] sm:$0xff]  ;;  %p5385_p11 = scmp.ne.s32.totalorder %s8726_s17, %s5384_s26  ;;  %p5392_p1 = scmp.lt.s32.totalorder %s5390_s11, %s5384_s26 }
  0x20   : > { %325 = vperm.xlu1 %5251, %v278_v3   ;;  %315 = vperm.xlu0 %5250, %v276_v4   ;;  %v289_v16 = vld [vmem:[%s5550_s13 + $0x70] sm:$0xff]  ;;  %v292_v17 = vld [vmem:[%s5550_s13 + $0x88] sm:$0xff]  ;;  %v291_v18 = vld [vmem:[%s5550_s13 + $0x80] sm:$0xff] }
  0x21   : > { %v294_v19 = vld [vmem:[%s5550_s13 + $0x98] sm:$0xff]  ;;  %v293_v20 = vld [vmem:[%s5550_s13 + $0x90] sm:$0xff]  ;;  %v296_v21 = vld [vmem:[%s5550_s13 + $0xa8] sm:$0xff]  ;;  %p5386_p12 = pnand %p5385_p11, %p5531_p5  ;;  %p5393_p2 = por %p5392_p1, %p5391_p0 }
  0x22   : > { %v295_v22 = vld [vmem:[%s5550_s13 + $0xa0] sm:$0xff]  ;;  %v298_v23 = vld [vmem:[%s5550_s13 + $0xb8] sm:$0xff]  ;;  %v297_v24 = vld [vmem:[%s5550_s13 + $0xb0] sm:$0xff] }
  0x23   : > { %v300_v25 = vld [vmem:[%s5550_s13 + $0xc8] sm:$0xff]  ;;  %v299_v26 = vld [vmem:[%s5550_s13 + $0xc0] sm:$0xff]  ;;  %v302_v27 = vld [vmem:[%s5550_s13 + $0xd8] sm:$0xff]  ;;  %p5387_p13 = pneg %p5386_p12 }
  0x24   : > { %335 = vperm.xlu1 %5251, %v280_v5   ;;  %330 = vperm.xlu0 %5250, %v279_v6   ;;  %v301_v28 = vld [vmem:[%s5550_s13 + $0xd0] sm:$0xff]  ;;  %v304_v29 = vld [vmem:[%s5550_s13 + $0xe8] sm:$0xff]  ;;  %v303_v30 = vld [vmem:[%s5550_s13 + $0xe0] sm:$0xff] }
  0x25   : > { %v306_v31 = vld [vmem:[%s5550_s13 + $0xf8] sm:$0xff]  ;;  %v305_v32 = vld [vmem:[%s5550_s13 + $0xf0] sm:$0xff]  ;;  %p5394_p3 = pnand %p5393_p2, %p5387_p13 }
  0x28   : > { %345 = vperm.xlu1 %5251, %v282_v7   ;;  %340 = vperm.xlu0 %5250, %v281_v8   ;;  %v8787_v8 = vmov 1326507024  }
  0x2c   : > { %355 = vperm.xlu1 %5251, %v284_v9   ;;  %350 = vperm.xlu0 %5250, %v283_v10  }
  0x30   : > { %365 = vperm.xlu1 %5251, %v286_v11   ;;  %360 = vperm.xlu0 %5250, %v285_v12  }
  0x34   : > { %375 = vperm.xlu1 %5251, %v288_v13   ;;  %370 = vperm.xlu0 %5250, %v287_v14  }
  0x38   : > { %385 = vperm.xlu1 %5251, %v290_v15   ;;  %380 = vperm.xlu0 %5250, %v289_v16  }
  0x3c   : > { %395 = vperm.xlu1 %5251, %v292_v17   ;;  %390 = vperm.xlu0 %5250, %v291_v18  }
  0x40   : > { %405 = vperm.xlu1 %5251, %v294_v19   ;;  %400 = vperm.xlu0 %5250, %v293_v20  }
  0x44   : > { %415 = vperm.xlu1 %5251, %v296_v21   ;;  %410 = vperm.xlu0 %5250, %v295_v22  }
  0x48   : > { %425 = vperm.xlu1 %5251, %v298_v23   ;;  %420 = vperm.xlu0 %5250, %v297_v24  }
  0x4c   : > { %435 = vperm.xlu1 %5251, %v300_v25   ;;  %430 = vperm.xlu0 %5250, %v299_v26  }
  0x50   : > { %445 = vperm.xlu1 %5251, %v302_v27   ;;  %440 = vperm.xlu0 %5250, %v301_v28  }
  0x54   : > { %455 = vperm.xlu1 %5251, %v304_v29   ;;  %450 = vperm.xlu0 %5250, %v303_v30  }
  0x58   : > { %465 = vperm.xlu1 %5251, %v306_v31   ;;  %460 = vperm.xlu0 %5250, %v305_v32  }
  0x9b   : > { %v321_v34 = vpop.permute.xlu1 %320  ;;  %v5592_v36 = vpop.permute.xlu0 %310 }
  0x9c   : > { %v5590_v35 = vmul.f32 %v5587_v33, %v321_v34 }
  0x9e   : > { %8942 = vst [vmem:[#allocation5_spill] sm:$0xff] %v5590_v35  ;;  %v715_v37 = vand.u32 2139095040, %v5590_v35  ;;  %v8784_v38 = vand.u32 2147483647, %v5590_v35 }
  0x9f   : > { %v326_v39 = vpop.permute.xlu1 %325  ;;  %v316_v43 = vpop.permute.xlu0 %315 }
  0xa0   : > { %v716_v40 = vshrl.u32 %v715_v37, 23  ;;  %v5597_v41 = vmul.f32 %v5587_v33, %v326_v39  ;;  %v719_v44 = vand.u32 8388607, %v8784_v38  ;;  %v5603_v47 = vmul.f32 %v5587_v33, %v316_v43 }
  0xa2   : > { %8943 = vst [vmem:[#allocation6_spill] sm:$0xff] %v5597_v41  ;;  %v4661_v42 = vadd.s32 4294967169, %v716_v40  ;;  %v818_v46 = vand.u32 2139095040, %v5597_v41  ;;  %8944 = vst [vmem:[#allocation7_spill] sm:$0xff] %v5603_v47  ;;  %v720_v48 = vor.u32 8388608, %v719_v44  ;;  %v612_v54 = vand.u32 2139095040, %v5603_v47 }
  0xa3   : > { %v8783_v53 = vand.u32 2147483647, %v5597_v41 }
  0xa4   : > { %v722_v45 = vadd.s32 1, %v4661_v42  ;;  %v819_v51 = vshrl.u32 %v818_v46, 23  ;;  %v760_v2 = vshll.u32 %v720_v48, 8  ;;  %v613_v11 = vshrl.u32 %v612_v54, 23 }
  0xa5   : > { %v822_v10 = vand.u32 8388607, %v8783_v53  ;;  %v8786_v48 = vand.u32 2147483647, %v5603_v47 }
  0xa6   : > { %vm723_vm0 = vcmp.gt.s32.totalorder %v722_v45, 0  ;;  %v4665_v6 = vadd.s32 4294967169, %v819_v51  ;;  %v4657_v24 = vadd.s32 4294967169, %v613_v11 }
  0xa7   : > { %v724_v49 = vsel %vm723_vm0, %v722_v45, 0  ;;  %v823_v27 = vor.u32 8388608, %v822_v10 }
  0xa8   : > { %v726_v50 = vand.u32 31, %v724_v49  ;;  %v725_v52 = vshrl.u32 %v724_v49, 5  ;;  %v825_v21 = vadd.s32 1, %v4665_v6  ;;  %v619_v40 = vadd.s32 1, %v4657_v24 }
  0xa9   : > { %v5633_v46 = vshll.u32 %v823_v27, 8 }
  0xaa   : > { %v727_v55 = vsub.s32 32, %v726_v50  ;;  %v729_v57 = vshll.u32 %v8799_v56, %v726_v50  ;;  %v732_v59 = vshll.u32 %v8796_v58, %v726_v50  ;;  %v735_v61 = vshll.u32 %v8794_v60, %v726_v50 }
  0xab   : > { %v738_v63 = vshll.u32 %v8792_v62, %v726_v50  ;;  %v741_v1 = vshll.u32 %v8789_v0, %v726_v50  ;;  %vm744_vm1 = vcmp.lt.s32.totalorder %v725_v52, 1  ;;  %vm747_vm2 = vcmp.lt.s32.totalorder %v725_v52, 4 }
  0xac   : > { %v730_v3 = vshrl.u32 %v8796_v58, %v727_v55  ;;  %v733_v4 = vshrl.u32 %v8794_v60, %v727_v55  ;;  %v736_v5 = vshrl.u32 %v8792_v62, %v727_v55  ;;  %v739_v7 = vshrl.u32 %v8789_v0, %v727_v55 }
  0xad   : > { %v742_v9 = vshrl.u32 %v8787_v8, %v727_v55  ;;  %v728_v15 = vshrl.u32 %v8799_v56, %v727_v55  ;;  %vm746_vm3 = vcmp.lt.s32.totalorder %v725_v52, 3  ;;  %vm745_vm4 = vcmp.lt.s32.totalorder %v725_v52, 2 }
  0xae   : > { %v731_v12 = vor.u32 %v730_v3, %v729_v57  ;;  %v734_v13 = vor.u32 %v733_v4, %v732_v59  ;;  %v737_v14 = vor.u32 %v736_v5, %v735_v61  ;;  %v740_v16 = vor.u32 %v739_v7, %v738_v63 }
  0xaf   : > { %v743_v17 = vor.u32 %v742_v9, %v741_v1  ;;  %vm826_vm5 = vcmp.gt.s32.totalorder %v825_v21, 0  ;;  %vm620_vm6 = vcmp.gt.s32.totalorder %v619_v40, 0 }
  0xb0   : > { %v749_v18 = vsel %vm747_vm2, %v737_v14, 2102212464  ;;  %v752_v19 = vsel %vm744_vm1, %v731_v12, %v734_v13  ;;  %v756_v20 = vsel %vm744_vm1, %v734_v13, %v737_v14  ;;  %v753_v22 = vsel %vm747_vm2, %v740_v16, 920167782 }
  0xb1   : > { %v757_v23 = vsel %vm747_vm2, %v743_v17, 1326507024  ;;  %v754_v25 = vsel %vm746_vm3, %v737_v14, %v753_v22  ;;  %v748_v28 = vsel %vm744_vm1, %v728_v15, %v731_v12  ;;  %v750_v29 = vsel %vm746_vm3, %v734_v13, %v749_v18 }
  0xb2   : > { %v758_v26 = vsel %vm746_vm3, %v740_v16, %v757_v23  ;;  %v755_v30 = vsel %vm745_vm4, %v752_v19, %v754_v25  ;;  %v751_v42 = vsel %vm745_vm4, %v748_v28, %v750_v29  ;;  %v827_v43 = vsel %vm826_vm5, %v825_v21, 0 }
  0xb3   : > { %v759_v31 = vsel %vm745_vm4, %v756_v20, %v758_v26  ;;  %v5626_v37 = vmul.u32.u64.low %v760_v2, %v755_v30  ;;  %v5627_v39 = vmul.u32.u64.high %v760_v2, %v755_v30, %v5626_v37  ;;  %v829_v44 = vand.u32 31, %v827_v43 }
  0xb4   : > { %v5623_v32 = vmul.u32.u64.low %v760_v2, %v759_v31  ;;  %v5624_v34 = vmul.u32.u64.high %v760_v2, %v759_v31, %v5623_v32  ;;  %v767_v49 = vmul.u32 %v760_v2, %v751_v42  ;;  %v828_v50 = vshrl.u32 %v827_v43, 5 }
  0xb5   : > { %v770_v45 = vadd.s32 1, %v5627_v39  ;;  %v830_v51 = vsub.s32 32, %v829_v44  ;;  %v621_v52 = vsel %vm620_vm6, %v619_v40, 0  ;;  %v832_v55 = vshll.u32 %v8799_v56, %v829_v44 }
  0xb6   : > { %vm769_vm7 = vc.u32 %v5624_v34, %v5626_v37  ;;  %v835_v57 = vshll.u32 %v8796_v58, %v829_v44  ;;  %v838_v59 = vshll.u32 %v8794_v60, %v829_v44  ;;  %v841_v3 = vshll.u32 %v8792_v62, %v829_v44 }
  0xb7   : > { %v771_v54 = vsel %vm769_vm7, %v770_v45, %v5627_v39  ;;  %v833_v63 = vshrl.u32 %v8796_v58, %v830_v51  ;;  %v836_v1 = vshrl.u32 %v8794_v60, %v830_v51  ;;  %v839_v2 = vshrl.u32 %v8792_v62, %v830_v51 }
  0xb8   : > { %v772_v61 = vadd.s32 %v771_v54, %v767_v49  ;;  %v842_v4 = vshrl.u32 %v8789_v0, %v830_v51  ;;  %v844_v5 = vshll.u32 %v8789_v0, %v829_v44  ;;  %v845_v6 = vshrl.u32 %v8787_v8, %v830_v51 }
  0xb9   : > { %v834_v9 = vor.u32 %v833_v63, %v832_v55  ;;  %v837_v10 = vor.u32 %v836_v1, %v835_v57  ;;  %vm847_vm8 = vcmp.lt.s32.totalorder %v828_v50, 1  ;;  %v831_v11 = vshrl.u32 %v8799_v56, %v830_v51 }
  0xba   : > { %v773_v7 = vadd.s32 536870912, %v772_v61  ;;  %v840_v12 = vor.u32 %v839_v2, %v838_v59  ;;  %v843_v13 = vor.u32 %v842_v4, %v841_v3  ;;  %v846_v14 = vor.u32 %v845_v6, %v844_v5 }
  0xbb   : > { %vm848_vm9 = vcmp.lt.s32.totalorder %v828_v50, 2  ;;  %vm849_vm10 = vcmp.lt.s32.totalorder %v828_v50, 3  ;;  %vm850_vm11 = vcmp.lt.s32.totalorder %v828_v50, 4  ;;  %v855_v15 = vsel %vm847_vm8, %v834_v9, %v837_v10 }
  0xbc   : > { %v852_v16 = vsel %vm850_vm11, %v840_v12, 2102212464  ;;  %v856_v17 = vsel %vm850_vm11, %v843_v13, 920167782  ;;  %v859_v18 = vsel %vm847_vm8, %v837_v10, %v840_v12  ;;  %v860_v19 = vsel %vm850_vm11, %v846_v14, 1326507024 }
  0xbd   : > { %v5648_v20 = vshrl.u32 %v773_v7, 30  ;;  %v851_v21 = vsel %vm847_vm8, %v831_v11, %v834_v9  ;;  %v857_v22 = vsel %vm849_vm10, %v840_v12, %v856_v17  ;;  %v861_v23 = vsel %vm849_vm10, %v843_v13, %v860_v19  ;;  %v336_v11 = vpop.permute.xlu1 %335 }
  0xbe   : > { %v853_v24 = vsel %vm849_vm10, %v837_v10, %v852_v16  ;;  %v858_v25 = vsel %vm848_vm9, %v855_v15, %v857_v22  ;;  %v862_v26 = vsel %vm848_vm9, %v859_v18, %v861_v23  ;;  %v623_v27 = vand.u32 31, %v621_v52 }
  0xbf   : > { %8945 = vst [vmem:[#allocation8_spill] sm:$0xff] %v5648_v20  ;;  %v5654_v28 = vmul.f32 %v5587_v33, %v5592_v36  ;;  %v5657_v29 = vmul.u32.u64.low %v5633_v46, %v862_v26  ;;  %v5658_v30 = vmul.u32.u64.high %v5633_v46, %v862_v26, %v5657_v29  ;;  %v616_v39 = vand.u32 8388607, %v8786_v48 }
  0xc0   : > { %v5661_v31 = vmul.u32.u64.low %v5633_v46, %v858_v25  ;;  %v5662_v32 = vmul.u32.u64.high %v5633_v46, %v858_v25, %v5661_v31  ;;  %v624_v40 = vsub.s32 32, %v623_v27  ;;  %v775_v42 = vshll.u32 %v5648_v20, 30 }
  0xc1   : > { %v854_v43 = vsel %vm848_vm9, %v851_v21, %v853_v24  ;;  %v5669_v44 = vshrl.u32 %v621_v52, 5  ;;  %v626_v36 = vshll.u32 %v8799_v56, %v623_v27  ;;  %v629_v49 = vshll.u32 %v8796_v58, %v623_v27 }
  0xc2   : > { %v627_v45 = vshrl.u32 %v8796_v58, %v624_v40  ;;  %v630_v51 = vshrl.u32 %v8794_v60, %v624_v40  ;;  %v633_v54 = vshrl.u32 %v8792_v62, %v624_v40  ;;  %vm872_vm12 = vc.u32 %v5658_v30, %v5661_v31 }
  0xc3   : > { %v632_v55 = vshll.u32 %v8794_v60, %v623_v27  ;;  %v635_v50 = vshll.u32 %v8792_v62, %v623_v27  ;;  %v636_v52 = vshrl.u32 %v8789_v0, %v624_v40  ;;  %v873_v57 = vadd.s32 1, %v5662_v32 }
  0xc4   : > { %v628_v59 = vor.u32 %v627_v45, %v626_v36  ;;  %v631_v63 = vor.u32 %v630_v51, %v629_v49  ;;  %v509_v1 = vand.u32 2139095040, %v5654_v28  ;;  %v639_v4 = vshrl.u32 %v8787_v8, %v624_v40  ;;  %v331_v36 = vpop.permute.xlu0 %330 }
  0xc5   : > { %v634_v3 = vor.u32 %v633_v54, %v632_v55  ;;  %v637_v2 = vor.u32 %v636_v52, %v635_v50  ;;  %v870_v5 = vmul.u32 %v5633_v46, %v854_v43  ;;  %v874_v6 = vsel %vm872_vm12, %v873_v57, %v5662_v32 }
  0xc6   : > { %v617_v7 = vor.u32 8388608, %v616_v39  ;;  %v638_v9 = vshll.u32 %v8789_v0, %v623_v27  ;;  %v5687_v10 = vsub.s32 %v772_v61, %v775_v42  ;;  %vm641_vm13 = vcmp.lt.s32.totalorder %v5669_v44, 1 }
  0xc7   : > { %vm643_vm14 = vcmp.lt.s32.totalorder %v5669_v44, 3  ;;  %vm644_vm15 = vcmp.lt.s32.totalorder %v5669_v44, 4  ;;  %v875_v12 = vadd.s32 %v874_v6, %v870_v5  ;;  %v649_v14 = vsel %vm641_vm13, %v628_v59, %v631_v63 }
  0xc8   : > { %v640_v13 = vor.u32 %v639_v4, %v638_v9  ;;  %v650_v46 = vsel %vm644_vm15, %v637_v2, 920167782  ;;  %vm642_vm0 = vcmp.lt.s32.totalorder %v5669_v44, 2  ;;  %v657_v16 = vshll.u32 %v617_v7, 8 }
  0xc9   : > { %v651_v61 = vsel %vm643_vm14, %v634_v3, %v650_v46  ;;  %v5702_v17 = vmul.f32 %v5587_v33, %v336_v11  ;;  %v778_v18 = vsub.s32 0, %v5687_v10  ;;  %v510_v19 = vshrl.u32 %v509_v1, 23 }
  0xca   : > { %v652_v15 = vsel %vm642_vm0, %v649_v14, %v651_v61  ;;  %v653_v21 = vsel %vm641_vm13, %v631_v63, %v634_v3  ;;  %v876_v22 = vadd.s32 536870912, %v875_v12  ;;  %v654_v23 = vsel %vm644_vm15, %v640_v13, 1326507024 }
  0xcb   : > { %8946 = vst [vmem:[#allocation9_spill] sm:$0xff] %v5702_v17  ;;  %v5709_v24 = vmul.u32.u64.low %v657_v16, %v652_v15  ;;  %v5710_v25 = vmul.u32.u64.high %v657_v16, %v652_v15, %v5709_v24  ;;  %v655_v26 = vsel %vm643_vm14, %v637_v2, %v654_v23  ;;  %v646_v27 = vsel %vm644_vm15, %v634_v3, 2102212464 }
  0xcc   : > { %v656_v29 = vsel %vm642_vm0, %v653_v21, %v655_v26  ;;  %v1024_v32 = vand.u32 2139095040, %v5702_v17  ;;  %v4662_v39 = vmin.u32 %v778_v18, %v5687_v10  ;;  %v4653_v42 = vadd.s32 4294967169, %v510_v19 }
  0xcd   : > { %v625_v43 = vshrl.u32 %v8799_v56, %v624_v40  ;;  %v5722_v45 = vshrl.u32 %v876_v22, 30  ;;  %v5724_v49 = vmul.u32.u64.low %v657_v16, %v656_v29  ;;  %v5725_v51 = vmul.u32.u64.high %v657_v16, %v656_v29, %v5724_v49 }
  0xce   : > { %v1025_v54 = vshrl.u32 %v1024_v32, 23  ;;  %v647_v50 = vsel %vm643_vm14, %v631_v63, %v646_v27  ;;  %v667_v52 = vadd.s32 1, %v5710_v25  ;;  %v5733_v1 = vmul.f32 %v5587_v33, %v331_v36 }
  0xcf   : > { %8947 = vst [vmem:[#allocation10_spill] sm:$0xff] %v5722_v45  ;;  %v645_v55 = vsel %vm641_vm13, %v625_v43, %v628_v59  ;;  %v780_v40 = vclz %v4662_v39  ;;  %v516_v3 = vadd.s32 1, %v4653_v42  ;;  %v878_v2 = vshll.u32 %v5722_v45, 30 }
  0xd0   : > { %v4673_v57 = vadd.s32 4294967169, %v1025_v54  ;;  %8948 = vst [vmem:[#allocation11_spill] sm:$0xff] %v5733_v1  ;;  %v648_v4 = vsel %vm642_vm0, %v645_v55, %v647_v50  ;;  %vm666_vm1 = vc.u32 %v5725_v51, %v5709_v24  ;;  %v8781_v63 = vand.u32 2147483647, %v5702_v17 }
  0xd1   : > { %v668_v5 = vsel %vm666_vm1, %v667_v52, %v5710_v25  ;;  %v921_v6 = vand.u32 2139095040, %v5733_v1  ;;  %v4663_v7 = vadd.s32 4294967294, %v780_v40  ;;  %v664_v9 = vmul.u32 %v657_v16, %v648_v4 }
  0xd2   : > { %v1031_v59 = vadd.s32 1, %v4673_v57  ;;  %vm517_vm3 = vcmp.gt.s32.totalorder %v516_v3, 0  ;;  %v5743_v13 = vsub.s32 %v875_v12, %v878_v2  ;;  %v1028_v46 = vand.u32 8388607, %v8781_v63 }
  0xd3   : > { %v5745_v44 = vadd.s32 %v668_v5, %v664_v9  ;;  %v922_v15 = vshrl.u32 %v921_v6, 23  ;;  %vm4664_vm4 = vcmp.lt.s32.totalorder %v4663_v7, 0  ;;  %v518_v18 = vsel %vm517_vm3, %v516_v3, 0 }
  0xd4   : > { %vm1032_vm2 = vcmp.gt.s32.totalorder %v1031_v59, 0  ;;  %v881_v19 = vsub.s32 0, %v5743_v13  ;;  %v1029_v27 = vor.u32 8388608, %v1028_v46  ;;  %v5759_v54 = vand.u32 31, %v518_v18  ;;  %v346_v46 = vpop.permute.xlu1 %345 }
  0xd5   : > { %v1033_v11 = vsel %vm1032_vm2, %v1031_v59, 0  ;;  %v670_v12 = vadd.s32 536870912, %v5745_v44  ;;  %v4669_v39 = vadd.s32 4294967169, %v922_v15  ;;  %v5764_v52 = vsel %vm4664_vm4, 0, %v4663_v7 }
  0xd6   : > { %v1035_v14 = vand.u32 31, %v1033_v11  ;;  %v1034_v29 = vshrl.u32 %v1033_v11, 5  ;;  %v8782_v3 = vand.u32 2147483647, %v5733_v1  ;;  %v4666_v2 = vmin.u32 %v881_v19, %v5743_v13 }
  0xd7   : > { %v5766_v57 = vshrl.u32 %v670_v12, 30  ;;  %v1069_v6 = vshll.u32 %v1029_v27, 8  ;;  %v928_v9 = vadd.s32 1, %v4669_v39 }
  0xd8   : > { %v1036_v61 = vsub.s32 32, %v1035_v14  ;;  %v1038_v21 = vshll.u32 %v8799_v56, %v1035_v14  ;;  %v1041_v23 = vshll.u32 %v8796_v58, %v1035_v14  ;;  %v1044_v25 = vshll.u32 %v8794_v60, %v1035_v14 }
  0xd9   : > { %v1047_v36 = vshll.u32 %v8792_v62, %v1035_v14  ;;  %v1050_v55 = vshll.u32 %v8789_v0, %v1035_v14  ;;  %8949 = vst [vmem:[#allocation12_spill] sm:$0xff] %v5766_v57  ;;  %vm1053_vm5 = vcmp.lt.s32.totalorder %v1034_v29, 1  ;;  %vm1056_vm6 = vcmp.lt.s32.totalorder %v1034_v29, 4 }
  0xda   : > { %v1039_v16 = vshrl.u32 %v8796_v58, %v1036_v61  ;;  %v1042_v22 = vshrl.u32 %v8794_v60, %v1036_v61  ;;  %v1045_v26 = vshrl.u32 %v8792_v62, %v1036_v61  ;;  %v1048_v49 = vshrl.u32 %v8789_v0, %v1036_v61 }
  0xdb   : > { %v1051_v50 = vshrl.u32 %v8787_v8, %v1036_v61  ;;  %v1037_v11 = vshrl.u32 %v8799_v56, %v1036_v61  ;;  %vm1055_vm7 = vcmp.lt.s32.totalorder %v1034_v29, 3  ;;  %v672_v15 = vshll.u32 %v5766_v57, 30 }
  0xdc   : > { %v1040_v32 = vor.u32 %v1039_v16, %v1038_v21  ;;  %v1043_v42 = vor.u32 %v1042_v22, %v1041_v23  ;;  %v1046_v43 = vor.u32 %v1045_v26, %v1044_v25  ;;  %v1049_v40 = vor.u32 %v1048_v49, %v1047_v36 }
  0xdd   : > { %v1052_v4 = vor.u32 %v1051_v50, %v1050_v55  ;;  %vm1054_vm8 = vcmp.lt.s32.totalorder %v1034_v29, 2  ;;  %v5777_v61 = vmul.f32 %v5587_v33, %v346_v46  ;;  %v883_v27 = vclz %v4666_v2 }
  0xde   : > { %v1058_v59 = vsel %vm1056_vm6, %v1046_v43, 2102212464  ;;  %v1061_v5 = vsel %vm1053_vm5, %v1040_v32, %v1043_v42  ;;  %v1062_v14 = vsel %vm1056_vm6, %v1049_v40, 920167782  ;;  %v1065_v7 = vsel %vm1053_vm5, %v1043_v42, %v1046_v43 }
  0xdf   : > { %v1063_v21 = vsel %vm1055_vm7, %v1046_v43, %v1062_v14  ;;  %v1066_v16 = vsel %vm1056_vm6, %v1052_v4, 1326507024  ;;  %v1057_v22 = vsel %vm1053_vm5, %v1037_v11, %v1040_v32  ;;  %v1059_v19 = vsel %vm1055_vm7, %v1043_v42, %v1058_v59 }
  0xe0   : > { %v1064_v12 = vsel %vm1054_vm8, %v1061_v5, %v1063_v21  ;;  %v1067_v23 = vsel %vm1055_vm7, %v1049_v40, %v1066_v16  ;;  %vm929_vm9 = vcmp.gt.s32.totalorder %v928_v9, 0  ;;  %v784_v29 = vsub.s32 32, %v5764_v52 }
  0xe1   : > { %v1068_v25 = vsel %vm1054_vm8, %v1065_v7, %v1067_v23  ;;  %v5772_v26 = vmul.u32.u64.low %v1069_v6, %v1064_v12  ;;  %v5773_v36 = vmul.u32.u64.high %v1069_v6, %v1064_v12, %v5772_v26  ;;  %v1060_v43 = vsel %vm1054_vm8, %v1057_v22, %v1059_v19 }
  0xe2   : > { %v5779_v39 = vmul.u32.u64.low %v1069_v6, %v1068_v25  ;;  %v5780_v49 = vmul.u32.u64.high %v1069_v6, %v1068_v25, %v5779_v39  ;;  %v925_v32 = vand.u32 8388607, %v8782_v3  ;;  %v930_v42 = vsel %vm929_vm9, %v928_v9, 0 }
  0xe3   : > { %v768_v55 = vadd.s32 %v5626_v37, %v5624_v34  ;;  %v5787_v50 = vshrl.u32 %v518_v18, 5  ;;  %v5790_v40 = vsub.s32 32, %v5759_v54  ;;  %v5793_v2 = vsub.s32 %v5745_v44, %v672_v15 }
  0xe4   : > { %v785_v4 = vshll.u32 %v5687_v10, %v5764_v52  ;;  %v788_v59 = vsub.s32 4294967266, %v5764_v52  ;;  %v1079_v5 = vadd.s32 1, %v5773_v36  ;;  %v932_v11 = vand.u32 31, %v930_v42 }
  0xe5   : > { %8950 = vst [vmem:[#allocation13_spill] sm:$0xff] %v5787_v50  ;;  %v4667_v9 = vadd.s32 4294967294, %v883_v27  ;;  %v1076_v14 = vmul.u32 %v1069_v6, %v1060_v43  ;;  %vm1078_vm10 = vc.u32 %v5780_v49, %v5772_v26  ;;  %v1230_v34 = vand.u32 2139095040, %v5777_v61 }
  0xe6   : > { %v786_v37 = vshrl.u32 %v768_v55, %v784_v29  ;;  %v1080_v18 = vsel %vm1078_vm10, %v1079_v5, %v5773_v36  ;;  %v926_v44 = vor.u32 8388608, %v925_v32  ;;  %v933_v7 = vsub.s32 32, %v932_v11 }
  0xe7   : > { %v675_v46 = vsub.s32 0, %v5793_v2  ;;  %v5804_v15 = vadd.s32 %v1080_v18, %v1076_v14  ;;  %v935_v21 = vshll.u32 %v8799_v56, %v932_v11  ;;  %v938_v16 = vshll.u32 %v8796_v58, %v932_v11 }
  0xe8   : > { %v936_v6 = vshrl.u32 %v8796_v58, %v933_v7  ;;  %v939_v22 = vshrl.u32 %v8794_v60, %v933_v7  ;;  %v941_v19 = vshll.u32 %v8794_v60, %v932_v11  ;;  %v942_v12 = vshrl.u32 %v8792_v62, %v933_v7 }
  0xe9   : > { %vm4668_vm11 = vcmp.lt.s32.totalorder %v4667_v9, 0  ;;  %v931_v23 = vshrl.u32 %v930_v42, 5  ;;  %v944_v25 = vshll.u32 %v8792_v62, %v932_v11  ;;  %v1231_v36 = vshrl.u32 %v1230_v34, 23 }
  0xea   : > { %v937_v27 = vor.u32 %v936_v6, %v935_v21  ;;  %v940_v39 = vor.u32 %v939_v22, %v938_v16  ;;  %v943_v29 = vor.u32 %v942_v12, %v941_v19  ;;  %v945_v43 = vshrl.u32 %v8789_v0, %v933_v7 }
  0xeb   : > { %v789_v32 = vadd.s32 127, %v788_v59  ;;  %v1082_v55 = vadd.s32 536870912, %v5804_v15  ;;  %v947_v5 = vshll.u32 %v8789_v0, %v932_v11  ;;  %v948_v14 = vshrl.u32 %v8787_v8, %v933_v7 }
  0xec   : > { %v5817_v18 = vsel %vm4668_vm11, 0, %v4667_v9  ;;  %v4658_v63 = vmin.u32 %v675_v46, %v5793_v2  ;;  %v946_v42 = vor.u32 %v945_v43, %v944_v25  ;;  %v966_v3 = vshll.u32 %v926_v44, 8 }
  0xed   : > { %v949_v53 = vor.u32 %v948_v14, %v947_v5  ;;  %vm950_vm12 = vcmp.lt.s32.totalorder %v931_v23, 1  ;;  %vm953_vm13 = vcmp.lt.s32.totalorder %v931_v23, 4  ;;  %v4681_v34 = vadd.s32 4294967169, %v1231_v36 }
  0xee   : > { %vm952_vm14 = vcmp.lt.s32.totalorder %v931_v23, 3  ;;  %v955_v21 = vsel %vm953_vm13, %v943_v29, 2102212464  ;;  %v958_v59 = vsel %vm950_vm12, %v937_v27, %v940_v39  ;;  %v959_v16 = vsel %vm953_vm13, %v946_v42, 920167782 }
  0xef   : > { %v5821_v6 = vshrl.u32 %v1082_v55, 30  ;;  %v934_v11 = vshrl.u32 %v8799_v56, %v933_v7  ;;  %vm951_vm15 = vcmp.lt.s32.totalorder %v931_v23, 2  ;;  %v960_v9 = vsel %vm952_vm14, %v943_v29, %v959_v16 }
  0xf0   : > { %v677_v22 = vclz %v4658_v63  ;;  %v961_v46 = vsel %vm951_vm15, %v958_v59, %v960_v9  ;;  %v962_v44 = vsel %vm950_vm12, %v940_v39, %v943_v29  ;;  %v963_v19 = vsel %vm953_vm13, %v949_v53, 1326507024 }
  0xf1   : > { %8951 = vst [vmem:[#allocation14_spill] sm:$0xff] %v5821_v6  ;;  %v790_v12 = vshll.u32 %v789_v32, 23  ;;  %v954_v25 = vsel %vm950_vm12, %v934_v11, %v937_v27  ;;  %v956_v36 = vsel %vm952_vm14, %v940_v39, %v955_v21  ;;  %v964_v43 = vsel %vm952_vm14, %v946_v42, %v963_v19 }
  0xf2   : > { %v891_v5 = vsub.s32 4294967266, %v5817_v18  ;;  %v965_v55 = vsel %vm951_vm15, %v962_v44, %v964_v43  ;;  %v5829_v14 = vmul.u32.u64.low %v966_v3, %v961_v46  ;;  %v5830_v38 = vmul.u32.u64.high %v966_v3, %v961_v46, %v5829_v14 }
  0xf3   : > { %v1084_v63 = vshll.u32 %v5821_v6, 30  ;;  %v5834_v7 = vmul.u32.u64.low %v966_v3, %v965_v55  ;;  %v5835_v59 = vmul.u32.u64.high %v966_v3, %v965_v55, %v5834_v7  ;;  %v1237_v29 = vadd.s32 1, %v4681_v34 }
  0xf4   : > { %v5839_v53 = vshll.u32 %v8792_v62, %v5759_v54  ;;  %v5843_v27 = vshll.u32 %v8789_v0, %v5759_v54  ;;  %v4659_v39 = vadd.s32 4294967294, %v677_v22  ;;  %v957_v32 = vsel %vm951_vm15, %v954_v25, %v956_v36 }
  0xf5   : > { %v5849_v42 = vor.u32 %v786_v37, %v785_v4  ;;  %v5853_v21 = vshrl.u32 %v8789_v0, %v5790_v40  ;;  %v8785_v34 = vand.u32 2147483647, %v5777_v61  ;;  %vm1238_vm0 = vcmp.gt.s32.totalorder %v1237_v29, 0 }
  0xf6   : > { %v5856_v16 = vor.u32 4788187, %v790_v12  ;;  %v887_v11 = vsub.s32 32, %v5817_v18  ;;  %v976_v9 = vadd.s32 1, %v5830_v38  ;;  %v1239_v23 = vsel %vm1238_vm0, %v1237_v29, 0 }
  0xf7   : > { %v892_v22 = vadd.s32 127, %v891_v5  ;;  %v5861_v46 = vsub.s32 %v5804_v15, %v1084_v63  ;;  %v973_v10 = vmul.u32 %v966_v3, %v957_v32  ;;  %vm975_vm1 = vc.u32 %v5835_v59, %v5829_v14  ;;  %v341_v32 = vpop.permute.xlu0 %340 }
  0xf8   : > { %v871_v52 = vadd.s32 %v5661_v31, %v5658_v30  ;;  %vm4660_vm2 = vcmp.lt.s32.totalorder %v4659_v39, 0  ;;  %v977_v4 = vsel %vm975_vm1, %v976_v9, %v5830_v38  ;;  %v1241_v37 = vand.u32 31, %v1239_v23 }
  0xf9   : > { %v794_v44 = vcvt.s32.f32 %v5849_v42  ;;  %v5871_v19 = vshrl.u32 %v8787_v8, %v5790_v40  ;;  %v978_v12 = vadd.s32 %v977_v4, %v973_v10  ;;  %v1234_v3 = vand.u32 8388607, %v8785_v34 }
  0xfa   : > { %v792_v15 = vand.u32 2147483647, %v5856_v16  ;;  %v888_v25 = vshll.u32 %v5743_v13, %v5817_v18  ;;  %v889_v30 = vshrl.u32 %v871_v52, %v887_v11  ;;  %v1242_v31 = vsub.s32 32, %v1241_v37 }
  0xfb   : > { %v893_v36 = vshll.u32 %v892_v22, 23  ;;  %v5878_v38 = vsel %vm4660_vm2, 0, %v4659_v39  ;;  %v1087_v43 = vsub.s32 0, %v5861_v46  ;;  %v979_v5 = vadd.s32 536870912, %v978_v12 }
  0xfc   : > { %v1244_v55 = vshll.u32 %v8799_v56, %v1241_v37  ;;  %v1245_v63 = vshrl.u32 %v8796_v58, %v1242_v31  ;;  %v1247_v7 = vshll.u32 %v8796_v58, %v1241_v37  ;;  %v1248_v29 = vshrl.u32 %v8794_v60, %v1242_v31 }
  0xfd   : > { %v1235_v42 = vor.u32 8388608, %v1234_v3  ;;  %v5885_v16 = vshrl.u32 %v1239_v23, 5  ;;  %v1250_v13 = vshll.u32 %v8794_v60, %v1241_v37  ;;  %v1251_v18 = vshrl.u32 %v8792_v62, %v1242_v31 }
  0xfe   : > { %v1246_v39 = vor.u32 %v1245_v63, %v1244_v55  ;;  %v1249_v11 = vor.u32 %v1248_v29, %v1247_v7  ;;  %v1253_v9 = vshll.u32 %v8792_v62, %v1241_v37  ;;  %v1254_v22 = vshrl.u32 %v8789_v0, %v1242_v31 }
  0xff   : > { %v890_v10 = vor.u32 %v889_v30, %v888_v25  ;;  %v665_v52 = vadd.s32 %v5709_v24, %v5725_v51  ;;  %v5893_v4 = vshrl.u32 %v979_v5, 30  ;;  %v5896_v3 = vmul.f32 %v5587_v33, %v341_v32  ;;  %v356_v32 = vpop.permute.xlu1 %355 }
 0x100   : > { %v1252_v23 = vor.u32 %v1251_v18, %v1250_v13  ;;  %v1255_v34 = vor.u32 %v1254_v22, %v1253_v9  ;;  %v1256_v48 = vshll.u32 %v8789_v0, %v1241_v37  ;;  %v1257_v55 = vshrl.u32 %v8787_v8, %v1242_v31 }
 0x101   : > { %8952 = vst [vmem:[#allocation15_spill] sm:$0xff] %v5893_v4  ;;  %v894_v63 = vor.u32 4788187, %v893_v36  ;;  %v685_v7 = vsub.s32 4294967266, %v5878_v38  ;;  %v4674_v29 = vmin.u32 %v1087_v43, %v5861_v46  ;;  %vm1259_vm3 = vcmp.lt.s32.totalorder %v5885_v16, 1 }
 0x102   : > { %v1258_v25 = vor.u32 %v1257_v55, %v1256_v48  ;;  %vm1262_vm4 = vcmp.lt.s32.totalorder %v5885_v16, 4  ;;  %v1267_v24 = vsel %vm1259_vm3, %v1246_v39, %v1249_v11  ;;  %v5906_v51 = vshll.u32 %v1235_v42, 8 }
 0x103   : > { %v981_v30 = vshll.u32 %v5893_v4, 30  ;;  %vm1261_vm5 = vcmp.lt.s32.totalorder %v5885_v16, 3  ;;  %v1268_v37 = vsel %vm1262_vm4, %v1255_v34, 920167782  ;;  %v1127_v36 = vand.u32 2139095040, %v5896_v3 }
 0x104   : > { %vm1260_vm6 = vcmp.lt.s32.totalorder %v5885_v16, 2  ;;  %v1269_v48 = vsel %vm1261_vm5, %v1252_v23, %v1268_v37  ;;  %v1271_v43 = vsel %vm1259_vm3, %v1249_v11, %v1252_v23  ;;  %v1272_v5 = vsel %vm1262_vm4, %v1258_v25, 1326507024 }
 0x105   : > { %v681_v42 = vsub.s32 32, %v5878_v38  ;;  %v686_v13 = vadd.s32 127, %v685_v7  ;;  %v1270_v18 = vsel %vm1260_vm6, %v1267_v24, %v1269_v48  ;;  %v1273_v9 = vsel %vm1261_vm5, %v1255_v34, %v1272_v5 }
 0x106   : > { %v1089_v22 = vclz %v4674_v29  ;;  %v1274_v55 = vsel %vm1260_vm6, %v1271_v43, %v1273_v9  ;;  %v5928_v37 = vmul.u32.u64.low %v5906_v51, %v1270_v18  ;;  %v5929_v8 = vmul.u32.u64.high %v5906_v51, %v1270_v18, %v5928_v37 }
 0x107   : > { %v5932_v25 = vsub.s32 %v978_v12, %v981_v30  ;;  %v5935_v0 = vmul.u32.u64.low %v5906_v51, %v1274_v55  ;;  %v5936_v7 = vmul.u32.u64.high %v5906_v51, %v1274_v55, %v5935_v0  ;;  %v5939_v24 = vmul.f32 %v5587_v33, %v356_v32 }
 0x108   : > { %vm714_vm7 = vcmp.lt.s32.totalorder %v5590_v35, 0  ;;  %v795_v34 = vmul.f32 %v794_v44, %v792_v15  ;;  %v5944_v29 = vor.u32 %v5853_v21, %v5839_v53  ;;  %v1264_v48 = vsel %vm1262_vm4, %v1252_v23, 2102212464 }
 0x109   : > { %8953 = vst [vmem:[#allocation16_spill] sm:$0xff] %v5939_v24  ;;  %v1128_v43 = vshrl.u32 %v1127_v36, 23  ;;  %v895_v12 = vand.u32 2147483647, %v894_v63  ;;  %v897_v30 = vcvt.s32.f32 %v890_v10  ;;  %v683_v5 = vshrl.u32 %v665_v52, %v681_v42 }
 0x10a   : > { %8954 = vst [vmem:[#allocation17_spill] sm:$0xff] %v5944_v29  ;;  %v1243_v18 = vshrl.u32 %v8799_v56, %v1242_v31  ;;  %v682_v33 = vshll.u32 %v5793_v2, %v5878_v38  ;;  %v687_v0 = vshll.u32 %v686_v13, 23  ;;  %v4675_v32 = vadd.s32 4294967294, %v1089_v22 }
 0x10b   : > { %v4677_v9 = vadd.s32 4294967169, %v1128_v43  ;;  %v984_v44 = vsub.s32 0, %v5932_v25  ;;  %v1265_v21 = vsel %vm1261_vm5, %v1249_v11, %v1264_v48  ;;  %v1436_v15 = vand.u32 2139095040, %v5939_v24 }
 0x10c   : > { %v1263_v53 = vsel %vm1259_vm3, %v1243_v18, %v1246_v39  ;;  %v537_v10 = vor.u32 %v5871_v19, %v5843_v27  ;;  %vm541_vm8 = vcmp.lt.s32.totalorder %v5787_v50, 4  ;;  %v1285_v2 = vadd.s32 1, %v5929_v8 }
 0x10d   : > { %v1134_v31 = vadd.s32 1, %v4677_v9  ;;  %v796_v38 = vxor.u32 2147483648, %v795_v34  ;;  %v5961_v52 = vmul.f32 %v897_v30, %v895_v12  ;;  %v684_v23 = vor.u32 %v683_v5, %v682_v33 }
 0x10e   : > { %vm1284_vm9 = vc.u32 %v5936_v7, %v5928_v37  ;;  %v688_v39 = vor.u32 4788187, %v687_v0  ;;  %v1266_v11 = vsel %vm1260_vm6, %v1263_v53, %v1265_v21  ;;  %v8791_v63 = vand.u32 2147483647, %v5896_v3 }
 0x10f   : > { %vm1135_vm10 = vcmp.gt.s32.totalorder %v1134_v31, 0  ;;  %vm4676_vm11 = vcmp.lt.s32.totalorder %v4675_v32, 0  ;;  %v4670_v27 = vmin.u32 %v984_v44, %v5932_v25  ;;  %v1437_v36 = vshrl.u32 %v1436_v15, 23 }
 0x110   : > { %v1136_v19 = vsel %vm1135_vm10, %v1134_v31, 0  ;;  %v5972_v42 = vsel %vm541_vm8, %v5944_v29, 920167782  ;;  %v5976_v13 = vsel %vm541_vm8, %v537_v10, 1326507024  ;;  %v1286_v16 = vsel %vm1284_vm9, %v1285_v2, %v5929_v8 }
 0x111   : > { %8955 = vst [vmem:[#allocation18_spill] sm:$0xff] %v5972_v42  ;;  %8956 = vst [vmem:[#allocation19_spill] sm:$0xff] %v5976_v13  ;;  %v1138_v22 = vand.u32 31, %v1136_v19  ;;  %v5981_v55 = vsel %vm714_vm7, %v796_v38, %v795_v34  ;;  %v899_v48 = vxor.u32 2147483648, %v5961_v52  ;;  %v691_v43 = vcvt.s32.f32 %v684_v23 }
 0x112   : > { %8957 = vst [vmem:[#allocation20_spill] sm:$0xff] %v5981_v55  ;;  %v1282_v12 = vmul.u32 %v5906_v51, %v1266_v11  ;;  %v689_v30 = vand.u32 2147483647, %v688_v39  ;;  %v5985_v5 = vsel %vm4676_vm11, 0, %v4675_v32  ;;  %v1131_v18 = vand.u32 8388607, %v8791_v63 }
 0x113   : > { %v1139_v33 = vsub.s32 32, %v1138_v22  ;;  %v986_v0 = vclz %v4670_v27  ;;  %v1141_v8 = vshll.u32 %v8799_v56, %v1138_v22  ;;  %v4689_v44 = vadd.s32 4294967169, %v1437_v36 }
 0x114   : > { %v5989_v9 = vadd.s32 %v1286_v16, %v1282_v12  ;;  %v1144_v53 = vshll.u32 %v8796_v58, %v1138_v22  ;;  %v1137_v32 = vshrl.u32 %v1136_v19, 5  ;;  %v1147_v15 = vshll.u32 %v8794_v60, %v1138_v22 }
 0x115   : > { %v1142_v34 = vshrl.u32 %v8796_v58, %v1139_v33  ;;  %v1145_v21 = vshrl.u32 %v8794_v60, %v1139_v33  ;;  %v1148_v51 = vshrl.u32 %v8792_v62, %v1139_v33  ;;  %v1150_v10 = vshll.u32 %v8792_v62, %v1138_v22 }
 0x116   : > { %v8958_v2 = vmov 920167782   ;;  %v8959_v11 = vmov 1326507024   ;;  %vm817_vm12 = vcmp.lt.s32.totalorder %v5597_v41, 0  ;;  %v1077_v36 = vadd.s32 %v5772_v26, %v5780_v49 }
 0x117   : > { %v1151_v31 = vshrl.u32 %v8958_v2, %v1139_v33  ;;  %v1143_v38 = vor.u32 %v1142_v34, %v1141_v8  ;;  %v1146_v23 = vor.u32 %v1145_v21, %v1144_v53  ;;  %v1153_v39 = vshll.u32 %v8958_v2, %v1138_v22 }
 0x118   : > { %v1154_v27 = vshrl.u32 %v8959_v11, %v1139_v33  ;;  %v1132_v16 = vor.u32 8388608, %v1131_v18  ;;  %v1149_v12 = vor.u32 %v1148_v51, %v1147_v15  ;;  %v6004_v63 = vmul.f32 %v691_v43, %v689_v30  ;;  %v351_v51 = vpop.permute.xlu0 %350 }
 0x119   : > { %v1152_v19 = vor.u32 %v1151_v31, %v1150_v10  ;;  %v1288_v62 = vadd.s32 536870912, %v5989_v9  ;;  %v1443_v58 = vadd.s32 1, %v4689_v44  ;;  %v1093_v8 = vsub.s32 32, %v5985_v5 }
 0x11a   : > { %v1155_v60 = vor.u32 %v1154_v27, %v1153_v39  ;;  %v1097_v22 = vsub.s32 4294967266, %v5985_v5  ;;  %vm1156_vm13 = vcmp.lt.s32.totalorder %v1137_v32, 1  ;;  %vm1159_vm14 = vcmp.lt.s32.totalorder %v1137_v32, 4 }
 0x11b   : > { %v4671_v34 = vadd.s32 4294967294, %v986_v0  ;;  %vm1158_vm15 = vcmp.lt.s32.totalorder %v1137_v32, 3  ;;  %v1164_v53 = vsel %vm1156_vm13, %v1143_v38, %v1146_v23  ;;  %v1165_v26 = vsel %vm1159_vm14, %v1152_v19, 920167782 }
 0x11c   : > { %vm1157_vm0 = vcmp.lt.s32.totalorder %v1137_v32, 2  ;;  %v1166_v49 = vsel %vm1158_vm15, %v1149_v12, %v1165_v26  ;;  %v1168_v43 = vsel %vm1156_vm13, %v1146_v23, %v1149_v12  ;;  %v1172_v30 = vshll.u32 %v1132_v16, 8 }
 0x11d   : > { %v6012_v18 = vshrl.u32 %v1288_v62, 30  ;;  %v1167_v44 = vsel %vm1157_vm0, %v1164_v53, %v1166_v49  ;;  %v1169_v21 = vsel %vm1159_vm14, %v1155_v60, 1326507024  ;;  %vm1444_vm1 = vcmp.gt.s32.totalorder %v1443_v58, 0  ;;  %v6029_v60 = vld [vmem:[%s8776_s2] ss:$0 sm:$0xff] }
 0x11e   : > { %v1161_v15 = vsel %vm1159_vm14, %v1149_v12, 2102212464  ;;  %v1170_v0 = vsel %vm1158_vm15, %v1152_v19, %v1169_v21  ;;  %v6016_v10 = vmul.u32.u64.low %v1172_v30, %v1167_v44  ;;  %v6017_v31 = vmul.u32.u64.high %v1172_v30, %v1167_v44, %v6016_v10 }
 0x11f   : > { %8960 = vst [vmem:[#allocation21_spill] sm:$0xff] %v6012_v18  ;;  %v1140_v39 = vshrl.u32 %v8799_v56, %v1139_v33  ;;  %v1171_v27 = vsel %vm1157_vm0, %v1168_v43, %v1170_v0  ;;  %v8798_v16 = vand.u32 2147483647, %v5939_v24  ;;  %v1445_v62 = vsel %vm1444_vm1, %v1443_v58, 0 }
 0x120   : > { %vm4672_vm2 = vcmp.lt.s32.totalorder %v4671_v34, 0  ;;  %v6023_v26 = vmul.u32.u64.low %v1172_v30, %v1171_v27  ;;  %v6024_v53 = vmul.u32.u64.high %v1172_v30, %v1171_v27, %v6023_v26  ;;  %v6032_v12 = vmul.f32 %v6029_v60, %v351_v51 }
 0x121   : > { %v6037_v33 = vsel %vm817_vm12, %v899_v48, %v5961_v52  ;;  %v1160_v19 = vsel %vm1156_vm13, %v1140_v39, %v1143_v38  ;;  %v1162_v58 = vsel %vm1158_vm15, %v1146_v23, %v1161_v15  ;;  %v1447_v49 = vand.u32 31, %v1445_v62 }
 0x122   : > { %8961 = vst [vmem:[#allocation22_spill] sm:$0xff] %v6032_v12  ;;  %8962 = vst [vmem:[#allocation23_spill] sm:$0xff] %v6037_v33  ;;  %v1094_v44 = vshll.u32 %v5861_v46, %v5985_v5  ;;  %v1095_v21 = vshrl.u32 %v1077_v36, %v1093_v8  ;;  %v1290_v0 = vshll.u32 %v6012_v18, 30  ;;  %v6045_v51 = vadd.s32 127, %v1097_v22 }
 0x123   : > { %v6047_v27 = vsel %vm4672_vm2, 0, %v4671_v34  ;;  %v1440_v52 = vand.u32 8388607, %v8798_v16  ;;  %v1448_v48 = vsub.s32 32, %v1447_v49  ;;  %v1163_v38 = vsel %vm1157_vm0, %v1160_v19, %v1162_v58 }
 0x124   : > { %v1182_v23 = vadd.s32 1, %v6017_v31  ;;  %v1450_v15 = vshll.u32 %v8799_v56, %v1447_v49  ;;  %v1333_v39 = vand.u32 2139095040, %v6032_v12  ;;  %vm1181_vm3 = vc.u32 %v6024_v53, %v6016_v10 }
 0x125   : > { %v8963_v46 = vmov 2475754826   ;;  %v8964_v8 = vmov 2131351028   ;;  %v6061_v34 = vsub.s32 %v5989_v9, %v1290_v0  ;;  %v1446_v32 = vshrl.u32 %v1445_v62, 5 }
 0x126   : > { %v1451_v5 = vshrl.u32 %v8963_v46, %v1448_v48  ;;  %v1453_v36 = vshll.u32 %v8963_v46, %v1447_v49  ;;  %v1454_v22 = vshrl.u32 %v8964_v8, %v1448_v48  ;;  %v1456_v26 = vshll.u32 %v8964_v8, %v1447_v49 }
 0x127   : > { %v8965_v19 = vmov 2102212464   ;;  %v1460_v18 = vshrl.u32 %v8958_v2, %v1448_v48  ;;  %v1179_v6 = vmul.u32 %v1172_v30, %v1163_v38  ;;  %v1183_v4 = vsel %vm1181_vm3, %v1182_v23, %v6017_v31 }
 0x128   : > { %v1457_v58 = vshrl.u32 %v8965_v19, %v1448_v48  ;;  %v1452_v16 = vor.u32 %v1451_v5, %v1450_v15  ;;  %v1455_v43 = vor.u32 %v1454_v22, %v1453_v36  ;;  %v1459_v56 = vshll.u32 %v8965_v19, %v1447_v49 }
 0x129   : > { %v1441_v33 = vor.u32 8388608, %v1440_v52  ;;  %v1334_v45 = vshrl.u32 %v1333_v39, 23  ;;  %v1462_v9 = vshll.u32 %v8958_v2, %v1447_v49  ;;  %v1463_v62 = vshrl.u32 %v8959_v11, %v1448_v48 }
 0x12a   : > { %v1458_v41 = vor.u32 %v1457_v58, %v1456_v26  ;;  %v1461_v55 = vor.u32 %v1460_v18, %v1459_v56  ;;  %v6070_v0 = vor.u32 %v1095_v21, %v1094_v44  ;;  %v994_v15 = vsub.s32 4294967266, %v6047_v27 }
 0x12b   : > { %v1293_v5 = vsub.s32 0, %v6061_v34  ;;  %vm1465_vm4 = vcmp.lt.s32.totalorder %v1446_v32, 1  ;;  %v6074_v36 = vadd.s32 %v1183_v4, %v1179_v6  ;;  %v1464_v30 = vor.u32 %v1463_v62, %v1462_v9 }
 0x12c   : > { %vm1468_vm5 = vcmp.lt.s32.totalorder %v1446_v32, 4  ;;  %v1473_v31 = vsel %vm1465_vm4, %v1452_v16, %v1455_v43  ;;  %vm1467_vm6 = vcmp.lt.s32.totalorder %v1446_v32, 3  ;;  %v1481_v56 = vshll.u32 %v1441_v33, 8 }
 0x12d   : > { %v1474_v52 = vsel %vm1468_vm5, %v1461_v55, 920167782  ;;  %v4685_v18 = vadd.s32 4294967169, %v1334_v45  ;;  %vm1466_vm9 = vcmp.lt.s32.totalorder %v1446_v32, 2  ;;  %v1477_v44 = vsel %vm1465_vm4, %v1455_v43, %v1458_v41  ;;  %v366_v45 = vpop.permute.xlu1 %365 }
 0x12e   : > { %v1475_v49 = vsel %vm1467_vm6, %v1458_v41, %v1474_v52  ;;  %v1478_v21 = vsel %vm1468_vm5, %v1464_v30, 1326507024  ;;  %v4682_v38 = vmin.u32 %v1293_v5, %v6061_v34  ;;  %v8966_v23 = vmov 683565275  }
 0x12f   : > { %v1449_v39 = vshrl.u32 %v8966_v23, %v1448_v48  ;;  %v1470_v6 = vsel %vm1468_vm5, %v1458_v41, 2102212464  ;;  %v1476_v4 = vsel %vm1466_vm9, %v1473_v31, %v1475_v49  ;;  %v1185_v22 = vadd.s32 536870912, %v6074_v36 }
 0x130   : > { %v1479_v26 = vsel %vm1467_vm6, %v1461_v55, %v1478_v21  ;;  %v6084_v58 = vmul.u32.u64.low %v1481_v56, %v1476_v4  ;;  %v6085_v33 = vmul.u32.u64.high %v1481_v56, %v1476_v4, %v6084_v58  ;;  %v1099_v9 = vshll.u32 %v6045_v51, 23  ;;  %v361_v55 = vpop.permute.xlu0 %360 }
 0x131   : > { %v1480_v62 = vsel %vm1466_vm9, %v1477_v44, %v1479_v26  ;;  %v8811_v5 = vand.u32 2147483647, %v6032_v12  ;;  %v1340_v30 = vadd.s32 1, %v4685_v18  ;;  %v1469_v41 = vsel %vm1465_vm4, %v1449_v39, %v1452_v16 }
 0x132   : > { %v1471_v48 = vsel %vm1467_vm6, %v1455_v43, %v1470_v6  ;;  %v6093_v31 = vmul.u32.u64.low %v1481_v56, %v1480_v62  ;;  %v6094_v52 = vmul.u32.u64.high %v1481_v56, %v1480_v62, %v6093_v31  ;;  %v990_v49 = vsub.s32 32, %v6047_v27 }
 0x133   : > { %v1295_v21 = vclz %v4682_v38  ;;  %vm1341_vm10 = vcmp.gt.s32.totalorder %v1340_v30, 0  ;;  %v6098_v4 = vmul.f32 %v6029_v60, %v366_v45  ;;  %v995_v51 = vadd.s32 127, %v994_v15 }
 0x134   : > { %v6100_v44 = vshrl.u32 %v1185_v22, 30  ;;  %v1491_v18 = vadd.s32 1, %v6085_v33  ;;  %v1342_v26 = vsel %vm1341_vm10, %v1340_v30, 0  ;;  %v1472_v16 = vsel %vm1466_vm9, %v1469_v41, %v1471_v48 }
 0x135   : > { %8967 = vst [vmem:[#allocation24_spill] sm:$0xff] %v6098_v4  ;;  %v1337_v43 = vand.u32 8388607, %v8811_v5  ;;  %v1344_v39 = vand.u32 31, %v1342_v26  ;;  %v6107_v6 = vmul.f32 %v6029_v60, %v361_v55  ;;  %v6109_v38 = vor.u32 4788187, %v1099_v9 }
 0x136   : > { %8968 = vst [vmem:[#allocation25_spill] sm:$0xff] %v6100_v44  ;;  %v974_v15 = vadd.s32 %v5829_v14, %v5835_v59  ;;  %vm1490_vm11 = vc.u32 %v6094_v52, %v6084_v58  ;;  %v991_v32 = vshll.u32 %v5932_v25, %v6047_v27  ;;  %v4683_v22 = vadd.s32 4294967294, %v1295_v21 }
 0x137   : > { %v1492_v62 = vsel %vm1490_vm11, %v1491_v18, %v6085_v33  ;;  %v1345_v30 = vsub.s32 32, %v1344_v39  ;;  %v996_v48 = vshll.u32 %v995_v51, 23  ;;  %v1187_v9 = vshll.u32 %v6100_v44, 30 }
 0x138   : > { %v992_v41 = vshrl.u32 %v974_v15, %v990_v49  ;;  %v1488_v31 = vmul.u32 %v1481_v56, %v1472_v16  ;;  %v1338_v55 = vor.u32 8388608, %v1337_v43  ;;  %v1347_v5 = vshll.u32 %v8966_v23, %v1344_v39 }
 0x139   : > { %v1348_v14 = vshrl.u32 %v8963_v46, %v1345_v30  ;;  %v1351_v59 = vshrl.u32 %v8964_v8, %v1345_v30  ;;  %v1350_v25 = vshll.u32 %v8963_v46, %v1344_v39  ;;  %v1354_v27 = vshrl.u32 %v8965_v19, %v1345_v30 }
 0x13a   : > { %v6123_v45 = vadd.s32 %v1492_v62, %v1488_v31  ;;  %v1357_v33 = vshrl.u32 %v8958_v2, %v1345_v30  ;;  %vm4684_vm13 = vcmp.lt.s32.totalorder %v4683_v22, 0  ;;  %v1343_v49 = vshrl.u32 %v1342_v26, 5 }
 0x13b   : > { %v1353_v21 = vshll.u32 %v8964_v8, %v1344_v39  ;;  %v1356_v56 = vshll.u32 %v8965_v19, %v1344_v39  ;;  %v6131_v51 = vsub.s32 %v6074_v36, %v1187_v9  ;;  %v1349_v18 = vor.u32 %v1348_v14, %v1347_v5 }
 0x13c   : > { %v1352_v16 = vor.u32 %v1351_v59, %v1350_v25  ;;  %v1642_v43 = vand.u32 2139095040, %v6098_v4  ;;  %v1359_v31 = vshll.u32 %v8958_v2, %v1344_v39  ;;  %v1360_v44 = vshrl.u32 %v8959_v11, %v1345_v30 }
 0x13d   : > { %v1355_v15 = vor.u32 %v1354_v27, %v1353_v21  ;;  %v1358_v62 = vor.u32 %v1357_v33, %v1356_v56  ;;  %v1101_v20 = vand.u32 2147483647, %v6109_v38  ;;  %v993_v26 = vor.u32 %v992_v41, %v991_v32 }
 0x13e   : > { %v997_v35 = vor.u32 4788187, %v996_v48  ;;  %v1494_v57 = vadd.s32 536870912, %v6123_v45  ;;  %v1298_v42 = vsel %vm4684_vm13, 0, %v4683_v22  ;;  %v1361_v36 = vor.u32 %v1360_v44, %v1359_v31 }
 0x13f   : > { %vm1362_vm14 = vcmp.lt.s32.totalorder %v1343_v49, 1  ;;  %v1378_v5 = vshll.u32 %v1338_v55, 8  ;;  %v1190_v9 = vsub.s32 0, %v6131_v51  ;;  %vm1365_vm15 = vcmp.lt.s32.totalorder %v1343_v49, 4 }
 0x140   : > { %v1370_v14 = vsel %vm1362_vm14, %v1349_v18, %v1352_v16  ;;  %v1643_v59 = vshrl.u32 %v1642_v43, 23  ;;  %v1346_v39 = vshrl.u32 %v8966_v23, %v1345_v30  ;;  %vm1364_vm0 = vcmp.lt.s32.totalorder %v1343_v49, 3 }
 0x141   : > { %v1367_v25 = vsel %vm1365_vm15, %v1355_v15, 2102212464  ;;  %v1371_v38 = vsel %vm1365_vm15, %v1358_v62, 920167782  ;;  %vm611_vm1 = vcmp.lt.s32.totalorder %v5603_v47, 0  ;;  %v6143_v32 = vshrl.u32 %v1494_v57, 30 }
 0x142   : > { %vm1363_vm2 = vcmp.lt.s32.totalorder %v1343_v49, 2  ;;  %v1372_v22 = vsel %vm1364_vm0, %v1355_v15, %v1371_v38  ;;  %v1374_v44 = vsel %vm1362_vm14, %v1352_v16, %v1355_v15  ;;  %v1299_v41 = vsub.s32 32, %v1298_v42 }
 0x143   : > { %8969 = vst [vmem:[#allocation26_spill] sm:$0xff] %v6143_v32  ;;  %v1366_v48 = vsel %vm1362_vm14, %v1346_v39, %v1349_v18  ;;  %v1373_v55 = vsel %vm1363_vm2, %v1370_v14, %v1372_v22  ;;  %v1375_v27 = vsel %vm1365_vm15, %v1361_v36, 1326507024  ;;  %v1368_v33 = vsel %vm1364_vm0, %v1352_v16, %v1367_v25 }
 0x144   : > { %v1376_v21 = vsel %vm1364_vm0, %v1358_v62, %v1375_v27  ;;  %v6148_v30 = vmul.u32.u64.low %v1378_v5, %v1373_v55  ;;  %v6149_v56 = vmul.u32.u64.high %v1378_v5, %v1373_v55, %v6148_v30  ;;  %v1303_v43 = vsub.s32 4294967266, %v1298_v42 }
 0x145   : > { %v4678_v57 = vmin.u32 %v1190_v9, %v6131_v51  ;;  %v1377_v31 = vsel %vm1363_vm2, %v1374_v44, %v1376_v21  ;;  %v4697_v38 = vadd.s32 4294967169, %v1643_v59  ;;  %v1283_v15 = vadd.s32 %v5928_v37, %v5936_v7 }
 0x146   : > { %v1496_v18 = vshll.u32 %v6143_v32, 30  ;;  %v6157_v39 = vmul.u32.u64.low %v1378_v5, %v1377_v31  ;;  %v6158_v14 = vmul.u32.u64.high %v1378_v5, %v1377_v31, %v6157_v39  ;;  %v8970_v16 = vcvt.s32.f32 %v6070_v0 }
 0x147   : > { %v1000_v36 = vcvt.s32.f32 %v993_v26  ;;  %v1369_v25 = vsel %vm1363_vm2, %v1366_v48, %v1368_v33  ;;  %v1649_v22 = vadd.s32 1, %v4697_v38  ;;  %v998_v9 = vand.u32 2147483647, %v997_v35 }
 0x148   : > { %v6162_v62 = vmul.f32 %v8970_v16, %v1101_v20  ;;  %v1300_v44 = vshll.u32 %v6061_v34, %v1298_v42  ;;  %v1301_v59 = vshrl.u32 %v1283_v15, %v1299_v41  ;;  %v1388_v55 = vadd.s32 1, %v6149_v56 }
 0x149   : > { %v1304_v37 = vadd.s32 127, %v1303_v43  ;;  %v1192_v7 = vclz %v4678_v57  ;;  %v8820_v27 = vand.u32 2147483647, %v6098_v4  ;;  %vm1650_vm3 = vcmp.gt.s32.totalorder %v1649_v22, 0 }
 0x14a   : > { %v6169_v21 = vsub.s32 %v6123_v45, %v1496_v18  ;;  %v1385_v20 = vmul.u32 %v1378_v5, %v1369_v25  ;;  %vm1387_vm4 = vc.u32 %v6158_v14, %v6148_v30  ;;  %v1651_v0 = vsel %vm1650_vm3, %v1649_v22, 0 }
 0x14b   : > { %v8971_v35 = vxor.u32 2147483648, %v6004_v63  ;;  %v1389_v49 = vsel %vm1387_vm4, %v1388_v55, %v6149_v56  ;;  %v1653_v26 = vand.u32 31, %v1651_v0  ;;  %v6182_v41 = vmul.f32 %v1000_v36, %v998_v9 }
 0x14c   : > { %v6184_v45 = vor.u32 %v1301_v59, %v1300_v44  ;;  %v1390_v5 = vadd.s32 %v1389_v49, %v1385_v20  ;;  %v1539_v48 = vand.u32 2139095040, %v6107_v6  ;;  %v1305_v33 = vshll.u32 %v1304_v37, 23 }
 0x14d   : > { %v6178_v42 = vsel %vm611_vm1, %v8971_v35, %v6004_v63  ;;  %v4679_v43 = vadd.s32 4294967294, %v1192_v7  ;;  %v1646_v57 = vand.u32 8388607, %v8820_v27  ;;  %v1654_v31 = vsub.s32 32, %v1653_v26 }
 0x14e   : > { %8972 = vst [vmem:[#allocation27_spill] sm:$0xff] %v6178_v42  ;;  %v1499_v63 = vsub.s32 0, %v6169_v21  ;;  %v1391_v38 = vadd.s32 536870912, %v1390_v5  ;;  %v1656_v15 = vshll.u32 %v8966_v23, %v1653_v26  ;;  %v1659_v56 = vshll.u32 %v8963_v46, %v1653_v26 }
 0x14f   : > { %v1657_v18 = vshrl.u32 %v8963_v46, %v1654_v31  ;;  %v1660_v39 = vshrl.u32 %v8964_v8, %v1654_v31  ;;  %v1662_v16 = vshll.u32 %v8964_v8, %v1653_v26  ;;  %v1663_v36 = vshrl.u32 %v8965_v19, %v1654_v31 }
 0x150   : > { %v1652_v25 = vshrl.u32 %v1651_v0, 5  ;;  %v1665_v22 = vshll.u32 %v8965_v19, %v1653_v26  ;;  %v1666_v9 = vshrl.u32 %v8958_v2, %v1654_v31  ;;  %v1540_v44 = vshrl.u32 %v1539_v48, 23 }
 0x151   : > { %v6198_v59 = vor.u32 4788187, %v1305_v33  ;;  %v1658_v55 = vor.u32 %v1657_v18, %v1656_v15  ;;  %v1661_v37 = vor.u32 %v1660_v39, %v1659_v56  ;;  %v1664_v7 = vor.u32 %v1663_v36, %v1662_v16 }
 0x152   : > { %vm1023_vm5 = vcmp.lt.s32.totalorder %v5702_v17, 0  ;;  %v6201_v20 = vshrl.u32 %v1391_v38, 30  ;;  %v1647_v35 = vor.u32 8388608, %v1646_v57  ;;  %v1667_v49 = vor.u32 %v1666_v9, %v1665_v22 }
 0x153   : > { %vm4680_vm6 = vcmp.lt.s32.totalorder %v4679_v43, 0  ;;  %v4690_v0 = vmin.u32 %v1499_v63, %v6169_v21  ;;  %v1668_v34 = vshll.u32 %v8958_v2, %v1653_v26  ;;  %v1669_v48 = vshrl.u32 %v8959_v11, %v1654_v31 }
 0x154   : > { %8973 = vst [vmem:[#allocation28_spill] sm:$0xff] %v6201_v20  ;;  %vm1671_vm9 = vcmp.lt.s32.totalorder %v1652_v25, 1  ;;  %vm1673_vm10 = vcmp.lt.s32.totalorder %v1652_v25, 3  ;;  %vm1674_vm11 = vcmp.lt.s32.totalorder %v1652_v25, 4  ;;  %v4693_v33 = vadd.s32 4294967169, %v1540_v44 }
 0x155   : > { %v1670_v15 = vor.u32 %v1669_v48, %v1668_v34  ;;  %v1676_v56 = vsel %vm1674_vm11, %v1664_v7, 2102212464  ;;  %v1679_v38 = vsel %vm1671_vm9, %v1658_v55, %v1661_v37  ;;  %v1680_v18 = vsel %vm1674_vm11, %v1667_v49, 920167782 }
 0x156   : > { %vm920_vm13 = vcmp.lt.s32.totalorder %v5733_v1, 0  ;;  %v1393_v57 = vshll.u32 %v6201_v20, 30  ;;  %v1655_v39 = vshrl.u32 %v8966_v23, %v1654_v31  ;;  %vm1672_vm14 = vcmp.lt.s32.totalorder %v1652_v25, 2 }
 0x157   : > { %v1681_v26 = vsel %vm1673_vm10, %v1664_v7, %v1680_v18  ;;  %v1683_v16 = vsel %vm1671_vm9, %v1661_v37, %v1664_v7  ;;  %v1684_v36 = vsel %vm1674_vm11, %v1670_v15, 1326507024  ;;  %v1687_v22 = vshll.u32 %v1647_v35, 8 }
 0x158   : > { %v1682_v63 = vsel %vm1672_vm14, %v1679_v38, %v1681_v26  ;;  %v6215_v34 = vsel %vm4680_vm6, 0, %v4679_v43  ;;  %v1675_v9 = vsel %vm1671_vm9, %v1655_v39, %v1658_v55  ;;  %v1677_v44 = vsel %vm1673_vm10, %v1661_v37, %v1676_v56  ;;  %v376_v43 = vpop.permute.xlu1 %375 }
 0x159   : > { %v1685_v48 = vsel %vm1673_vm10, %v1667_v49, %v1684_v36  ;;  %v6221_v27 = vmul.u32.u64.low %v1687_v22, %v1682_v63  ;;  %v6222_v32 = vmul.u32.u64.high %v1687_v22, %v1682_v63, %v6221_v27  ;;  %v1546_v38 = vadd.s32 1, %v4693_v33 }
 0x15a   : > { %v1686_v31 = vsel %vm1672_vm14, %v1683_v16, %v1685_v48  ;;  %v1501_v18 = vclz %v4690_v0  ;;  %v6225_v7 = vsub.s32 %v1390_v5, %v1393_v57  ;;  %v8974_v55 = vxor.u32 2147483648, %v6162_v62 }
 0x15b   : > { %v6227_v35 = vmul.u32.u64.low %v1687_v22, %v1686_v31  ;;  %v6228_v15 = vmul.u32.u64.high %v1687_v22, %v1686_v31, %v6227_v35  ;;  %v1002_v49 = vxor.u32 2147483648, %v6182_v41  ;;  %v1678_v56 = vsel %vm1672_vm14, %v1675_v9, %v1677_v44 }
 0x15c   : > { %v6235_v37 = vsel %vm1023_vm5, %v8974_v55, %v6162_v62  ;;  %vm1547_vm15 = vcmp.gt.s32.totalorder %v1546_v38, 0  ;;  %v1307_v0 = vand.u32 2147483647, %v6198_v59  ;;  %v1309_v5 = vcvt.s32.f32 %v6184_v45 }
 0x15d   : > { %8975 = vst [vmem:[#allocation29_spill] sm:$0xff] %v6235_v37  ;;  %v1196_v33 = vsub.s32 32, %v6215_v34  ;;  %v1548_v57 = vsel %vm1547_vm15, %v1546_v38, 0  ;;  %v1697_v39 = vadd.s32 1, %v6222_v32  ;;  %v8976_v26 = vand.u32 2147483647, %v6107_v6 }
 0x15e   : > { %v1550_v16 = vand.u32 31, %v1548_v57  ;;  %v6246_v62 = vmul.f32 %v6029_v60, %v376_v43  ;;  %v4691_v36 = vadd.s32 4294967294, %v1501_v18  ;;  %v1396_v25 = vsub.s32 0, %v6225_v7 }
 0x15f   : > { %v1543_v63 = vand.u32 8388607, %v8976_v26  ;;  %v1694_v9 = vmul.u32 %v1687_v22, %v1678_v56  ;;  %vm1696_vm0 = vc.u32 %v6228_v15, %v6221_v27  ;;  %v6254_v45 = vsel %vm920_vm13, %v1002_v49, %v6182_v41 }
 0x160   : > { %8977 = vst [vmem:[#allocation30_spill] sm:$0xff] %v6246_v62  ;;  %8978 = vst [vmem:[#allocation31_spill] sm:$0xff] %v6254_v45  ;;  %v1180_v59 = vadd.s32 %v6016_v10, %v6024_v53  ;;  %v1698_v44 = vsel %vm1696_vm0, %v1697_v39, %v6222_v32  ;;  %v1551_v48 = vsub.s32 32, %v1550_v16  ;;  %v6259_v31 = vmul.f32 %v1309_v5, %v1307_v0 }
 0x161   : > { %v1200_v38 = vsub.s32 4294967266, %v6215_v34  ;;  %v1489_v22 = vadd.s32 %v6084_v58, %v6094_v52  ;;  %v1699_v18 = vadd.s32 %v1698_v44, %v1694_v9  ;;  %v1544_v43 = vor.u32 8388608, %v1543_v63 }
 0x162   : > { %v1198_v35 = vshrl.u32 %v1180_v59, %v1196_v33  ;;  %v1554_v55 = vshrl.u32 %v8963_v46, %v1551_v48  ;;  %v1557_v41 = vshrl.u32 %v8964_v8, %v1551_v48  ;;  %vm4692_vm2 = vcmp.lt.s32.totalorder %v4691_v36, 0 }
 0x163   : > { %v4686_v10 = vmin.u32 %v1396_v25, %v6225_v7  ;;  %v1700_v53 = vadd.s32 536870912, %v1699_v18  ;;  %v1848_v32 = vand.u32 2139095040, %v6246_v62  ;;  %v6268_v49 = vshrl.u32 %v1548_v57, 5 }
 0x164   : > { %v1553_v56 = vshll.u32 %v8966_v23, %v1550_v16  ;;  %v1556_v0 = vshll.u32 %v8963_v46, %v1550_v16  ;;  %v1560_v58 = vshrl.u32 %v8965_v19, %v1551_v48  ;;  %v1559_v5 = vshll.u32 %v8964_v8, %v1550_v16 }
 0x165   : > { %v6273_v52 = vshrl.u32 %v1700_v53, 30  ;;  %v1562_v33 = vshll.u32 %v8965_v19, %v1550_v16  ;;  %v1563_v39 = vshrl.u32 %v8958_v2, %v1551_v48  ;;  %v1565_v25 = vshll.u32 %v8958_v2, %v1550_v16 }
 0x166   : > { %v1555_v26 = vor.u32 %v1554_v55, %v1553_v56  ;;  %v1558_v63 = vor.u32 %v1557_v41, %v1556_v0  ;;  %v1566_v57 = vshrl.u32 %v8959_v11, %v1551_v48  ;;  %v1197_v9 = vshll.u32 %v6131_v51, %v6215_v34 }
 0x167   : > { %8979 = vst [vmem:[#allocation32_spill] sm:$0xff] %v6273_v52  ;;  %v1702_v59 = vshll.u32 %v6273_v52, 30  ;;  %v1561_v44 = vor.u32 %v1560_v58, %v1559_v5  ;;  %v1564_v53 = vor.u32 %v1563_v39, %v1562_v33  ;;  %v1201_v20 = vadd.s32 127, %v1200_v38 }
 0x168   : > { %v1398_v37 = vclz %v4686_v10  ;;  %v1567_v17 = vor.u32 %v1566_v57, %v1565_v25  ;;  %v1849_v45 = vshrl.u32 %v1848_v32, 23  ;;  %v6283_v1 = vor.u32 %v1198_v35, %v1197_v9 }
 0x169   : > { %v1504_v55 = vsel %vm4692_vm2, 0, %v4691_v36  ;;  %vm1568_vm3 = vcmp.lt.s32.totalorder %v6268_v49, 1  ;;  %vm1571_vm4 = vcmp.lt.s32.totalorder %v6268_v49, 4  ;;  %vm1570_vm6 = vcmp.lt.s32.totalorder %v6268_v49, 3 }
 0x16a   : > { %v1576_v51 = vsel %vm1568_vm3, %v1555_v26, %v1558_v63  ;;  %v1577_v34 = vsel %vm1571_vm4, %v1564_v53, 920167782  ;;  %v6291_v16 = vshll.u32 %v1544_v43, 8  ;;  %v6293_v38 = vsub.s32 %v1699_v18, %v1702_v59  ;;  %v371_v59 = vpop.permute.xlu0 %370 }
 0x16b   : > { %vm1569_vm9 = vcmp.lt.s32.totalorder %v6268_v49, 2  ;;  %v1578_v35 = vsel %vm1570_vm6, %v1561_v44, %v1577_v34  ;;  %v1580_v36 = vsel %vm1568_vm3, %v1558_v63, %v1561_v44  ;;  %v4687_v41 = vadd.s32 4294967294, %v1398_v37 }
 0x16c   : > { %v1579_v10 = vsel %vm1569_vm9, %v1576_v51, %v1578_v35  ;;  %v1581_v32 = vsel %vm1571_vm4, %v1567_v17, 1326507024  ;;  %v4705_v56 = vadd.s32 4294967169, %v1849_v45  ;;  %v1202_v0 = vshll.u32 %v1201_v20, 23 }
 0x16d   : > { %v1505_v58 = vsub.s32 32, %v1504_v55  ;;  %v1573_v43 = vsel %vm1571_vm4, %v1561_v44, 2102212464  ;;  %v1582_v18 = vsel %vm1570_vm6, %v1564_v53, %v1581_v32  ;;  %v1705_v25 = vsub.s32 0, %v6293_v38 }
 0x16e   : > { %v1583_v5 = vsel %vm1569_vm9, %v1580_v36, %v1582_v18  ;;  %v6307_v33 = vmul.u32.u64.low %v6291_v16, %v1579_v10  ;;  %v6308_v39 = vmul.u32.u64.high %v6291_v16, %v1579_v10, %v6307_v33  ;;  %v1855_v37 = vadd.s32 1, %v4705_v56 }
 0x16f   : > { %v1552_v17 = vshrl.u32 %v8966_v23, %v1551_v48  ;;  %v6314_v20 = vmul.u32.u64.low %v6291_v16, %v1583_v5  ;;  %v6315_v45 = vmul.u32.u64.high %v6291_v16, %v1583_v5, %v6314_v20  ;;  %v1509_v57 = vsub.s32 4294967266, %v1504_v55 }
 0x170   : > { %vm4688_vm10 = vcmp.lt.s32.totalorder %v4687_v41, 0  ;;  %v8829_v9 = vand.u32 2147483647, %v6246_v62  ;;  %vm1856_vm11 = vcmp.gt.s32.totalorder %v1855_v37, 0  ;;  %v1507_v44 = vshrl.u32 %v1489_v22, %v1505_v58 }
 0x171   : > { %v1572_v53 = vsel %vm1568_vm3, %v1552_v17, %v1555_v26  ;;  %v1574_v51 = vsel %vm1570_vm6, %v1558_v63, %v1573_v43  ;;  %v1857_v34 = vsel %vm1856_vm11, %v1855_v37, 0  ;;  %v6323_v35 = vor.u32 4788187, %v1202_v0 }
 0x172   : > { %v1859_v10 = vand.u32 31, %v1857_v34  ;;  %v1506_v32 = vshll.u32 %v6169_v21, %v1504_v55  ;;  %v6327_v56 = vsel %vm4688_vm10, 0, %v4687_v41  ;;  %v4698_v22 = vmin.u32 %v1705_v25, %v6293_v38 }
 0x173   : > { %v6331_v58 = vmul.f32 %v6029_v60, %v371_v59  ;;  %v1386_v26 = vadd.s32 %v6148_v30, %v6158_v14  ;;  %v1575_v63 = vsel %vm1569_vm9, %v1572_v53, %v1574_v51  ;;  %v1594_v0 = vadd.s32 1, %v6308_v39 }
 0x174   : > { %v1860_v43 = vsub.s32 32, %v1859_v10  ;;  %v6338_v18 = vor.u32 %v1507_v44, %v1506_v32  ;;  %v1510_v5 = vadd.s32 127, %v1509_v57  ;;  %vm1593_vm14 = vc.u32 %v6315_v45, %v6307_v33 }
 0x175   : > { %8980 = vst [vmem:[#allocation33_spill] sm:$0xff] %v6331_v58  ;;  %v1852_v21 = vand.u32 8388607, %v8829_v9  ;;  %v1402_v55 = vsub.s32 32, %v6327_v56  ;;  %v1406_v41 = vsub.s32 4294967266, %v6327_v56  ;;  %v1707_v49 = vclz %v4698_v22 }
 0x176   : > { %v1863_v30 = vshrl.u32 %v8963_v46, %v1860_v43  ;;  %v1866_v14 = vshrl.u32 %v8964_v8, %v1860_v43  ;;  %v1591_v37 = vmul.u32 %v6291_v16, %v1575_v63  ;;  %v1862_v25 = vshll.u32 %v8966_v23, %v1859_v10 }
 0x177   : > { %v1745_v17 = vand.u32 2139095040, %v6331_v58  ;;  %v1595_v20 = vsel %vm1593_vm14, %v1594_v0, %v6308_v39  ;;  %v1865_v57 = vshll.u32 %v8963_v46, %v1859_v10  ;;  %v1868_v59 = vshll.u32 %v8964_v8, %v1859_v10 }
 0x178   : > { %v1869_v44 = vshrl.u32 %v8965_v19, %v1860_v43  ;;  %v1858_v53 = vshrl.u32 %v1857_v34, 5  ;;  %v1864_v51 = vor.u32 %v1863_v30, %v1862_v25  ;;  %v1871_v32 = vshll.u32 %v8965_v19, %v1859_v10 }
 0x179   : > { %v1872_v22 = vshrl.u32 %v8958_v2, %v1860_v43  ;;  %v1867_v9 = vor.u32 %v1866_v14, %v1865_v57  ;;  %v1874_v63 = vshll.u32 %v8958_v2, %v1859_v10  ;;  %v1875_v36 = vshrl.u32 %v8959_v11, %v1860_v43 }
 0x17a   : > { %v1870_v16 = vor.u32 %v1869_v44, %v1868_v59  ;;  %v1511_v48 = vshll.u32 %v1510_v5, 23  ;;  %v6359_v39 = vadd.s32 %v1595_v20, %v1591_v37  ;;  %v1853_v0 = vor.u32 8388608, %v1852_v21 }
 0x17b   : > { %v1873_v52 = vor.u32 %v1872_v22, %v1871_v32  ;;  %v1404_v42 = vshrl.u32 %v1386_v26, %v1402_v55  ;;  %v1407_v47 = vadd.s32 127, %v1406_v41  ;;  %v1876_v29 = vor.u32 %v1875_v36, %v1874_v63 }
 0x17c   : > { %v1746_v34 = vshrl.u32 %v1745_v17, 23  ;;  %v4699_v30 = vadd.s32 4294967294, %v1707_v49  ;;  %v1861_v25 = vshrl.u32 %v8966_v23, %v1860_v43  ;;  %vm1877_vm15 = vcmp.lt.s32.totalorder %v1858_v53, 1 }
 0x17d   : > { %vm1880_vm0 = vcmp.lt.s32.totalorder %v1858_v53, 4  ;;  %vm1879_vm2 = vcmp.lt.s32.totalorder %v1858_v53, 3  ;;  %v1885_v57 = vsel %vm1877_vm15, %v1864_v51, %v1867_v9  ;;  %v1597_v59 = vadd.s32 536870912, %v6359_v39 }
 0x17e   : > { %v1882_v14 = vsel %vm1880_vm0, %v1870_v16, 2102212464  ;;  %v1886_v10 = vsel %vm1880_vm0, %v1873_v52, 920167782  ;;  %vm1878_vm3 = vcmp.lt.s32.totalorder %v1858_v53, 2  ;;  %v1889_v37 = vsel %vm1877_vm15, %v1867_v9, %v1870_v16 }
 0x17f   : > { %v1887_v5 = vsel %vm1879_vm2, %v1870_v16, %v1886_v10  ;;  %v1890_v26 = vsel %vm1880_vm0, %v1876_v29, 1326507024  ;;  %v1893_v55 = vshll.u32 %v1853_v0, 8  ;;  %v4701_v36 = vadd.s32 4294967169, %v1746_v34 }
 0x180   : > { %v1888_v21 = vsel %vm1878_vm3, %v1885_v57, %v1887_v5  ;;  %vm4700_vm4 = vcmp.lt.s32.totalorder %v4699_v30, 0  ;;  %v1881_v41 = vsel %vm1877_vm15, %v1861_v25, %v1864_v51  ;;  %v1883_v49 = vsel %vm1879_vm2, %v1867_v9, %v1882_v14  ;;  %v386_v57 = vpop.permute.xlu1 %385 }
 0x181   : > { %v1891_v43 = vsel %vm1879_vm2, %v1873_v52, %v1890_v26  ;;  %v6365_v20 = vmul.u32.u64.low %v1893_v55, %v1888_v21  ;;  %v6366_v44 = vmul.u32.u64.high %v1893_v55, %v1888_v21, %v6365_v20  ;;  %v1752_v32 = vadd.s32 1, %v4701_v36 }
 0x182   : > { %v1892_v17 = vsel %vm1878_vm3, %v1889_v37, %v1891_v43  ;;  %v1403_v22 = vshll.u32 %v6225_v7, %v6327_v56  ;;  %v6371_v16 = vshrl.u32 %v1597_v59, 30  ;;  %v6376_v0 = vor.u32 4788187, %v1511_v48 }
 0x183   : > { %v6373_v63 = vmul.u32.u64.low %v1893_v55, %v1892_v17  ;;  %v6374_v29 = vmul.u32.u64.high %v1893_v55, %v1892_v17, %v6373_v63  ;;  %v6378_v51 = vsel %vm4700_vm4, 0, %v4699_v30  ;;  %v1884_v52 = vsel %vm1878_vm3, %v1881_v41, %v1883_v49 }
 0x184   : > { %8981 = vst [vmem:[#allocation34_spill] sm:$0xff] %v6371_v16  ;;  %vm1753_vm6 = vcmp.gt.s32.totalorder %v1752_v32, 0  ;;  %v6382_v34 = vor.u32 %v1404_v42, %v1403_v22  ;;  %v1408_v25 = vshll.u32 %v1407_v47, 23  ;;  %v1903_v56 = vadd.s32 1, %v6366_v44 }
 0x185   : > { %v1754_v14 = vsel %vm1753_vm6, %v1752_v32, 0  ;;  %v8835_v10 = vand.u32 2147483647, %v6331_v58  ;;  %v1715_v30 = vsub.s32 4294967266, %v6378_v51  ;;  %v1599_v53 = vshll.u32 %v6371_v16, 30 }
 0x186   : > { %v1756_v48 = vand.u32 31, %v1754_v14  ;;  %v1900_v59 = vmul.u32 %v1893_v55, %v1884_v52  ;;  %vm1902_vm9 = vc.u32 %v6374_v29, %v6365_v20  ;;  %v6394_v37 = vmul.f32 %v6029_v60, %v386_v57 }
 0x187   : > { %v1904_v47 = vsel %vm1902_vm9, %v1903_v56, %v6366_v44  ;;  %v6396_v21 = vor.u32 4788187, %v1408_v25  ;;  %v1695_v36 = vadd.s32 %v6221_v27, %v6228_v15  ;;  %v1711_v55 = vsub.s32 32, %v6378_v51 }
 0x188   : > { %v1757_v5 = vsub.s32 32, %v1756_v48  ;;  %8982 = vst [vmem:[#allocation35_spill] sm:$0xff] %v6394_v37  ;;  %v1905_v41 = vadd.s32 %v1904_v47, %v1900_v59  ;;  %v1749_v49 = vand.u32 8388607, %v8835_v10  ;;  %v1716_v44 = vadd.s32 127, %v1715_v30 }
 0x189   : > { %v6407_v32 = vsub.s32 %v6359_v39, %v1599_v53  ;;  %v1759_v63 = vshll.u32 %v8966_v23, %v1756_v48  ;;  %v1762_v52 = vshll.u32 %v8963_v46, %v1756_v48  ;;  %v1765_v27 = vshll.u32 %v8964_v8, %v1756_v48 }
 0x18a   : > { %v1760_v43 = vshrl.u32 %v8963_v46, %v1757_v5  ;;  %v1763_v17 = vshrl.u32 %v8964_v8, %v1757_v5  ;;  %v1906_v22 = vadd.s32 536870912, %v1905_v41  ;;  %v1766_v15 = vshrl.u32 %v8965_v19, %v1757_v5 }
 0x18b   : > { %v2054_v25 = vand.u32 2139095040, %v6394_v37  ;;  %v1755_v57 = vshrl.u32 %v1754_v14, 5  ;;  %v1768_v59 = vshll.u32 %v8965_v19, %v1756_v48  ;;  %v1769_v30 = vshrl.u32 %v8958_v2, %v1757_v5 }
 0x18c   : > { %v1761_v56 = vor.u32 %v1760_v43, %v1759_v63  ;;  %v1764_v47 = vor.u32 %v1763_v17, %v1762_v52  ;;  %v1767_v39 = vor.u32 %v1766_v15, %v1765_v27  ;;  %v1771_v53 = vshll.u32 %v8958_v2, %v1756_v48 }
 0x18d   : > { %v1772_v10 = vshrl.u32 %v8959_v11, %v1757_v5  ;;  %vm8939_vm10 = vcmp.lt.s32.totalorder %v5777_v61, 0  ;;  %v1410_v26 = vand.u32 2147483647, %v6396_v21  ;;  %v6420_v7 = vshrl.u32 %v1906_v22, 30 }
 0x18e   : > { %v1750_v42 = vor.u32 8388608, %v1749_v49  ;;  %v1770_v9 = vor.u32 %v1769_v30, %v1768_v59  ;;  %v1713_v14 = vshrl.u32 %v1695_v36, %v1711_v55  ;;  %v1717_v43 = vshll.u32 %v1716_v44, 23 }
 0x18f   : > { %8983 = vst [vmem:[#allocation36_spill] sm:$0xff] %v6420_v7  ;;  %v1773_v63 = vor.u32 %v1772_v10, %v1771_v53  ;;  %v2055_v16 = vshrl.u32 %v2054_v25, 23  ;;  %v1602_v13 = vsub.s32 0, %v6407_v32  ;;  %v1758_v17 = vshrl.u32 %v8966_v23, %v1757_v5 }
 0x190   : > { %vm1774_vm11 = vcmp.lt.s32.totalorder %v1755_v57, 1  ;;  %vm1777_vm14 = vcmp.lt.s32.totalorder %v1755_v57, 4  ;;  %vm1776_vm15 = vcmp.lt.s32.totalorder %v1755_v57, 3  ;;  %v1908_v21 = vshll.u32 %v6420_v7, 30 }
 0x191   : > { %v1779_v48 = vsel %vm1777_vm14, %v1767_v39, 2102212464  ;;  %v1782_v52 = vsel %vm1774_vm11, %v1761_v56, %v1764_v47  ;;  %v1783_v27 = vsel %vm1777_vm14, %v1770_v9, 920167782  ;;  %vm1775_vm0 = vcmp.lt.s32.totalorder %v1755_v57, 2 }
 0x192   : > { %v1784_v22 = vsel %vm1776_vm15, %v1767_v39, %v1783_v27  ;;  %v1786_v49 = vsel %vm1774_vm11, %v1764_v47, %v1767_v39  ;;  %v1787_v55 = vsel %vm1777_vm14, %v1773_v63, 1326507024  ;;  %v1790_v10 = vshll.u32 %v1750_v42, 8 }
 0x193   : > { %v1785_v36 = vsel %vm1775_vm0, %v1782_v52, %v1784_v22  ;;  %v4713_v44 = vadd.s32 4294967169, %v2055_v16  ;;  %v4694_v15 = vmin.u32 %v1602_v13, %v6407_v32  ;;  %v1778_v25 = vsel %vm1774_vm11, %v1758_v17, %v1761_v56 }
 0x194   : > { %v1780_v5 = vsel %vm1776_vm15, %v1764_v47, %v1779_v48  ;;  %v1788_v59 = vsel %vm1776_vm15, %v1770_v9, %v1787_v55  ;;  %v6428_v53 = vmul.u32.u64.low %v1790_v10, %v1785_v36  ;;  %v6429_v50 = vmul.u32.u64.high %v1790_v10, %v1785_v36, %v6428_v53 }
 0x195   : > { %v1789_v30 = vsel %vm1775_vm0, %v1786_v49, %v1788_v59  ;;  %v2061_v7 = vadd.s32 1, %v4713_v44  ;;  %v1712_v39 = vshll.u32 %v6293_v38, %v6378_v51  ;;  %v6434_v27 = vsub.s32 %v1905_v41, %v1908_v21 }
 0x196   : > { %v6436_v63 = vmul.u32.u64.low %v1790_v10, %v1789_v30  ;;  %v6437_v42 = vmul.u32.u64.high %v1790_v10, %v1789_v30, %v6436_v63  ;;  %v8984_v13 = vxor.u32 2147483648, %v6259_v31  ;;  %v8986_v9 = vand.u32 2147483647, %v6323_v35  ;;  %v381_v35 = vpop.permute.xlu0 %380 }
 0x197   : > { %v8987_v56 = vcvt.s32.f32 %v6283_v1  ;;  %v1781_v38 = vsel %vm1775_vm0, %v1778_v25, %v1780_v5  ;;  %vm2062_vm2 = vcmp.gt.s32.totalorder %v2061_v7, 0  ;;  %v8988_v51 = vand.u32 2147483647, %v6376_v0 }
 0x198   : > { %v6444_v16 = vsel %vm8939_vm10, %v8984_v13, %v6259_v31  ;;  %v8989_v41 = vcvt.s32.f32 %v6338_v18  ;;  %v8990_v48 = vcvt.s32.f32 %v6382_v34  ;;  %v1714_v31 = vor.u32 %v1713_v14, %v1712_v39 }
 0x199   : > { %8985 = vst [vmem:[#allocation37_spill] sm:$0xff] %v6444_v16  ;;  %v6450_v47 = vmul.f32 %v8987_v56, %v8986_v9  ;;  %v2063_v21 = vsel %vm2062_vm2, %v2061_v7, 0  ;;  %v1718_v22 = vor.u32 4788187, %v1717_v43  ;;  %v1604_v1 = vclz %v4694_v15 }
 0x19a   : > { %v6457_v17 = vmul.f32 %v8989_v41, %v8988_v51  ;;  %v6461_v52 = vmul.f32 %v8990_v48, %v1410_v26  ;;  %v1800_v49 = vadd.s32 1, %v6429_v50  ;;  %v2065_v57 = vand.u32 31, %v2063_v21 }
 0x19b   : > { %v1911_v36 = vsub.s32 0, %v6434_v27  ;;  %v1797_v55 = vmul.u32 %v1790_v10, %v1781_v38  ;;  %vm1799_vm3 = vc.u32 %v6437_v42, %v6428_v53  ;;  %v8842_v18 = vand.u32 2147483647, %v6394_v37 }
 0x19c   : > { %v1208_v0 = vxor.u32 2147483648, %v6450_v47  ;;  %v1801_v34 = vsel %vm1799_vm3, %v1800_v49, %v6429_v50  ;;  %v2066_v26 = vsub.s32 32, %v2065_v57  ;;  %v6471_v7 = vmul.f32 %v6029_v60, %v381_v35 }
 0x19d   : > { %v1517_v14 = vxor.u32 2147483648, %v6457_v17  ;;  %v1414_v43 = vxor.u32 2147483648, %v6461_v52  ;;  %v1721_v44 = vcvt.s32.f32 %v1714_v31  ;;  %v1802_v15 = vadd.s32 %v1801_v34, %v1797_v55 }
 0x19e   : > { %8991 = vst [vmem:[#allocation38_spill] sm:$0xff] %v6471_v7  ;;  %v1719_v10 = vand.u32 2147483647, %v1718_v22  ;;  %v4695_v25 = vadd.s32 4294967294, %v1604_v1  ;;  %v2069_v5 = vshrl.u32 %v8963_v46, %v2066_v26  ;;  %v2072_v59 = vshrl.u32 %v8964_v8, %v2066_v26 }
 0x19f   : > { %v4706_v30 = vmin.u32 %v1911_v36, %v6434_v27  ;;  %v1803_v39 = vadd.s32 536870912, %v1802_v15  ;;  %v2058_v50 = vand.u32 8388607, %v8842_v18  ;;  %v2068_v60 = vshll.u32 %v8966_v23, %v2065_v57 }
 0x1a0   : > { %v2071_v63 = vshll.u32 %v8963_v46, %v2065_v57  ;;  %v2074_v13 = vshll.u32 %v8964_v8, %v2065_v57  ;;  %v2075_v9 = vshrl.u32 %v8965_v19, %v2066_v26  ;;  %v1951_v56 = vand.u32 2139095040, %v6471_v7 }
 0x1a1   : > { %v2064_v38 = vshrl.u32 %v2063_v21, 5  ;;  %v2070_v51 = vor.u32 %v2069_v5, %v2068_v60  ;;  %v2077_v41 = vshll.u32 %v8965_v19, %v2065_v57  ;;  %v2078_v48 = vshrl.u32 %v8958_v2, %v2066_v26 }
 0x1a2   : > { %vm1126_vm4 = vcmp.lt.s32.totalorder %v5896_v3, 0  ;;  %v2073_v31 = vor.u32 %v2072_v59, %v2071_v63  ;;  %v2076_v35 = vor.u32 %v2075_v9, %v2074_v13  ;;  %v2080_v22 = vshll.u32 %v8958_v2, %v2065_v57 }
 0x1a3   : > { %v2081_v1 = vshrl.u32 %v8959_v11, %v2066_v26  ;;  %vm8895_vm6 = vcmp.lt.s32.totalorder %v5939_v24, 0  ;;  %v1722_v49 = vmul.f32 %v1721_v44, %v1719_v10  ;;  %v6491_v36 = vshrl.u32 %v1803_v39, 30 }
 0x1a4   : > { %v2079_v55 = vor.u32 %v2078_v48, %v2077_v41  ;;  %vm8896_vm9 = vcmp.lt.s32.totalorder %v6032_v12, 0  ;;  %vm4696_vm11 = vcmp.lt.s32.totalorder %v4695_v25, 0  ;;  %v2059_v34 = vor.u32 8388608, %v2058_v50 }
 0x1a5   : > { %8992 = vst [vmem:[#allocation39_spill] sm:$0xff] %v6491_v36  ;;  %v2082_v5 = vor.u32 %v2081_v1, %v2080_v22  ;;  %v1952_v60 = vshrl.u32 %v1951_v56, 23  ;;  %v1913_v59 = vclz %v4706_v30  ;;  %v2067_v63 = vshrl.u32 %v8966_v23, %v2066_v26 }
 0x1a6   : > { %vm2083_vm14 = vcmp.lt.s32.totalorder %v2064_v38, 1  ;;  %vm2086_vm15 = vcmp.lt.s32.totalorder %v2064_v38, 4  ;;  %vm2085_vm0 = vcmp.lt.s32.totalorder %v2064_v38, 3  ;;  %v1805_v39 = vshll.u32 %v6491_v36, 30 }
 0x1a7   : > { %v2088_v57 = vsel %vm2086_vm15, %v2076_v35, 2102212464  ;;  %v2091_v44 = vsel %vm2083_vm14, %v2070_v51, %v2073_v31  ;;  %v2092_v10 = vsel %vm2086_vm15, %v2079_v55, 920167782  ;;  %vm2084_vm2 = vcmp.lt.s32.totalorder %v2064_v38, 2 }
 0x1a8   : > { %v2093_v13 = vsel %vm2085_vm0, %v2076_v35, %v2092_v10  ;;  %v2095_v9 = vsel %vm2083_vm14, %v2073_v31, %v2076_v35  ;;  %vm8857_vm3 = vcmp.lt.s32.totalorder %v6098_v4, 0  ;;  %v2096_v50 = vsel %vm2086_vm15, %v2082_v5, 1326507024 }
 0x1a9   : > { %v2094_v30 = vsel %vm2084_vm2, %v2091_v44, %v2093_v13  ;;  %v2099_v26 = vshll.u32 %v2059_v34, 8  ;;  %v4709_v56 = vadd.s32 4294967169, %v1952_v60  ;;  %v6503_v41 = vsel %vm4696_vm11, 0, %v4695_v25 }
 0x1aa   : > { %v2087_v48 = vsel %vm2083_vm14, %v2067_v63, %v2070_v51  ;;  %v2089_v22 = vsel %vm2085_vm0, %v2073_v31, %v2088_v57  ;;  %v2097_v1 = vsel %vm2085_vm0, %v2079_v55, %v2096_v50  ;;  %v6518_v25 = vsel %vm1126_vm4, %v1208_v0, %v6450_v47  ;;  %v396_v57 = vpop.permute.xlu1 %395 }
 0x1ab   : > { %v2098_v10 = vsel %vm2084_vm2, %v2095_v9, %v2097_v1  ;;  %v6509_v18 = vmul.u32.u64.low %v2099_v26, %v2094_v30  ;;  %v6510_v35 = vmul.u32.u64.high %v2099_v26, %v2094_v30, %v6509_v18  ;;  %v1958_v21 = vadd.s32 1, %v4709_v56  ;;  %v6554_v9 = vld [vmem:[%s8776_s2] ss:$0 sm:$0xff] }
 0x1ac   : > { %v6520_v34 = vsub.s32 %v1802_v15, %v1805_v39  ;;  %v6522_v51 = vmul.u32.u64.low %v2099_v26, %v2098_v10  ;;  %v6523_v31 = vmul.u32.u64.high %v2099_v26, %v2098_v10, %v6522_v51  ;;  %v6530_v55 = vsel %vm8895_vm6, %v1517_v14, %v6457_v17 }
 0x1ad   : > { %8993 = vst [vmem:[#allocation40_spill] sm:$0xff] %v6530_v55  ;;  %v4707_v5 = vadd.s32 4294967294, %v1913_v59  ;;  %v2090_v60 = vsel %vm2084_vm2, %v2087_v48, %v2089_v22  ;;  %vm1959_vm11 = vcmp.gt.s32.totalorder %v1958_v21, 0  ;;  %v6538_v47 = vsel %vm8896_vm9, %v1414_v43, %v6461_v52 }
 0x1ae   : > { %8994 = vst [vmem:[#allocation41_spill] sm:$0xff] %v6538_v47  ;;  %v1723_v0 = vxor.u32 2147483648, %v1722_v49  ;;  %v1608_v15 = vsub.s32 32, %v6503_v41  ;;  %v1960_v63 = vsel %vm1959_vm11, %v1958_v21, 0  ;;  %v1612_v44 = vsub.s32 4294967266, %v6503_v41 }
 0x1af   : > { %v2109_v17 = vadd.s32 1, %v6510_v35  ;;  %v8995_v14 = vand.u32 2147483647, %v6471_v7  ;;  %v1962_v59 = vand.u32 31, %v1960_v63  ;;  %v1592_v39 = vadd.s32 %v6307_v33, %v6315_v45 }
 0x1b0   : > { %v1808_v13 = vsub.s32 0, %v6520_v34  ;;  %v2106_v52 = vmul.u32 %v2099_v26, %v2090_v60  ;;  %vm2108_vm14 = vc.u32 %v6523_v31, %v6509_v18  ;;  %vm4708_vm15 = vcmp.lt.s32.totalorder %v4707_v5, 0 }
 0x1b1   : > { %v1955_v38 = vand.u32 8388607, %v8995_v14  ;;  %v2110_v43 = vsel %vm2108_vm14, %v2109_v17, %v6510_v35  ;;  %v1963_v21 = vsub.s32 32, %v1962_v59  ;;  %v6557_v30 = vmul.f32 %v6554_v9, %v396_v57 }
 0x1b2   : > { %v6561_v33 = vsel %vm8857_vm3, %v1723_v0, %v1722_v49  ;;  %v1609_v45 = vshll.u32 %v6407_v32, %v6503_v41  ;;  %v1610_v50 = vshrl.u32 %v1592_v39, %v1608_v15  ;;  %v2111_v26 = vadd.s32 %v2110_v43, %v2106_v52 }
 0x1b3   : > { %8996 = vst [vmem:[#allocation42_spill] sm:$0xff] %v6557_v30  ;;  %8997 = vst [vmem:[#allocation43_spill] sm:$0xff] %v6561_v33  ;;  %v1613_v56 = vadd.s32 127, %v1612_v44  ;;  %v1956_v48 = vor.u32 8388608, %v1955_v38  ;;  %v1966_v22 = vshrl.u32 %v8963_v46, %v1963_v21  ;;  %v1969_v1 = vshrl.u32 %v8964_v8, %v1963_v21 }
 0x1b4   : > { %v6567_v10 = vsel %vm4708_vm15, 0, %v4707_v5  ;;  %v4702_v35 = vmin.u32 %v1808_v13, %v6520_v34  ;;  %v2112_v51 = vadd.s32 536870912, %v2111_v26  ;;  %v1965_v60 = vshll.u32 %v8966_v23, %v1962_v59 }
 0x1b5   : > { %v1968_v49 = vshll.u32 %v8963_v46, %v1962_v59  ;;  %v1971_v0 = vshll.u32 %v8964_v8, %v1962_v59  ;;  %v1972_v32 = vshrl.u32 %v8965_v19, %v1963_v21  ;;  %v2260_v41 = vand.u32 2139095040, %v6557_v30 }
 0x1b6   : > { %v1961_v15 = vshrl.u32 %v1960_v63, 5  ;;  %v1967_v57 = vor.u32 %v1966_v22, %v1965_v60  ;;  %v1974_v44 = vshll.u32 %v8965_v19, %v1962_v59  ;;  %v1975_v5 = vshrl.u32 %v8958_v2, %v1963_v21 }
 0x1b7   : > { %v1970_v17 = vor.u32 %v1969_v1, %v1968_v49  ;;  %v1973_v14 = vor.u32 %v1972_v32, %v1971_v0  ;;  %v1977_v38 = vshll.u32 %v8958_v2, %v1962_v59  ;;  %v1978_v39 = vshrl.u32 %v8959_v11, %v1963_v21 }
 0x1b8   : > { %v1614_v13 = vshll.u32 %v1613_v56, 23  ;;  %v1917_v52 = vsub.s32 32, %v6567_v10  ;;  %v6580_v43 = vshrl.u32 %v2112_v51, 30  ;;  %v1976_v36 = vor.u32 %v1975_v5, %v1974_v44 }
 0x1b9   : > { %v1921_v33 = vsub.s32 4294967266, %v6567_v10  ;;  %v1810_v63 = vclz %v4702_v35  ;;  %v1979_v22 = vor.u32 %v1978_v39, %v1977_v38  ;;  %v2261_v60 = vshrl.u32 %v2260_v41, 23 }
 0x1ba   : > { %8998 = vst [vmem:[#allocation44_spill] sm:$0xff] %v6580_v43  ;;  %v1964_v4 = vshrl.u32 %v8966_v23, %v1963_v21  ;;  %vm1980_vm0 = vcmp.lt.s32.totalorder %v1961_v15, 1  ;;  %vm1983_vm2 = vcmp.lt.s32.totalorder %v1961_v15, 4  ;;  %v1996_v1 = vshll.u32 %v1956_v48, 8 }
 0x1bb   : > { %vm1982_vm11 = vcmp.lt.s32.totalorder %v1961_v15, 3  ;;  %v1985_v59 = vsel %vm1983_vm2, %v1973_v14, 2102212464  ;;  %v1988_v49 = vsel %vm1980_vm0, %v1967_v57, %v1970_v17  ;;  %v1989_v0 = vsel %vm1983_vm2, %v1976_v36, 920167782 }
 0x1bc   : > { %v2114_v56 = vshll.u32 %v6580_v43, 30  ;;  %vm1981_vm14 = vcmp.lt.s32.totalorder %v1961_v15, 2  ;;  %v1990_v51 = vsel %vm1982_vm11, %v1973_v14, %v1989_v0  ;;  %v1992_v32 = vsel %vm1980_vm0, %v1970_v17, %v1973_v14  ;;  %v391_v0 = vpop.permute.xlu0 %390 }
 0x1bd   : > { %v4703_v44 = vadd.s32 4294967294, %v1810_v63  ;;  %v1991_v5 = vsel %vm1981_vm14, %v1988_v49, %v1990_v51  ;;  %v1993_v35 = vsel %vm1983_vm2, %v1979_v22, 1326507024  ;;  %v4721_v38 = vadd.s32 4294967169, %v2261_v60 }
 0x1be   : > { %v1984_v41 = vsel %vm1980_vm0, %v1964_v4, %v1967_v57  ;;  %v1986_v39 = vsel %vm1982_vm11, %v1970_v17, %v1985_v59  ;;  %v1994_v21 = vsel %vm1982_vm11, %v1976_v36, %v1993_v35  ;;  %v8851_v55 = vand.u32 2147483647, %v6557_v30 }
 0x1bf   : > { %v1995_v48 = vsel %vm1981_vm14, %v1992_v32, %v1994_v21  ;;  %v6588_v24 = vmul.u32.u64.low %v1996_v1, %v1991_v5  ;;  %v6589_v47 = vmul.u32.u64.high %v1996_v1, %v1991_v5, %v6588_v24  ;;  %v2267_v43 = vadd.s32 1, %v4721_v38 }
 0x1c0   : > { %v1901_v14 = vadd.s32 %v6365_v20, %v6374_v29  ;;  %v6594_v63 = vsub.s32 %v2111_v26, %v2114_v56  ;;  %v6596_v49 = vmul.u32.u64.low %v1996_v1, %v1995_v48  ;;  %v6597_v22 = vmul.u32.u64.high %v1996_v1, %v1995_v48, %v6596_v49 }
 0x1c1   : > { %v6599_v4 = vor.u32 %v1610_v50, %v1609_v45  ;;  %vm4704_vm15 = vcmp.lt.s32.totalorder %v4703_v44, 0  ;;  %v1987_v36 = vsel %vm1981_vm14, %v1984_v41, %v1986_v39  ;;  %vm2268_vm0 = vcmp.gt.s32.totalorder %v2267_v43, 0 }
 0x1c2   : > { %v6602_v57 = vor.u32 4788187, %v1614_v13  ;;  %v1918_v17 = vshll.u32 %v6434_v27, %v6567_v10  ;;  %v1919_v60 = vshrl.u32 %v1901_v14, %v1917_v52  ;;  %v2269_v59 = vsel %vm2268_vm0, %v2267_v43, 0 }
 0x1c3   : > { %v1922_v20 = vadd.s32 127, %v1921_v33  ;;  %v2006_v29 = vadd.s32 1, %v6589_v47  ;;  %v2264_v26 = vand.u32 8388607, %v8851_v55  ;;  %v2271_v45 = vand.u32 31, %v2269_v59 }
 0x1c4   : > { %v6609_v50 = vsel %vm4704_vm15, 0, %v4703_v44  ;;  %v2117_v15 = vsub.s32 0, %v6594_v63  ;;  %v2003_v56 = vmul.u32 %v1996_v1, %v1987_v36  ;;  %vm2005_vm2 = vc.u32 %v6597_v22, %v6588_v24 }
 0x1c5   : > { %v2007_v10 = vsel %vm2005_vm2, %v2006_v29, %v6589_v47  ;;  %v2272_v13 = vsub.s32 32, %v2271_v45  ;;  %v6617_v33 = vmul.f32 %v6554_v9, %v391_v0  ;;  %v6620_v43 = vor.u32 %v1919_v60, %v1918_v17 }
 0x1c6   : > { %v1798_v51 = vadd.s32 %v6428_v53, %v6437_v42  ;;  %v2008_v32 = vadd.s32 %v2007_v10, %v2003_v56  ;;  %v1923_v1 = vshll.u32 %v1922_v20, 23  ;;  %v1814_v44 = vsub.s32 32, %v6609_v50 }
 0x1c7   : > { %8999 = vst [vmem:[#allocation45_spill] sm:$0xff] %v6617_v33  ;;  %v2275_v5 = vshrl.u32 %v8963_v46, %v2272_v13  ;;  %v2278_v35 = vshrl.u32 %v8964_v8, %v2272_v13  ;;  %v4714_v47 = vmin.u32 %v2117_v15, %v6594_v63  ;;  %v2265_v41 = vor.u32 8388608, %v2264_v26 }
 0x1c8   : > { %v2009_v38 = vadd.s32 536870912, %v2008_v32  ;;  %v2274_v39 = vshll.u32 %v8966_v23, %v2271_v45  ;;  %v2277_v21 = vshll.u32 %v8963_v46, %v2271_v45  ;;  %v2280_v48 = vshll.u32 %v8964_v8, %v2271_v45 }
 0x1c9   : > { %v2281_v53 = vshrl.u32 %v8965_v19, %v2272_v13  ;;  %v2157_v42 = vand.u32 2139095040, %v6617_v33  ;;  %v2270_v14 = vshrl.u32 %v2269_v59, 5  ;;  %v2283_v36 = vshll.u32 %v8965_v19, %v2271_v45 }
 0x1ca   : > { %v2276_v49 = vor.u32 %v2275_v5, %v2274_v39  ;;  %v2284_v17 = vshrl.u32 %v8958_v2, %v2272_v13  ;;  %v2279_v60 = vor.u32 %v2278_v35, %v2277_v21  ;;  %v2286_v20 = vshll.u32 %v8958_v2, %v2271_v45 }
 0x1cb   : > { %v2282_v0 = vor.u32 %v2281_v53, %v2280_v48  ;;  %v2287_v29 = vshrl.u32 %v8959_v11, %v2272_v13  ;;  %v1924_v26 = vor.u32 4788187, %v1923_v1  ;;  %v1818_v15 = vsub.s32 4294967266, %v6609_v50 }
 0x1cc   : > { %v6638_v56 = vshrl.u32 %v2009_v38, 30  ;;  %v2285_v10 = vor.u32 %v2284_v17, %v2283_v36  ;;  %v1816_v55 = vshrl.u32 %v1798_v51, %v1814_v44  ;;  %v2119_v27 = vclz %v4714_v47 }
 0x1cd   : > { %v2288_v59 = vor.u32 %v2287_v29, %v2286_v20  ;;  %v2158_v5 = vshrl.u32 %v2157_v42, 23  ;;  %v2273_v39 = vshrl.u32 %v8966_v23, %v2272_v13  ;;  %vm2289_vm11 = vcmp.lt.s32.totalorder %v2270_v14, 1 }
 0x1ce   : > { %9000 = vst [vmem:[#allocation46_spill] sm:$0xff] %v6638_v56  ;;  %vm2292_vm14 = vcmp.lt.s32.totalorder %v2270_v14, 4  ;;  %v2305_v35 = vshll.u32 %v2265_v41, 8  ;;  %vm2291_vm15 = vcmp.lt.s32.totalorder %v2270_v14, 3  ;;  %v2297_v45 = vsel %vm2289_vm11, %v2276_v49, %v2279_v60 }
 0x1cf   : > { %v2294_v21 = vsel %vm2292_vm14, %v2282_v0, 2102212464  ;;  %v2298_v48 = vsel %vm2292_vm14, %v2285_v10, 920167782  ;;  %v2011_v1 = vshll.u32 %v6638_v56, 30  ;;  %vm2290_vm0 = vcmp.lt.s32.totalorder %v2270_v14, 2 }
 0x1d0   : > { %v2299_v38 = vsel %vm2291_vm15, %v2282_v0, %v2298_v48  ;;  %v2301_v53 = vsel %vm2289_vm11, %v2279_v60, %v2282_v0  ;;  %v4715_v51 = vadd.s32 4294967294, %v2119_v27  ;;  %v2302_v47 = vsel %vm2292_vm14, %v2288_v59, 1326507024 }
 0x1d1   : > { %v2300_v44 = vsel %vm2290_vm0, %v2297_v45, %v2299_v38  ;;  %v4717_v42 = vadd.s32 4294967169, %v2158_v5  ;;  %v1819_v13 = vadd.s32 127, %v1818_v15  ;;  %v2293_v36 = vsel %vm2289_vm11, %v2273_v39, %v2276_v49 }
 0x1d2   : > { %v2295_v41 = vsel %vm2291_vm15, %v2279_v60, %v2294_v21  ;;  %v2303_v17 = vsel %vm2291_vm15, %v2285_v10, %v2302_v47  ;;  %v6647_v29 = vmul.u32.u64.low %v2305_v35, %v2300_v44  ;;  %v6648_v52 = vmul.u32.u64.high %v2305_v35, %v2300_v44, %v6647_v29 }
 0x1d3   : > { %v2304_v20 = vsel %vm2290_vm0, %v2301_v53, %v2303_v17  ;;  %v2164_v56 = vadd.s32 1, %v4717_v42  ;;  %v1815_v0 = vshll.u32 %v6520_v34, %v6609_v50  ;;  %v6653_v27 = vsub.s32 %v2008_v32, %v2011_v1  ;;  %v406_v50 = vpop.permute.xlu1 %405 }
 0x1d4   : > { %v6655_v45 = vmul.u32.u64.low %v2305_v35, %v2304_v20  ;;  %v6656_v59 = vmul.u32.u64.high %v2305_v35, %v2304_v20, %v6655_v45  ;;  %v1925_v15 = vand.u32 2147483647, %v1924_v26  ;;  %vm4716_vm2 = vcmp.lt.s32.totalorder %v4715_v51, 0 }
 0x1d5   : > { %v2296_v49 = vsel %vm2290_vm0, %v2293_v36, %v2295_v41  ;;  %vm2165_vm11 = vcmp.gt.s32.totalorder %v2164_v56, 0  ;;  %v9001_v60 = vand.u32 2147483647, %v6602_v57  ;;  %v9002_v10 = vcvt.s32.f32 %v6599_v4 }
 0x1d6   : > { %v6665_v39 = vor.u32 %v1816_v55, %v1815_v0  ;;  %v1820_v21 = vshll.u32 %v1819_v13, 23  ;;  %v2166_v34 = vsel %vm2165_vm11, %v2164_v56, 0  ;;  %v1927_v32 = vcvt.s32.f32 %v6620_v43 }
 0x1d7   : > { %v6663_v5 = vmul.f32 %v9002_v10, %v9001_v60  ;;  %v2315_v48 = vadd.s32 1, %v6648_v52  ;;  %v8854_v26 = vand.u32 2147483647, %v6617_v33  ;;  %v2168_v14 = vand.u32 31, %v2166_v34 }
 0x1d8   : > { %v6670_v1 = vsel %vm4716_vm2, 0, %v4715_v51  ;;  %v2014_v57 = vsub.s32 0, %v6653_v27  ;;  %v2312_v38 = vmul.u32 %v2305_v35, %v2296_v49  ;;  %vm2314_vm14 = vc.u32 %v6656_v59, %v6647_v29 }
 0x1d9   : > { %v6675_v55 = vmul.f32 %v1927_v32, %v1925_v15  ;;  %v2316_v4 = vsel %vm2314_vm14, %v2315_v48, %v6648_v52  ;;  %v2169_v56 = vsub.s32 32, %v2168_v14  ;;  %v6679_v43 = vmul.f32 %v6554_v9, %v406_v50 }
 0x1da   : > { %v6681_v53 = vor.u32 4788187, %v1820_v21  ;;  %v2107_v51 = vadd.s32 %v6509_v18, %v6523_v31  ;;  %v2317_v47 = vadd.s32 %v2316_v4, %v2312_v38  ;;  %v2123_v35 = vsub.s32 32, %v6670_v1 }
 0x1db   : > { %9003 = vst [vmem:[#allocation47_spill] sm:$0xff] %v6679_v43  ;;  %v2161_v42 = vand.u32 8388607, %v8854_v26  ;;  %v2172_v13 = vshrl.u32 %v8963_v46, %v2169_v56  ;;  %v2175_v52 = vshrl.u32 %v8964_v8, %v2169_v56  ;;  %v2127_v36 = vsub.s32 4294967266, %v6670_v1 }
 0x1dc   : > { %v4710_v41 = vmin.u32 %v2014_v57, %v6653_v27  ;;  %v2318_v17 = vadd.s32 536870912, %v2317_v47  ;;  %v2171_v20 = vshll.u32 %v8966_v23, %v2168_v14  ;;  %v2174_v0 = vshll.u32 %v8963_v46, %v2168_v14 }
 0x1dd   : > { %v2177_v18 = vshll.u32 %v8964_v8, %v2168_v14  ;;  %v2178_v31 = vshrl.u32 %v8965_v19, %v2169_v56  ;;  %v2466_v45 = vand.u32 2139095040, %v6679_v43  ;;  %v2167_v15 = vshrl.u32 %v2166_v34, 5 }
 0x1de   : > { %v2173_v49 = vor.u32 %v2172_v13, %v2171_v20  ;;  %v2180_v60 = vshll.u32 %v8965_v19, %v2168_v14  ;;  %v2181_v10 = vshrl.u32 %v8958_v2, %v2169_v56  ;;  %v2176_v21 = vor.u32 %v2175_v52, %v2174_v0 }
 0x1df   : > { %v2179_v50 = vor.u32 %v2178_v31, %v2177_v18  ;;  %v2183_v32 = vshll.u32 %v8958_v2, %v2168_v14  ;;  %v2184_v48 = vshrl.u32 %v8959_v11, %v2169_v56  ;;  %v1822_v57 = vand.u32 2147483647, %v6681_v53 }
 0x1e0   : > { %v6703_v38 = vshrl.u32 %v2318_v17, 30  ;;  %v2162_v4 = vor.u32 8388608, %v2161_v42  ;;  %v2182_v26 = vor.u32 %v2181_v10, %v2180_v60  ;;  %v2125_v44 = vshrl.u32 %v2107_v51, %v2123_v35 }
 0x1e1   : > { %v2128_v12 = vadd.s32 127, %v2127_v36  ;;  %v2185_v34 = vor.u32 %v2184_v48, %v2183_v32  ;;  %v2467_v13 = vshrl.u32 %v2466_v45, 23  ;;  %v2016_v20 = vclz %v4710_v41 }
 0x1e2   : > { %9004 = vst [vmem:[#allocation48_spill] sm:$0xff] %v6703_v38  ;;  %v2170_v16 = vshrl.u32 %v8966_v23, %v2169_v56  ;;  %vm2186_vm15 = vcmp.lt.s32.totalorder %v2167_v15, 1  ;;  %vm2189_vm0 = vcmp.lt.s32.totalorder %v2167_v15, 4  ;;  %vm2188_vm2 = vcmp.lt.s32.totalorder %v2167_v15, 3 }
 0x1e3   : > { %v2191_v52 = vsel %vm2189_vm0, %v2179_v50, 2102212464  ;;  %v2194_v14 = vsel %vm2186_vm15, %v2173_v49, %v2176_v21  ;;  %v2195_v0 = vsel %vm2189_vm0, %v2182_v26, 920167782  ;;  %vm8878_vm11 = vcmp.lt.s32.totalorder %v6107_v6, 0 }
 0x1e4   : > { %v2320_v53 = vshll.u32 %v6703_v38, 30  ;;  %vm2187_vm14 = vcmp.lt.s32.totalorder %v2167_v15, 2  ;;  %v2196_v51 = vsel %vm2188_vm2, %v2179_v50, %v2195_v0  ;;  %v2198_v35 = vsel %vm2186_vm15, %v2176_v21, %v2179_v50  ;;  %v401_v0 = vpop.permute.xlu0 %400 }
 0x1e5   : > { %vm8859_vm3 = vcmp.lt.s32.totalorder %v6246_v62, 0  ;;  %v2197_v56 = vsel %vm2187_vm14, %v2194_v14, %v2196_v51  ;;  %v2199_v42 = vsel %vm2189_vm0, %v2185_v34, 1326507024  ;;  %v2202_v36 = vshll.u32 %v2162_v4, 8 }
 0x1e6   : > { %v4729_v41 = vadd.s32 4294967169, %v2467_v13  ;;  %v4711_v17 = vadd.s32 4294967294, %v2016_v20  ;;  %v2190_v18 = vsel %vm2186_vm15, %v2170_v16, %v2173_v49  ;;  %v2192_v31 = vsel %vm2188_vm2, %v2176_v21, %v2191_v52 }
 0x1e7   : > { %v2200_v45 = vsel %vm2188_vm2, %v2182_v26, %v2199_v42  ;;  %v6717_v10 = vmul.u32.u64.low %v2202_v36, %v2197_v56  ;;  %v6718_v32 = vmul.u32.u64.high %v2202_v36, %v2197_v56, %v6717_v10  ;;  %v6721_v48 = vsub.s32 %v2317_v47, %v2320_v53 }
 0x1e8   : > { %v2201_v60 = vsel %vm2187_vm14, %v2198_v35, %v2200_v45  ;;  %v2473_v50 = vadd.s32 1, %v4729_v41  ;;  %v8858_v4 = vand.u32 2147483647, %v6679_v43  ;;  %v1620_v16 = vxor.u32 2147483648, %v6663_v5 }
 0x1e9   : > { %v6723_v14 = vmul.u32.u64.low %v2202_v36, %v2201_v60  ;;  %v6724_v34 = vmul.u32.u64.high %v2202_v36, %v2201_v60, %v6723_v14  ;;  %v2124_v49 = vshll.u32 %v6594_v63, %v6670_v1  ;;  %v2193_v26 = vsel %vm2187_vm14, %v2190_v18, %v2192_v31 }
 0x1ea   : > { %vm2474_vm15 = vcmp.gt.s32.totalorder %v2473_v50, 0  ;;  %v1929_v21 = vxor.u32 2147483648, %v6675_v55  ;;  %v9005_v13 = vcvt.s32.f32 %v6665_v39  ;;  %v2129_v47 = vshll.u32 %v2128_v12, 23 }
 0x1eb   : > { %v2475_v52 = vsel %vm2474_vm15, %v2473_v50, 0  ;;  %v6736_v53 = vor.u32 %v2125_v44, %v2124_v49  ;;  %vm4712_vm0 = vcmp.lt.s32.totalorder %v4711_v17, 0  ;;  %v2212_v51 = vadd.s32 1, %v6718_v32 }
 0x1ec   : > { %v6734_v20 = vmul.f32 %v9005_v13, %v1822_v57  ;;  %v2477_v35 = vand.u32 31, %v2475_v52  ;;  %v2323_v63 = vsub.s32 0, %v6721_v48  ;;  %v2209_v1 = vmul.u32 %v2202_v36, %v2193_v26 }
 0x1ed   : > { %vm2211_vm2 = vc.u32 %v6724_v34, %v6717_v10  ;;  %v2470_v39 = vand.u32 8388607, %v8858_v4  ;;  %v6747_v12 = vsel %vm8878_vm11, %v1620_v16, %v6663_v5  ;;  %v6751_v57 = vmul.f32 %v6554_v9, %v401_v0 }
 0x1ee   : > { %9006 = vst [vmem:[#allocation49_spill] sm:$0xff] %v6747_v12  ;;  %v2213_v44 = vsel %vm2211_vm2, %v2212_v51, %v6718_v32  ;;  %v2478_v15 = vsub.s32 32, %v2477_v35  ;;  %v6756_v56 = vsel %vm8859_vm3, %v1929_v21, %v6675_v55  ;;  %v2130_v36 = vor.u32 4788187, %v2129_v47 }
 0x1ef   : > { %9007 = vst [vmem:[#allocation50_spill] sm:$0xff] %v6751_v57  ;;  %9008 = vst [vmem:[#allocation51_spill] sm:$0xff] %v6756_v56  ;;  %v2214_v41 = vadd.s32 %v2213_v44, %v2209_v1  ;;  %v2133_v18 = vcvt.s32.f32 %v6736_v53  ;;  %v6761_v5 = vsel %vm4712_vm0, 0, %v4711_v17  ;;  %v4722_v60 = vmin.u32 %v2323_v63, %v6721_v48 }
 0x1f0   : > { %v2481_v31 = vshrl.u32 %v8963_v46, %v2478_v15  ;;  %v2484_v45 = vshrl.u32 %v8964_v8, %v2478_v15  ;;  %v2471_v50 = vor.u32 8388608, %v2470_v39  ;;  %v2480_v55 = vshll.u32 %v8966_v23, %v2477_v35 }
 0x1f1   : > { %v2215_v32 = vadd.s32 536870912, %v2214_v41  ;;  %v2483_v14 = vshll.u32 %v8963_v46, %v2477_v35  ;;  %v2486_v16 = vshll.u32 %v8964_v8, %v2477_v35  ;;  %v2487_v49 = vshrl.u32 %v8965_v19, %v2478_v15 }
 0x1f2   : > { %v2363_v26 = vand.u32 2139095040, %v6751_v57  ;;  %v2476_v17 = vshrl.u32 %v2475_v52, 5  ;;  %v2482_v21 = vor.u32 %v2481_v31, %v2480_v55  ;;  %v2489_v13 = vshll.u32 %v8965_v19, %v2477_v35 }
 0x1f3   : > { %v2490_v47 = vshrl.u32 %v8958_v2, %v2478_v15  ;;  %v2485_v0 = vor.u32 %v2484_v45, %v2483_v14  ;;  %v2488_v53 = vor.u32 %v2487_v49, %v2486_v16  ;;  %v2492_v51 = vshll.u32 %v8958_v2, %v2477_v35 }
 0x1f4   : > { %v2493_v63 = vshrl.u32 %v8959_v11, %v2478_v15  ;;  %v2131_v1 = vand.u32 2147483647, %v2130_v36  ;;  %v6775_v39 = vshrl.u32 %v2215_v32, 30  ;;  %vm8866_vm14 = vcmp.lt.s32.totalorder %v6331_v58, 0 }
 0x1f5   : > { %v2491_v44 = vor.u32 %v2490_v47, %v2489_v13  ;;  %v2020_v52 = vsub.s32 32, %v6761_v5  ;;  %v2325_v31 = vclz %v4722_v60  ;;  %v2364_v42 = vshrl.u32 %v2363_v26, 23 }
 0x1f6   : > { %9009 = vst [vmem:[#allocation52_spill] sm:$0xff] %v6775_v39  ;;  %v2494_v55 = vor.u32 %v2493_v63, %v2492_v51  ;;  %v2479_v45 = vshrl.u32 %v8966_v23, %v2478_v15  ;;  %vm2495_vm15 = vcmp.lt.s32.totalorder %v2476_v17, 1  ;;  %vm2498_vm0 = vcmp.lt.s32.totalorder %v2476_v17, 4 }
 0x1f7   : > { %v2511_v35 = vshll.u32 %v2471_v50, 8  ;;  %vm2497_vm2 = vcmp.lt.s32.totalorder %v2476_v17, 3  ;;  %v2500_v14 = vsel %vm2498_vm0, %v2488_v53, 2102212464  ;;  %v2503_v36 = vsel %vm2495_vm15, %v2482_v21, %v2485_v0 }
 0x1f8   : > { %v2504_v32 = vsel %vm2498_vm0, %v2491_v44, 920167782  ;;  %v2217_v16 = vshll.u32 %v6775_v39, 30  ;;  %vm2496_vm3 = vcmp.lt.s32.totalorder %v2476_v17, 2  ;;  %v2507_v13 = vsel %vm2495_vm15, %v2485_v0, %v2488_v53 }
 0x1f9   : > { %v2505_v49 = vsel %vm2497_vm2, %v2488_v53, %v2504_v32  ;;  %v4723_v47 = vadd.s32 4294967294, %v2325_v31  ;;  %v2508_v26 = vsel %vm2498_vm0, %v2494_v55, 1326507024  ;;  %v4725_v51 = vadd.s32 4294967169, %v2364_v42 }
 0x1fa   : > { %v2506_v60 = vsel %vm2496_vm3, %v2503_v36, %v2505_v49  ;;  %v2024_v15 = vsub.s32 4294967266, %v6761_v5  ;;  %v2499_v50 = vsel %vm2495_vm15, %v2479_v45, %v2482_v21  ;;  %v2501_v63 = vsel %vm2497_vm2, %v2485_v0, %v2500_v14 }
 0x1fb   : > { %v2509_v4 = vsel %vm2497_vm2, %v2491_v44, %v2508_v26  ;;  %v6788_v56 = vmul.u32.u64.low %v2511_v35, %v2506_v60  ;;  %v6789_v62 = vmul.u32.u64.high %v2511_v35, %v2506_v60, %v6788_v56  ;;  %v2370_v32 = vadd.s32 1, %v4725_v51 }
 0x1fc   : > { %v2510_v38 = vsel %vm2496_vm3, %v2507_v13, %v2509_v4  ;;  %v2004_v53 = vadd.s32 %v6588_v24, %v6597_v22  ;;  %v6794_v31 = vsub.s32 %v2214_v41, %v2217_v16  ;;  %v6799_v36 = vmul.f32 %v2133_v18, %v2131_v1  ;;  %v416_v41 = vpop.permute.xlu1 %415 }
 0x1fd   : > { %v6796_v55 = vmul.u32.u64.low %v2511_v35, %v2510_v38  ;;  %v6797_v42 = vmul.u32.u64.high %v2511_v35, %v2510_v38, %v6796_v55  ;;  %vm4724_vm15 = vcmp.lt.s32.totalorder %v4723_v47, 0  ;;  %v2502_v21 = vsel %vm2496_vm3, %v2499_v50, %v2501_v63 }
 0x1fe   : > { %vm2371_vm0 = vcmp.gt.s32.totalorder %v2370_v32, 0  ;;  %v9010_v4 = vxor.u32 2147483648, %v6734_v20  ;;  %v2022_v44 = vshrl.u32 %v2004_v53, %v2020_v52  ;;  %v2025_v24 = vadd.s32 127, %v2024_v15 }
 0x1ff   : > { %v2372_v22 = vsel %vm2371_vm0, %v2370_v32, 0  ;;  %v2021_v38 = vshll.u32 %v6653_v27, %v6761_v5  ;;  %v2521_v18 = vadd.s32 1, %v6789_v62  ;;  %v9012_v17 = vand.u32 2147483647, %v6751_v57 }
 0x200   : > { %v6807_v0 = vsel %vm8866_vm14, %v9010_v4, %v6734_v20  ;;  %v2374_v45 = vand.u32 31, %v2372_v22  ;;  %v6814_v14 = vsel %vm4724_vm15, 0, %v4723_v47  ;;  %v2220_v16 = vsub.s32 0, %v6794_v31 }
 0x201   : > { %9011 = vst [vmem:[#allocation53_spill] sm:$0xff] %v6807_v0  ;;  %v2367_v1 = vand.u32 8388607, %v9012_v17  ;;  %v2518_v49 = vmul.u32 %v2511_v35, %v2502_v21  ;;  %vm2520_vm3 = vc.u32 %v6797_v42, %v6788_v56  ;;  %v6822_v27 = vmul.f32 %v6554_v9, %v416_v41 }
 0x202   : > { %v2522_v52 = vsel %vm2520_vm3, %v2521_v18, %v6789_v62  ;;  %v2375_v13 = vsub.s32 32, %v2374_v45  ;;  %v6824_v5 = vor.u32 %v2022_v44, %v2021_v38  ;;  %v2026_v60 = vshll.u32 %v2025_v24, 23 }
 0x203   : > { %9013 = vst [vmem:[#allocation54_spill] sm:$0xff] %v6822_v27  ;;  %v2313_v47 = vadd.s32 %v6647_v29, %v6656_v59  ;;  %v2523_v26 = vadd.s32 %v2522_v52, %v2518_v49  ;;  %v2329_v35 = vsub.s32 32, %v6814_v14  ;;  %v2368_v51 = vor.u32 8388608, %v2367_v1 }
 0x204   : > { %v2378_v15 = vshrl.u32 %v8963_v46, %v2375_v13  ;;  %v2381_v50 = vshrl.u32 %v8964_v8, %v2375_v13  ;;  %v2333_v62 = vsub.s32 4294967266, %v6814_v14  ;;  %v4718_v63 = vmin.u32 %v2220_v16, %v6794_v31 }
 0x205   : > { %v2524_v32 = vadd.s32 536870912, %v2523_v26  ;;  %v2377_v53 = vshll.u32 %v8966_v23, %v2374_v45  ;;  %v2380_v55 = vshll.u32 %v8963_v46, %v2374_v45  ;;  %v2383_v21 = vshll.u32 %v8964_v8, %v2374_v45 }
 0x206   : > { %v2384_v29 = vshrl.u32 %v8965_v19, %v2375_v13  ;;  %v2672_v59 = vand.u32 2139095040, %v6822_v27  ;;  %v2373_v4 = vshrl.u32 %v2372_v22, 5  ;;  %v2386_v24 = vshll.u32 %v8965_v19, %v2374_v45 }
 0x207   : > { %v2379_v44 = vor.u32 %v2378_v15, %v2377_v53  ;;  %v2387_v41 = vshrl.u32 %v8958_v2, %v2375_v13  ;;  %v2382_v38 = vor.u32 %v2381_v50, %v2380_v55  ;;  %v2389_v17 = vshll.u32 %v8958_v2, %v2374_v45 }
 0x208   : > { %v2385_v18 = vor.u32 %v2384_v29, %v2383_v21  ;;  %v2390_v1 = vshrl.u32 %v8959_v11, %v2375_v13  ;;  %v2027_v16 = vor.u32 4788187, %v2026_v60  ;;  %v2331_v49 = vshrl.u32 %v2313_v47, %v2329_v35 }
 0x209   : > { %v6842_v52 = vshrl.u32 %v2524_v32, 30  ;;  %v2388_v20 = vor.u32 %v2387_v41, %v2386_v24  ;;  %vm8877_vm2 = vcmp.lt.s32.totalorder %v6394_v37, 0  ;;  %v2334_v39 = vadd.s32 127, %v2333_v62 }
 0x20a   : > { %v2222_v22 = vclz %v4718_v63  ;;  %v2391_v15 = vor.u32 %v2390_v1, %v2389_v17  ;;  %v2673_v53 = vshrl.u32 %v2672_v59, 23  ;;  %v2376_v0 = vshrl.u32 %v8966_v23, %v2375_v13 }
 0x20b   : > { %9014 = vst [vmem:[#allocation55_spill] sm:$0xff] %v6842_v52  ;;  %vm2392_vm15 = vcmp.lt.s32.totalorder %v2373_v4, 1  ;;  %vm2395_vm0 = vcmp.lt.s32.totalorder %v2373_v4, 4  ;;  %v2408_v50 = vshll.u32 %v2368_v51, 8  ;;  %vm2394_vm3 = vcmp.lt.s32.totalorder %v2373_v4, 3 }
 0x20c   : > { %v2397_v45 = vsel %vm2395_vm0, %v2385_v18, 2102212464  ;;  %v2400_v55 = vsel %vm2392_vm15, %v2379_v44, %v2382_v38  ;;  %v2401_v21 = vsel %vm2395_vm0, %v2388_v20, 920167782  ;;  %v2526_v60 = vshll.u32 %v6842_v52, 30 }
 0x20d   : > { %vm2393_vm14 = vcmp.lt.s32.totalorder %v2373_v4, 2  ;;  %v2402_v47 = vsel %vm2394_vm3, %v2385_v18, %v2401_v21  ;;  %v2404_v35 = vsel %vm2392_vm15, %v2382_v38, %v2385_v18  ;;  %v4719_v32 = vadd.s32 4294967294, %v2222_v22 }
 0x20e   : > { %v2403_v62 = vsel %vm2393_vm14, %v2400_v55, %v2402_v47  ;;  %v2405_v63 = vsel %vm2395_vm0, %v2391_v15, 1326507024  ;;  %v4737_v29 = vadd.s32 4294967169, %v2673_v53  ;;  %v2396_v59 = vsel %vm2392_vm15, %v2376_v0, %v2379_v44 }
 0x20f   : > { %v2398_v24 = vsel %vm2394_vm3, %v2382_v38, %v2397_v45  ;;  %v2406_v13 = vsel %vm2394_vm3, %v2388_v20, %v2405_v63  ;;  %v8869_v41 = vand.u32 2147483647, %v6822_v27  ;;  %v2330_v18 = vshll.u32 %v6721_v48, %v6814_v14 }
 0x210   : > { %v2407_v51 = vsel %vm2393_vm14, %v2404_v35, %v2406_v13  ;;  %v6850_v17 = vmul.u32.u64.low %v2408_v50, %v2403_v62  ;;  %v6851_v1 = vmul.u32.u64.high %v2408_v50, %v2403_v62, %v6850_v17  ;;  %v2679_v52 = vadd.s32 1, %v4737_v29 }
 0x211   : > { %v6856_v22 = vsub.s32 %v2523_v26, %v2526_v60  ;;  %v6858_v55 = vmul.u32.u64.low %v2408_v50, %v2407_v51  ;;  %v6859_v15 = vmul.u32.u64.high %v2408_v50, %v2407_v51, %v6858_v55  ;;  %v2028_v0 = vand.u32 2147483647, %v2027_v16  ;;  %v411_v26 = vpop.permute.xlu0 %410 }
 0x212   : > { %vm4720_vm15 = vcmp.lt.s32.totalorder %v4719_v32, 0  ;;  %v2399_v20 = vsel %vm2393_vm14, %v2396_v59, %v2398_v24  ;;  %vm2680_vm0 = vcmp.gt.s32.totalorder %v2679_v52, 0  ;;  %v9015_v44 = vxor.u32 2147483648, %v6799_v36 }
 0x213   : > { %v6869_v53 = vor.u32 %v2331_v49, %v2330_v18  ;;  %v2335_v48 = vshll.u32 %v2334_v39, 23  ;;  %v2681_v14 = vsel %vm2680_vm0, %v2679_v52, 0  ;;  %v2030_v45 = vcvt.s32.f32 %v6824_v5 }
 0x214   : > { %v6867_v38 = vsel %vm8877_vm2, %v9015_v44, %v6799_v36  ;;  %v2418_v16 = vadd.s32 1, %v6851_v1  ;;  %v2676_v4 = vand.u32 8388607, %v8869_v41  ;;  %v2683_v21 = vand.u32 31, %v2681_v14 }
 0x215   : > { %9016 = vst [vmem:[#allocation56_spill] sm:$0xff] %v6867_v38  ;;  %v6875_v60 = vsel %vm4720_vm15, 0, %v4719_v32  ;;  %v2529_v47 = vsub.s32 0, %v6856_v22  ;;  %v2415_v35 = vmul.u32 %v2408_v50, %v2399_v20  ;;  %vm2417_vm14 = vc.u32 %v6859_v15, %v6850_v17 }
 0x216   : > { %v6880_v36 = vmul.f32 %v2030_v45, %v2028_v0  ;;  %v2419_v39 = vsel %vm2417_vm14, %v2418_v16, %v6851_v1  ;;  %v2684_v49 = vsub.s32 32, %v2683_v21  ;;  %v6884_v5 = vmul.f32 %v6554_v9, %v411_v26 }
 0x217   : > { %v2336_v52 = vor.u32 4788187, %v2335_v48  ;;  %v2339_v62 = vcvt.s32.f32 %v6869_v53  ;;  %v2210_v32 = vadd.s32 %v6717_v10, %v6724_v34  ;;  %v2420_v63 = vadd.s32 %v2419_v39, %v2415_v35 }
 0x218   : > { %9017 = vst [vmem:[#allocation57_spill] sm:$0xff] %v6884_v5  ;;  %v2226_v50 = vsub.s32 32, %v6875_v60  ;;  %v2230_v29 = vsub.s32 4294967266, %v6875_v60  ;;  %v2687_v59 = vshrl.u32 %v8963_v46, %v2684_v49  ;;  %v2690_v24 = vshrl.u32 %v8964_v8, %v2684_v49 }
 0x219   : > { %v4730_v13 = vmin.u32 %v2529_v47, %v6856_v22  ;;  %v2421_v51 = vadd.s32 536870912, %v2420_v63  ;;  %v2677_v1 = vor.u32 8388608, %v2676_v4  ;;  %v2686_v18 = vshll.u32 %v8966_v23, %v2683_v21 }
 0x21a   : > { %v2689_v55 = vshll.u32 %v8963_v46, %v2683_v21  ;;  %v2692_v0 = vshll.u32 %v8964_v8, %v2683_v21  ;;  %v2693_v10 = vshrl.u32 %v8965_v19, %v2684_v49  ;;  %v2569_v34 = vand.u32 2139095040, %v6884_v5 }
 0x21b   : > { %v2682_v20 = vshrl.u32 %v2681_v14, 5  ;;  %v2688_v44 = vor.u32 %v2687_v59, %v2686_v18  ;;  %v2695_v53 = vshll.u32 %v8965_v19, %v2683_v21  ;;  %v2696_v48 = vshrl.u32 %v8958_v2, %v2684_v49 }
 0x21c   : > { %v2691_v26 = vor.u32 %v2690_v24, %v2689_v55  ;;  %v2694_v45 = vor.u32 %v2693_v10, %v2692_v0  ;;  %v2698_v16 = vshll.u32 %v8958_v2, %v2683_v21  ;;  %v2699_v4 = vshrl.u32 %v8959_v11, %v2684_v49 }
 0x21d   : > { %v2337_v47 = vand.u32 2147483647, %v2336_v52  ;;  %v2228_v35 = vshrl.u32 %v2210_v32, %v2226_v50  ;;  %v6903_v39 = vshrl.u32 %v2421_v51, 30  ;;  %v2697_v41 = vor.u32 %v2696_v48, %v2695_v53 }
 0x21e   : > { %v2231_v38 = vadd.s32 127, %v2230_v29  ;;  %v2531_v37 = vclz %v4730_v13  ;;  %v2700_v58 = vor.u32 %v2699_v4, %v2698_v16  ;;  %v2570_v14 = vshrl.u32 %v2569_v34, 23 }
 0x21f   : > { %9018 = vst [vmem:[#allocation58_spill] sm:$0xff] %v6903_v39  ;;  %v2685_v59 = vshrl.u32 %v8966_v23, %v2684_v49  ;;  %vm2701_vm3 = vcmp.lt.s32.totalorder %v2682_v20, 1  ;;  %vm2704_vm15 = vcmp.lt.s32.totalorder %v2682_v20, 4  ;;  %v2717_v18 = vshll.u32 %v2677_v1, 8 }
 0x220   : > { %vm2703_vm0 = vcmp.lt.s32.totalorder %v2682_v20, 3  ;;  %v2706_v24 = vsel %vm2704_vm15, %v2694_v45, 2102212464  ;;  %v2709_v21 = vsel %vm2701_vm3, %v2688_v44, %v2691_v26  ;;  %v2710_v55 = vsel %vm2704_vm15, %v2697_v41, 920167782 }
 0x221   : > { %v2423_v52 = vshll.u32 %v6903_v39, 30  ;;  %vm2702_vm14 = vcmp.lt.s32.totalorder %v2682_v20, 2  ;;  %v2711_v32 = vsel %vm2703_vm0, %v2694_v45, %v2710_v55  ;;  %v2713_v50 = vsel %vm2701_vm3, %v2691_v26, %v2694_v45 }
 0x222   : > { %v4731_v29 = vadd.s32 4294967294, %v2531_v37  ;;  %v2712_v13 = vsel %vm2702_vm14, %v2709_v21, %v2711_v32  ;;  %v2714_v51 = vsel %vm2704_vm15, %v2700_v58, 1326507024  ;;  %v4733_v0 = vadd.s32 4294967169, %v2570_v14 }
 0x223   : > { %v2232_v49 = vshll.u32 %v2231_v38, 23  ;;  %v2705_v10 = vsel %vm2701_vm3, %v2685_v59, %v2688_v44  ;;  %v2707_v1 = vsel %vm2703_vm0, %v2691_v26, %v2706_v24  ;;  %v2715_v34 = vsel %vm2703_vm0, %v2697_v41, %v2714_v51  ;;  %v426_v38 = vpop.permute.xlu1 %425 }
 0x224   : > { %v2716_v53 = vsel %vm2702_vm14, %v2713_v50, %v2715_v34  ;;  %v6912_v48 = vmul.u32.u64.low %v2717_v18, %v2712_v13  ;;  %v6913_v16 = vmul.u32.u64.high %v2717_v18, %v2712_v13, %v6912_v48  ;;  %v2576_v4 = vadd.s32 1, %v4733_v0 }
 0x225   : > { %v2227_v45 = vshll.u32 %v6794_v31, %v6875_v60  ;;  %v6918_v37 = vsub.s32 %v2420_v63, %v2423_v52  ;;  %v6920_v21 = vmul.u32.u64.low %v2717_v18, %v2716_v53  ;;  %v6921_v58 = vmul.u32.u64.high %v2717_v18, %v2716_v53, %v6920_v21 }
 0x226   : > { %v6923_v14 = vmul.f32 %v2339_v62, %v2337_v47  ;;  %vm4732_vm3 = vcmp.lt.s32.totalorder %v4731_v29, 0  ;;  %v2708_v41 = vsel %vm2702_vm14, %v2705_v10, %v2707_v1  ;;  %vm2577_vm15 = vcmp.gt.s32.totalorder %v2576_v4, 0 }
 0x227   : > { %v6926_v44 = vor.u32 %v2228_v35, %v2227_v45  ;;  %v6928_v26 = vor.u32 4788187, %v2232_v49  ;;  %v8874_v59 = vand.u32 2147483647, %v6884_v5  ;;  %v2578_v24 = vsel %vm2577_vm15, %v2576_v4, 0 }
 0x228   : > { %v2727_v60 = vadd.s32 1, %v6913_v16  ;;  %v2580_v63 = vand.u32 31, %v2578_v24  ;;  %v6934_v55 = vmul.f32 %v6554_v9, %v426_v38  ;;  %v6936_v62 = vsel %vm4732_vm3, 0, %v4731_v29 }
 0x229   : > { %v2426_v20 = vsub.s32 0, %v6918_v37  ;;  %v2724_v47 = vmul.u32 %v2717_v18, %v2708_v41  ;;  %vm2726_vm0 = vc.u32 %v6921_v58, %v6912_v48  ;;  %v2519_v52 = vadd.s32 %v6788_v56, %v6797_v42 }
 0x22a   : > { %v2728_v32 = vsel %vm2726_vm0, %v2727_v60, %v6913_v16  ;;  %v2581_v50 = vsub.s32 32, %v2580_v63  ;;  %v2234_v13 = vand.u32 2147483647, %v6928_v26  ;;  %v2236_v9 = vcvt.s32.f32 %v6926_v44 }
 0x22b   : > { %v2729_v29 = vadd.s32 %v2728_v32, %v2724_v47  ;;  %v2573_v51 = vand.u32 8388607, %v8874_v59  ;;  %v2535_v18 = vsub.s32 32, %v6936_v62  ;;  %v2539_v0 = vsub.s32 4294967266, %v6936_v62 }
 0x22c   : > { %v2584_v49 = vshrl.u32 %v8963_v46, %v2581_v50  ;;  %v2587_v10 = vshrl.u32 %v8964_v8, %v2581_v50  ;;  %v4726_v56 = vmin.u32 %v2426_v20, %v6918_v37  ;;  %v2583_v1 = vshll.u32 %v8966_v23, %v2580_v63 }
 0x22d   : > { %v2730_v42 = vadd.s32 536870912, %v2729_v29  ;;  %v2878_v34 = vand.u32 2139095040, %v6934_v55  ;;  %v2579_v53 = vshrl.u32 %v2578_v24, 5  ;;  %v2586_v16 = vshll.u32 %v8963_v46, %v2580_v63 }
 0x22e   : > { %v2589_v4 = vshll.u32 %v8964_v8, %v2580_v63  ;;  %v2590_v45 = vshrl.u32 %v8965_v19, %v2581_v50  ;;  %v2585_v38 = vor.u32 %v2584_v49, %v2583_v1  ;;  %v2592_v41 = vshll.u32 %v8965_v19, %v2580_v63 }
 0x22f   : > { %v6959_v21 = vshrl.u32 %v2730_v42, 30  ;;  %v2593_v44 = vshrl.u32 %v8958_v2, %v2581_v50  ;;  %v2588_v26 = vor.u32 %v2587_v10, %v2586_v16  ;;  %v2595_v20 = vshll.u32 %v8958_v2, %v2580_v63 }
 0x230   : > { %v2591_v60 = vor.u32 %v2590_v45, %v2589_v4  ;;  %v2596_v47 = vshrl.u32 %v8959_v11, %v2581_v50  ;;  %v2537_v24 = vshrl.u32 %v2519_v52, %v2535_v18  ;;  %v2574_v59 = vor.u32 8388608, %v2573_v51 }
 0x231   : > { %9019 = vst [vmem:[#allocation59_spill] sm:$0xff] %v6959_v21  ;;  %v2732_v32 = vshll.u32 %v6959_v21, 30  ;;  %v2594_v35 = vor.u32 %v2593_v44, %v2592_v41  ;;  %vm8885_vm14 = vcmp.lt.s32.totalorder %v6471_v7, 0  ;;  %v2540_v42 = vadd.s32 127, %v2539_v0 }
 0x232   : > { %v2428_v31 = vclz %v4726_v56  ;;  %v2597_v49 = vor.u32 %v2596_v47, %v2595_v20  ;;  %v2879_v1 = vshrl.u32 %v2878_v34, 23  ;;  %vm8884_vm3 = vcmp.lt.s32.totalorder %v6557_v30, 0 }
 0x233   : > { %v6968_v39 = vsub.s32 %v2729_v29, %v2732_v32  ;;  %v2582_v10 = vshrl.u32 %v8966_v23, %v2581_v50  ;;  %vm2598_vm15 = vcmp.lt.s32.totalorder %v2579_v53, 1  ;;  %vm2601_vm0 = vcmp.lt.s32.totalorder %v2579_v53, 4 }
 0x234   : > { %vm2600_vm2 = vcmp.lt.s32.totalorder %v2579_v53, 3  ;;  %v2603_v63 = vsel %vm2601_vm0, %v2591_v60, 2102212464  ;;  %v2606_v52 = vsel %vm2598_vm15, %v2585_v38, %v2588_v26  ;;  %v2607_v18 = vsel %vm2601_vm0, %v2594_v35, 920167782 }
 0x235   : > { %v2735_v51 = vsub.s32 0, %v6968_v39  ;;  %vm2599_vm11 = vcmp.lt.s32.totalorder %v2579_v53, 2  ;;  %v2608_v16 = vsel %vm2600_vm2, %v2591_v60, %v2607_v18  ;;  %v2610_v0 = vsel %vm2598_vm15, %v2588_v26, %v2591_v60 }
 0x236   : > { %v2609_v56 = vsel %vm2599_vm11, %v2606_v52, %v2608_v16  ;;  %v2611_v34 = vsel %vm2601_vm0, %v2597_v49, 1326507024  ;;  %v2614_v4 = vshll.u32 %v2574_v59, 8  ;;  %v4745_v45 = vadd.s32 4294967169, %v2879_v1 }
 0x237   : > { %v4738_v29 = vmin.u32 %v2735_v51, %v6968_v39  ;;  %v2602_v41 = vsel %vm2598_vm15, %v2582_v10, %v2585_v38  ;;  %v2604_v50 = vsel %vm2600_vm2, %v2588_v26, %v2603_v63  ;;  %v2612_v44 = vsel %vm2600_vm2, %v2594_v35, %v2611_v34  ;;  %v421_v35 = vpop.permute.xlu0 %420 }
 0x238   : > { %v2613_v20 = vsel %vm2599_vm11, %v2610_v0, %v2612_v44  ;;  %v6975_v47 = vmul.u32.u64.low %v2614_v4, %v2609_v56  ;;  %v6976_v32 = vmul.u32.u64.high %v2614_v4, %v2609_v56, %v6975_v47  ;;  %v2885_v21 = vadd.s32 1, %v4745_v45 }
 0x239   : > { %v2536_v60 = vshll.u32 %v6856_v22, %v6936_v62  ;;  %v4727_v18 = vadd.s32 4294967294, %v2428_v31  ;;  %v6981_v52 = vmul.u32.u64.low %v2614_v4, %v2613_v20  ;;  %v6982_v49 = vmul.u32.u64.high %v2614_v4, %v2613_v20, %v6981_v52 }
 0x23a   : > { %v6984_v59 = vmul.f32 %v2236_v9, %v2234_v13  ;;  %v2737_v1 = vclz %v4738_v29  ;;  %v2605_v38 = vsel %vm2599_vm11, %v2602_v41, %v2604_v50  ;;  %vm2886_vm2 = vcmp.gt.s32.totalorder %v2885_v21, 0 }
 0x23b   : > { %v9020_v26 = vxor.u32 2147483648, %v6880_v36  ;;  %v6994_v63 = vor.u32 %v2537_v24, %v2536_v60  ;;  %v2541_v22 = vshll.u32 %v2540_v42, 23  ;;  %v2887_v31 = vsel %vm2886_vm2, %v2885_v21, 0 }
 0x23c   : > { %v9022_v62 = vxor.u32 2147483648, %v6923_v14  ;;  %v2624_v9 = vadd.s32 1, %v6976_v32  ;;  %v8881_v53 = vand.u32 2147483647, %v6934_v55  ;;  %v2889_v51 = vand.u32 31, %v2887_v31 }
 0x23d   : > { %v6992_v10 = vsel %vm8885_vm14, %v9020_v26, %v6880_v36  ;;  %vm4728_vm11 = vcmp.lt.s32.totalorder %v4727_v18, 0  ;;  %v2621_v16 = vmul.u32 %v2614_v4, %v2605_v38  ;;  %vm2623_vm15 = vc.u32 %v6982_v49, %v6975_v47  ;;  %v7010_v36 = vld [vmem:[%s8776_s2] ss:$0 sm:$0xff] }
 0x23e   : > { %9021 = vst [vmem:[#allocation60_spill] sm:$0xff] %v6992_v10  ;;  %v7001_v13 = vsel %vm8884_vm3, %v9022_v62, %v6923_v14  ;;  %v7013_v21 = vmul.f32 %v7010_v36, %v421_v35  ;;  %v2238_v14 = vxor.u32 2147483648, %v6984_v59  ;;  %v4739_v24 = vadd.s32 4294967294, %v2737_v1 }
 0x23f   : > { %9023 = vst [vmem:[#allocation61_spill] sm:$0xff] %v7001_v13  ;;  %v2625_v42 = vsel %vm2623_vm15, %v2624_v9, %v6976_v32  ;;  %v2890_v0 = vsub.s32 32, %v2889_v51  ;;  %v2542_v56 = vor.u32 4788187, %v2541_v22  ;;  %v2545_v34 = vcvt.s32.f32 %v6994_v63 }
 0x240   : > { %v2416_v4 = vadd.s32 %v6850_v17, %v6859_v15  ;;  %v2626_v45 = vadd.s32 %v2625_v42, %v2621_v16  ;;  %v7020_v29 = vsel %vm4728_vm11, 0, %v4727_v18  ;;  %v2882_v41 = vand.u32 8388607, %v8881_v53 }
 0x241   : > { %v2893_v50 = vshrl.u32 %v8963_v46, %v2890_v0  ;;  %v2896_v44 = vshrl.u32 %v8964_v8, %v2890_v0  ;;  %v2888_v60 = vshrl.u32 %v2887_v31, 5  ;;  %v2892_v32 = vshll.u32 %v8966_v23, %v2889_v51 }
 0x242   : > { %v2627_v20 = vadd.s32 536870912, %v2626_v45  ;;  %v2775_v52 = vand.u32 2139095040, %v7013_v21  ;;  %vm4740_vm0 = vcmp.lt.s32.totalorder %v4739_v24, 0  ;;  %v2895_v1 = vshll.u32 %v8963_v46, %v2889_v51 }
 0x243   : > { %v2898_v17 = vshll.u32 %v8964_v8, %v2889_v51  ;;  %v2899_v15 = vshrl.u32 %v8965_v19, %v2890_v0  ;;  %v2894_v38 = vor.u32 %v2893_v50, %v2892_v32  ;;  %v2901_v35 = vshll.u32 %v8965_v19, %v2889_v51 }
 0x244   : > { %v7031_v18 = vshrl.u32 %v2627_v20, 30  ;;  %v2902_v26 = vshrl.u32 %v8958_v2, %v2890_v0  ;;  %vm8894_vm2 = vcmp.lt.s32.totalorder %v6617_v33, 0  ;;  %v2897_v63 = vor.u32 %v2896_v44, %v2895_v1 }
 0x245   : > { %v2900_v22 = vor.u32 %v2899_v15, %v2898_v17  ;;  %v2904_v31 = vshll.u32 %v8958_v2, %v2889_v51  ;;  %v2905_v62 = vshrl.u32 %v8959_v11, %v2890_v0  ;;  %v2543_v9 = vand.u32 2147483647, %v2542_v56 }
 0x246   : > { %9024 = vst [vmem:[#allocation62_spill] sm:$0xff] %v7031_v18  ;;  %v2432_v16 = vsub.s32 32, %v7020_v29  ;;  %v2629_v42 = vshll.u32 %v7031_v18, 30  ;;  %v2903_v20 = vor.u32 %v2902_v26, %v2901_v35  ;;  %v2436_v50 = vsub.s32 4294967266, %v7020_v29 }
 0x247   : > { %v2883_v32 = vor.u32 8388608, %v2882_v41  ;;  %v2906_v53 = vor.u32 %v2905_v62, %v2904_v31  ;;  %v2776_v13 = vshrl.u32 %v2775_v52, 23  ;;  %v7042_v30 = vsel %vm4740_vm0, 0, %v4739_v24 }
 0x248   : > { %v2891_v44 = vshrl.u32 %v8966_v23, %v2890_v0  ;;  %vm2907_vm11 = vcmp.lt.s32.totalorder %v2888_v60, 1  ;;  %vm2910_vm15 = vcmp.lt.s32.totalorder %v2888_v60, 4  ;;  %vm2909_vm3 = vcmp.lt.s32.totalorder %v2888_v60, 3 }
 0x249   : > { %v2912_v51 = vsel %vm2910_vm15, %v2900_v22, 2102212464  ;;  %v2915_v56 = vsel %vm2907_vm11, %v2894_v38, %v2897_v63  ;;  %v2916_v1 = vsel %vm2910_vm15, %v2903_v20, 920167782  ;;  %v7045_v17 = vsub.s32 %v2626_v45, %v2629_v42 }
 0x24a   : > { %vm2908_vm14 = vcmp.lt.s32.totalorder %v2888_v60, 2  ;;  %v2917_v15 = vsel %vm2909_vm3, %v2900_v22, %v2916_v1  ;;  %v2919_v35 = vsel %vm2907_vm11, %v2897_v63, %v2900_v22  ;;  %v2920_v26 = vsel %vm2910_vm15, %v2906_v53, 1326507024 }
 0x24b   : > { %v2918_v41 = vsel %vm2908_vm14, %v2915_v56, %v2917_v15  ;;  %v2923_v52 = vshll.u32 %v2883_v32, 8  ;;  %v4741_v31 = vadd.s32 4294967169, %v2776_v13  ;;  %v2745_v24 = vsub.s32 4294967266, %v7042_v30 }
 0x24c   : > { %v2911_v62 = vsel %vm2907_vm11, %v2891_v44, %v2894_v38  ;;  %v2913_v0 = vsel %vm2909_vm3, %v2897_v63, %v2912_v51  ;;  %v2921_v18 = vsel %vm2909_vm3, %v2903_v20, %v2920_v26  ;;  %v7057_v22 = vsel %vm8894_vm2, %v2238_v14, %v6984_v59  ;;  %v436_v20 = vpop.permute.xlu1 %435 }
 0x24d   : > { %v2922_v10 = vsel %vm2908_vm14, %v2919_v35, %v2921_v18  ;;  %v7050_v7 = vmul.u32.u64.low %v2923_v52, %v2918_v41  ;;  %v7051_v12 = vmul.u32.u64.high %v2923_v52, %v2918_v41, %v7050_v7  ;;  %v2782_v45 = vadd.s32 1, %v4741_v31  ;;  %9025 = vst [vmem:[#allocation63_spill] sm:$0xff] %v7057_v22 }
 0x24e   : > { %v2632_v53 = vsub.s32 0, %v7045_v17  ;;  %v7060_v13 = vmul.u32.u64.low %v2923_v52, %v2922_v10  ;;  %v7061_v42 = vmul.u32.u64.high %v2923_v52, %v2922_v10, %v7060_v13  ;;  %v7063_v38 = vmul.f32 %v2545_v34, %v2543_v9 }
 0x24f   : > { %v2434_v63 = vshrl.u32 %v2416_v4, %v2432_v16  ;;  %v2914_v18 = vsel %vm2908_vm14, %v2911_v62, %v2913_v0  ;;  %vm2783_vm3 = vcmp.gt.s32.totalorder %v2782_v45, 0  ;;  %v2433_v32 = vshll.u32 %v6918_v37, %v7020_v29 }
 0x250   : > { %v2437_v44 = vadd.s32 127, %v2436_v50  ;;  %v8891_v51 = vand.u32 2147483647, %v7013_v21  ;;  %v2784_v59 = vsel %vm2783_vm3, %v2782_v45, 0  ;;  %v2741_v14 = vsub.s32 32, %v7042_v30 }
 0x251   : > { %v2746_v56 = vadd.s32 127, %v2745_v24  ;;  %v2933_v10 = vadd.s32 1, %v7051_v12  ;;  %v2786_v1 = vand.u32 31, %v2784_v59  ;;  %v4734_v34 = vmin.u32 %v2632_v53, %v7045_v17 }
 0x252   : > { %v2930_v4 = vmul.u32 %v2923_v52, %v2914_v18  ;;  %vm2932_vm14 = vc.u32 %v7061_v42, %v7050_v7  ;;  %v7075_v60 = vmul.f32 %v7010_v36, %v436_v20  ;;  %v7077_v37 = vor.u32 %v2434_v63, %v2433_v32 }
 0x253   : > { %v2725_v29 = vadd.s32 %v6912_v48, %v6921_v58  ;;  %v2934_v9 = vsel %vm2932_vm14, %v2933_v10, %v7051_v12  ;;  %v2787_v16 = vsub.s32 32, %v2786_v1  ;;  %v2438_v50 = vshll.u32 %v2437_v44, 23 }
 0x254   : > { %v2742_v15 = vshll.u32 %v6968_v39, %v7042_v30  ;;  %v2935_v35 = vadd.s32 %v2934_v9, %v2930_v4  ;;  %v2779_v41 = vand.u32 8388607, %v8891_v51  ;;  %v2747_v52 = vshll.u32 %v2746_v56, 23 }
 0x255   : > { %v2743_v26 = vshrl.u32 %v2725_v29, %v2741_v14  ;;  %v2790_v31 = vshrl.u32 %v8963_v46, %v2787_v16  ;;  %v2793_v24 = vshrl.u32 %v8964_v8, %v2787_v16  ;;  %v2634_v62 = vclz %v4734_v34 }
 0x256   : > { %v2936_v0 = vadd.s32 536870912, %v2935_v35  ;;  %v2789_v48 = vshll.u32 %v8966_v23, %v2786_v1  ;;  %v3084_v12 = vand.u32 2139095040, %v7075_v60  ;;  %v2785_v58 = vshrl.u32 %v2784_v59, 5 }
 0x257   : > { %v2792_v45 = vshll.u32 %v8963_v46, %v2786_v1  ;;  %v2795_v30 = vshll.u32 %v8964_v8, %v2786_v1  ;;  %v2796_v39 = vshrl.u32 %v8965_v19, %v2787_v16  ;;  %v2798_v63 = vshll.u32 %v8965_v19, %v2786_v1 }
 0x258   : > { %v7093_v53 = vshrl.u32 %v2936_v0, 30  ;;  %v2791_v13 = vor.u32 %v2790_v31, %v2789_v48  ;;  %v2799_v18 = vshrl.u32 %v8958_v2, %v2787_v16  ;;  %v2801_v44 = vshll.u32 %v8958_v2, %v2786_v1 }
 0x259   : > { %v2794_v20 = vor.u32 %v2793_v24, %v2792_v45  ;;  %v2797_v32 = vor.u32 %v2796_v39, %v2795_v30  ;;  %v2802_v14 = vshrl.u32 %v8959_v11, %v2787_v16  ;;  %v2439_v59 = vor.u32 4788187, %v2438_v50 }
 0x25a   : > { %9026 = vst [vmem:[#allocation64_spill] sm:$0xff] %v7093_v53  ;;  %v2938_v56 = vshll.u32 %v7093_v53, 30  ;;  %v2780_v10 = vor.u32 8388608, %v2779_v41  ;;  %v2800_v34 = vor.u32 %v2799_v18, %v2798_v63  ;;  %v2744_v4 = vor.u32 %v2743_v26, %v2742_v15 }
 0x25b   : > { %v2748_v29 = vor.u32 4788187, %v2747_v52  ;;  %v2803_v9 = vor.u32 %v2802_v14, %v2801_v44  ;;  %v3085_v0 = vshrl.u32 %v3084_v12, 23  ;;  %v4735_v31 = vadd.s32 4294967294, %v2634_v62 }
 0x25c   : > { %v2788_v48 = vshrl.u32 %v8966_v23, %v2787_v16  ;;  %vm2804_vm0 = vcmp.lt.s32.totalorder %v2785_v58, 1  ;;  %vm2807_vm11 = vcmp.lt.s32.totalorder %v2785_v58, 4  ;;  %vm2806_vm15 = vcmp.lt.s32.totalorder %v2785_v58, 3 }
 0x25d   : > { %v2809_v24 = vsel %vm2807_vm11, %v2797_v32, 2102212464  ;;  %v2812_v45 = vsel %vm2804_vm0, %v2791_v13, %v2794_v20  ;;  %v2813_v1 = vsel %vm2807_vm11, %v2800_v34, 920167782  ;;  %v7101_v30 = vsub.s32 %v2935_v35, %v2938_v56  ;;  %v431_v56 = vpop.permute.xlu0 %430 }
 0x25e   : > { %vm2805_vm3 = vcmp.lt.s32.totalorder %v2785_v58, 2  ;;  %v2814_v50 = vsel %vm2806_vm15, %v2797_v32, %v2813_v1  ;;  %v2816_v39 = vsel %vm2804_vm0, %v2794_v20, %v2797_v32  ;;  %v2817_v15 = vsel %vm2807_vm11, %v2803_v9, 1326507024 }
 0x25f   : > { %v2815_v41 = vsel %vm2805_vm3, %v2812_v45, %v2814_v50  ;;  %v2820_v26 = vshll.u32 %v2780_v10, 8  ;;  %v4753_v52 = vadd.s32 4294967169, %v3085_v0  ;;  %v2808_v12 = vsel %vm2804_vm0, %v2788_v48, %v2791_v13 }
 0x260   : > { %v2810_v62 = vsel %vm2806_vm15, %v2794_v20, %v2809_v24  ;;  %v2818_v63 = vsel %vm2806_vm15, %v2800_v34, %v2817_v15  ;;  %v8890_v16 = vand.u32 2147483647, %v7075_v60  ;;  %vm4736_vm14 = vcmp.lt.s32.totalorder %v4735_v31, 0 }
 0x261   : > { %v2819_v18 = vsel %vm2805_vm3, %v2816_v39, %v2818_v63  ;;  %v7106_v44 = vmul.u32.u64.low %v2820_v26, %v2815_v41  ;;  %v7107_v14 = vmul.u32.u64.high %v2820_v26, %v2815_v41, %v7106_v44  ;;  %v3091_v35 = vadd.s32 1, %v4753_v52 }
 0x262   : > { %v2941_v32 = vsub.s32 0, %v7101_v30  ;;  %v7111_v45 = vmul.u32.u64.low %v2820_v26, %v2819_v18  ;;  %v7112_v9 = vmul.u32.u64.high %v2820_v26, %v2819_v18, %v7111_v45  ;;  %v2440_v20 = vand.u32 2147483647, %v2439_v59 }
 0x263   : > { %v2811_v10 = vsel %vm2805_vm3, %v2808_v12, %v2810_v62  ;;  %vm3092_vm0 = vcmp.gt.s32.totalorder %v3091_v35, 0  ;;  %v2442_v34 = vcvt.s32.f32 %v7077_v37  ;;  %v2749_v0 = vand.u32 2147483647, %v2748_v29 }
 0x264   : > { %v3093_v48 = vsel %vm3092_vm0, %v3091_v35, 0  ;;  %v7118_v24 = vmul.f32 %v7010_v36, %v431_v56  ;;  %v7120_v1 = vsel %vm4736_vm14, 0, %v4735_v31  ;;  %v2830_v50 = vadd.s32 1, %v7107_v14 }
 0x265   : > { %v3088_v39 = vand.u32 8388607, %v8890_v16  ;;  %v3095_v41 = vand.u32 31, %v3093_v48  ;;  %v2751_v15 = vcvt.s32.f32 %v2744_v4  ;;  %v4746_v58 = vmin.u32 %v2941_v32, %v7101_v30 }
 0x266   : > { %v2827_v59 = vmul.u32 %v2820_v26, %v2811_v10  ;;  %vm2829_vm11 = vc.u32 %v7112_v9, %v7106_v44  ;;  %v7128_v37 = vmul.f32 %v2442_v34, %v2440_v20  ;;  %v2622_v29 = vadd.s32 %v6975_v47, %v6982_v49 }
 0x267   : > { %v2831_v31 = vsel %vm2829_vm11, %v2830_v50, %v7107_v14  ;;  %v3096_v52 = vsub.s32 32, %v3095_v41  ;;  %v7133_v12 = vmul.f32 %v2751_v15, %v2749_v0  ;;  %v2638_v62 = vsub.s32 32, %v7120_v1 }
 0x268   : > { %v2832_v63 = vadd.s32 %v2831_v31, %v2827_v59  ;;  %v2642_v26 = vsub.s32 4294967266, %v7120_v1  ;;  %v3089_v18 = vor.u32 8388608, %v3088_v39  ;;  %v2943_v32 = vclz %v4746_v58 }
 0x269   : > { %v3099_v35 = vshrl.u32 %v8963_v46, %v3096_v52  ;;  %v3102_v56 = vshrl.u32 %v8964_v8, %v3096_v52  ;;  %v3098_v47 = vshll.u32 %v8966_v23, %v3095_v41  ;;  %v2981_v49 = vand.u32 2139095040, %v7118_v24 }
 0x26a   : > { %v2833_v45 = vadd.s32 536870912, %v2832_v63  ;;  %v3094_v14 = vshrl.u32 %v3093_v48, 5  ;;  %v3101_v20 = vshll.u32 %v8963_v46, %v3095_v41  ;;  %v3104_v10 = vshll.u32 %v8964_v8, %v3095_v41 }
 0x26b   : > { %v3105_v34 = vshrl.u32 %v8965_v19, %v3096_v52  ;;  %v3100_v50 = vor.u32 %v3099_v35, %v3098_v47  ;;  %v3107_v39 = vshll.u32 %v8965_v19, %v3095_v41  ;;  %v3108_v15 = vshrl.u32 %v8958_v2, %v3096_v52 }
 0x26c   : > { %v7145_v0 = vshrl.u32 %v2833_v45, 30  ;;  %v3103_v58 = vor.u32 %v3102_v56, %v3101_v20  ;;  %v3110_v31 = vshll.u32 %v8958_v2, %v3095_v41  ;;  %v3111_v16 = vshrl.u32 %v8959_v11, %v3096_v52 }
 0x26d   : > { %v3106_v59 = vor.u32 %v3105_v34, %v3104_v10  ;;  %v2639_v48 = vshll.u32 %v7045_v17, %v7120_v1  ;;  %v2640_v51 = vshrl.u32 %v2622_v29, %v2638_v62  ;;  %v3109_v13 = vor.u32 %v3108_v15, %v3107_v39 }
 0x26e   : > { %9027 = vst [vmem:[#allocation65_spill] sm:$0xff] %v7145_v0  ;;  %v2835_v4 = vshll.u32 %v7145_v0, 30  ;;  %vm8922_vm15 = vcmp.lt.s32.totalorder %v6679_v43, 0  ;;  %v2643_v35 = vadd.s32 127, %v2642_v26  ;;  %v4747_v45 = vadd.s32 4294967294, %v2943_v32 }
 0x26f   : > { %v3112_v47 = vor.u32 %v3111_v16, %v3110_v31  ;;  %v2982_v53 = vshrl.u32 %v2981_v49, 23  ;;  %v3097_v56 = vshrl.u32 %v8966_v23, %v3096_v52  ;;  %vm3113_vm3 = vcmp.lt.s32.totalorder %v3094_v14, 1 }
 0x270   : > { %vm3116_vm14 = vcmp.lt.s32.totalorder %v3094_v14, 4  ;;  %v3129_v41 = vshll.u32 %v3089_v18, 8  ;;  %vm3115_vm0 = vcmp.lt.s32.totalorder %v3094_v14, 3  ;;  %v3121_v10 = vsel %vm3113_vm3, %v3100_v50, %v3103_v58 }
 0x271   : > { %v3118_v20 = vsel %vm3116_vm14, %v3106_v59, 2102212464  ;;  %v3122_v17 = vsel %vm3116_vm14, %v3109_v13, 920167782  ;;  %vm8938_vm11 = vcmp.lt.s32.totalorder %v6751_v57, 0  ;;  %vm8908_vm2 = vcmp.lt.s32.totalorder %v6822_v27, 0 }
 0x272   : > { %v7159_v1 = vsub.s32 %v2832_v63, %v2835_v4  ;;  %vm3114_vm6 = vcmp.lt.s32.totalorder %v3094_v14, 2  ;;  %v3123_v16 = vsel %vm3115_vm0, %v3106_v59, %v3122_v17  ;;  %v3125_v29 = vsel %vm3113_vm3, %v3103_v58, %v3106_v59 }
 0x273   : > { %vm4748_vm9 = vcmp.lt.s32.totalorder %v4747_v45, 0  ;;  %v3124_v52 = vsel %vm3114_vm6, %v3121_v10, %v3123_v16  ;;  %v3126_v62 = vsel %vm3116_vm14, %v3112_v47, 1326507024  ;;  %v4749_v26 = vadd.s32 4294967169, %v2982_v53 }
 0x274   : > { %v2644_v18 = vshll.u32 %v2643_v35, 23  ;;  %v3117_v32 = vsel %vm3113_vm3, %v3097_v56, %v3100_v50  ;;  %v3119_v49 = vsel %vm3115_vm0, %v3103_v58, %v3118_v20  ;;  %v3127_v34 = vsel %vm3115_vm0, %v3109_v13, %v3126_v62  ;;  %v446_v35 = vpop.permute.xlu1 %445 }
 0x275   : > { %v3128_v63 = vsel %vm3114_vm6, %v3125_v29, %v3127_v34  ;;  %v7168_v4 = vmul.u32.u64.low %v3129_v41, %v3124_v52  ;;  %v7169_v39 = vmul.u32.u64.high %v3129_v41, %v3124_v52, %v7168_v4  ;;  %v2988_v15 = vadd.s32 1, %v4749_v26 }
 0x276   : > { %v7172_v59 = vsel %vm4748_vm9, 0, %v4747_v45  ;;  %v2838_v31 = vsub.s32 0, %v7159_v1  ;;  %v7175_v47 = vmul.u32.u64.low %v3129_v41, %v3128_v63  ;;  %v7176_v53 = vmul.u32.u64.high %v3129_v41, %v3128_v63, %v7175_v47 }
 0x277   : > { %v2444_v50 = vxor.u32 2147483648, %v7128_v37  ;;  %v2753_v58 = vxor.u32 2147483648, %v7133_v12  ;;  %v3120_v13 = vsel %vm3114_vm6, %v3117_v32, %v3119_v49  ;;  %vm2989_vm3 = vcmp.gt.s32.totalorder %v2988_v15, 0 }
 0x278   : > { %v9028_v56 = vxor.u32 2147483648, %v7063_v38  ;;  %v2641_v20 = vor.u32 %v2640_v51, %v2639_v48  ;;  %v2645_v10 = vor.u32 4788187, %v2644_v18  ;;  %v2990_v17 = vsel %vm2989_vm3, %v2988_v15, 0 }
 0x279   : > { %v2951_v16 = vsub.s32 4294967266, %v7172_v59  ;;  %v3139_v29 = vadd.s32 1, %v7169_v39  ;;  %v9030_v52 = vand.u32 2147483647, %v7118_v24  ;;  %v2992_v62 = vand.u32 31, %v2990_v17 }
 0x27a   : > { %v7186_v45 = vsel %vm8922_vm15, %v9028_v56, %v7063_v38  ;;  %v4742_v26 = vmin.u32 %v2838_v31, %v7159_v1  ;;  %v3136_v32 = vmul.u32 %v3129_v41, %v3120_v13  ;;  %vm3138_vm6 = vc.u32 %v7176_v53, %v7168_v4 }
 0x27b   : > { %9029 = vst [vmem:[#allocation66_spill] sm:$0xff] %v7186_v45  ;;  %v2985_v14 = vand.u32 8388607, %v9030_v52  ;;  %v7196_v38 = vmul.f32 %v7010_v36, %v446_v35  ;;  %v7201_v51 = vsel %vm8938_vm11, %v2444_v50, %v7128_v37  ;;  %v7206_v48 = vsel %vm8908_vm2, %v2753_v58, %v7133_v12 }
 0x27c   : > { %9031 = vst [vmem:[#allocation67_spill] sm:$0xff] %v7201_v51  ;;  %9032 = vst [vmem:[#allocation68_spill] sm:$0xff] %v7206_v48  ;;  %v3140_v18 = vsel %vm3138_vm6, %v3139_v29, %v7169_v39  ;;  %v2993_v49 = vsub.s32 32, %v2992_v62  ;;  %v2646_v41 = vand.u32 2147483647, %v2645_v10  ;;  %v2648_v34 = vcvt.s32.f32 %v2641_v20 }
 0x27d   : > { %v2931_v63 = vadd.s32 %v7050_v7, %v7061_v42  ;;  %v3141_v15 = vadd.s32 %v3140_v18, %v3136_v32  ;;  %v2952_v31 = vadd.s32 127, %v2951_v16  ;;  %v2986_v47 = vor.u32 8388608, %v2985_v14 }
 0x27e   : > { %v2996_v13 = vshrl.u32 %v8963_v46, %v2993_v49  ;;  %v2999_v37 = vshrl.u32 %v8964_v8, %v2993_v49  ;;  %v2840_v50 = vclz %v4742_v26  ;;  %v2995_v12 = vshll.u32 %v8966_v23, %v2992_v62 }
 0x27f   : > { %v3142_v35 = vadd.s32 536870912, %v3141_v15  ;;  %v3290_v58 = vand.u32 2139095040, %v7196_v38  ;;  %v2991_v39 = vshrl.u32 %v2990_v17, 5  ;;  %v2998_v56 = vshll.u32 %v8963_v46, %v2992_v62 }
 0x280   : > { %v3001_v20 = vshll.u32 %v8964_v8, %v2992_v62  ;;  %v3002_v7 = vshrl.u32 %v8965_v19, %v2993_v49  ;;  %v2997_v10 = vor.u32 %v2996_v13, %v2995_v12  ;;  %v3004_v16 = vshll.u32 %v8965_v19, %v2992_v62 }
 0x281   : > { %v7218_v42 = vshrl.u32 %v3142_v35, 30  ;;  %v3005_v29 = vshrl.u32 %v8958_v2, %v2993_v49  ;;  %v3000_v52 = vor.u32 %v2999_v37, %v2998_v56  ;;  %v3007_v26 = vshll.u32 %v8958_v2, %v2992_v62 }
 0x282   : > { %v3003_v14 = vor.u32 %v3002_v7, %v3001_v20  ;;  %v3008_v32 = vshrl.u32 %v8959_v11, %v2993_v49  ;;  %v7224_v17 = vmul.f32 %v2648_v34, %v2646_v41  ;;  %v2947_v18 = vsub.s32 32, %v7172_v59 }
 0x283   : > { %9033 = vst [vmem:[#allocation69_spill] sm:$0xff] %v7218_v42  ;;  %v3144_v0 = vshll.u32 %v7218_v42, 30  ;;  %v3006_v48 = vor.u32 %v3005_v29, %v3004_v16  ;;  %v2953_v35 = vshll.u32 %v2952_v31, 23  ;;  %v4743_v27 = vadd.s32 4294967294, %v2840_v50 }
 0x284   : > { %v3009_v13 = vor.u32 %v3008_v32, %v3007_v26  ;;  %v3291_v12 = vshrl.u32 %v3290_v58, 23  ;;  %v2994_v45 = vshrl.u32 %v8966_v23, %v2993_v49  ;;  %vm3010_vm9 = vcmp.lt.s32.totalorder %v2991_v39, 1 }
 0x285   : > { %vm3013_vm14 = vcmp.lt.s32.totalorder %v2991_v39, 4  ;;  %v3026_v37 = vshll.u32 %v2986_v47, 8  ;;  %vm3012_vm0 = vcmp.lt.s32.totalorder %v2991_v39, 3  ;;  %v3018_v56 = vsel %vm3010_vm9, %v2997_v10, %v3000_v52 }
 0x286   : > { %v3015_v62 = vsel %vm3013_vm14, %v3003_v14, 2102212464  ;;  %v3019_v20 = vsel %vm3013_vm14, %v3006_v48, 920167782  ;;  %v7229_v41 = vsub.s32 %v3141_v15, %v3144_v0  ;;  %vm3011_vm3 = vcmp.lt.s32.totalorder %v2991_v39, 2  ;;  %v441_v15 = vpop.permute.xlu0 %440 }
 0x287   : > { %v3020_v34 = vsel %vm3012_vm0, %v3003_v14, %v3019_v20  ;;  %v3022_v7 = vsel %vm3010_vm9, %v3000_v52, %v3003_v14  ;;  %vm4744_vm6 = vcmp.lt.s32.totalorder %v4743_v27, 0  ;;  %v3023_v50 = vsel %vm3013_vm14, %v3009_v13, 1326507024 }
 0x288   : > { %v3021_v31 = vsel %vm3011_vm3, %v3018_v56, %v3020_v34  ;;  %v4761_v16 = vadd.s32 4294967169, %v3291_v12  ;;  %v3014_v58 = vsel %vm3010_vm9, %v2994_v45, %v2997_v10  ;;  %v3016_v29 = vsel %vm3012_vm0, %v3000_v52, %v3015_v62 }
 0x289   : > { %v3024_v49 = vsel %vm3012_vm0, %v3006_v48, %v3023_v50  ;;  %v8903_v26 = vand.u32 2147483647, %v7196_v38  ;;  %v7234_v32 = vmul.u32.u64.low %v3026_v37, %v3021_v31  ;;  %v7235_v42 = vmul.u32.u64.high %v3026_v37, %v3021_v31, %v7234_v32 }
 0x28a   : > { %v3025_v47 = vsel %vm3011_vm3, %v3022_v7, %v3024_v49  ;;  %v3297_v0 = vadd.s32 1, %v4761_v16  ;;  %v7238_v20 = vsel %vm4744_vm6, 0, %v4743_v27  ;;  %v3147_v14 = vsub.s32 0, %v7229_v41 }
 0x28b   : > { %v7241_v56 = vmul.u32.u64.low %v3026_v37, %v3025_v47  ;;  %v7242_v13 = vmul.u32.u64.high %v3026_v37, %v3025_v47, %v7241_v56  ;;  %v2949_v45 = vshrl.u32 %v2931_v63, %v2947_v18  ;;  %v7244_v10 = vor.u32 4788187, %v2953_v35 }
 0x28c   : > { %v3017_v48 = vsel %vm3011_vm3, %v3014_v58, %v3016_v29  ;;  %vm3298_vm9 = vcmp.gt.s32.totalorder %v3297_v0, 0  ;;  %v2948_v12 = vshll.u32 %v7101_v30, %v7172_v59  ;;  %v7251_v27 = vmul.f32 %v7010_v36, %v441_v15 }
 0x28d   : > { %v3299_v62 = vsel %vm3298_vm9, %v3297_v0, 0  ;;  %v2848_v34 = vsub.s32 4294967266, %v7238_v20  ;;  %v3036_v7 = vadd.s32 1, %v7235_v42  ;;  %v3294_v63 = vand.u32 8388607, %v8903_v26 }
 0x28e   : > { %v3301_v18 = vand.u32 31, %v3299_v62  ;;  %v2828_v39 = vadd.s32 %v7106_v44, %v7112_v9  ;;  %v4754_v35 = vmin.u32 %v3147_v14, %v7229_v41  ;;  %v3033_v31 = vmul.u32 %v3026_v37, %v3017_v48 }
 0x28f   : > { %vm3035_vm14 = vc.u32 %v7242_v13, %v7234_v32  ;;  %v7262_v30 = vor.u32 %v2949_v45, %v2948_v12  ;;  %v2844_v58 = vsub.s32 32, %v7238_v20  ;;  %v2845_v29 = vshll.u32 %v7159_v1, %v7238_v20 }
 0x290   : > { %v3037_v50 = vsel %vm3035_vm14, %v3036_v7, %v7235_v42  ;;  %v3302_v16 = vsub.s32 32, %v3301_v18  ;;  %v2849_v9 = vadd.s32 127, %v2848_v34  ;;  %v3295_v37 = vor.u32 8388608, %v3294_v63 }
 0x291   : > { %v3038_v49 = vadd.s32 %v3037_v50, %v3033_v31  ;;  %v3149_v15 = vclz %v4754_v35  ;;  %v3304_v56 = vshll.u32 %v8966_v23, %v3301_v18  ;;  %v3187_v42 = vand.u32 2139095040, %v7251_v27 }
 0x292   : > { %v3305_v47 = vshrl.u32 %v8963_v46, %v3302_v16  ;;  %v3308_v0 = vshrl.u32 %v8964_v8, %v3302_v16  ;;  %v3300_v45 = vshrl.u32 %v3299_v62, 5  ;;  %v3307_v48 = vshll.u32 %v8963_v46, %v3301_v18 }
 0x293   : > { %v3039_v14 = vadd.s32 536870912, %v3038_v49  ;;  %v3310_v1 = vshll.u32 %v8964_v8, %v3301_v18  ;;  %v3311_v20 = vshrl.u32 %v8965_v19, %v3302_v16  ;;  %v3313_v7 = vshll.u32 %v8965_v19, %v3301_v18 }
 0x294   : > { %v3306_v34 = vor.u32 %v3305_v47, %v3304_v56  ;;  %v3314_v63 = vshrl.u32 %v8958_v2, %v3302_v16  ;;  %v3309_v35 = vor.u32 %v3308_v0, %v3307_v48  ;;  %v3316_v50 = vshll.u32 %v8958_v2, %v3301_v18 }
 0x295   : > { %v7277_v12 = vshrl.u32 %v3039_v14, 30  ;;  %v3312_v31 = vor.u32 %v3311_v20, %v3310_v1  ;;  %v3317_v26 = vshrl.u32 %v8959_v11, %v3302_v16  ;;  %v2846_v62 = vshrl.u32 %v2828_v39, %v2844_v58 }
 0x296   : > { %v2850_v59 = vshll.u32 %v2849_v9, 23  ;;  %v3315_v44 = vor.u32 %v3314_v63, %v3313_v7  ;;  %v4755_v43 = vadd.s32 4294967294, %v3149_v15  ;;  %v3335_v14 = vshll.u32 %v3295_v37, 8 }
 0x297   : > { %9034 = vst [vmem:[#allocation70_spill] sm:$0xff] %v7277_v12  ;;  %v3041_v52 = vshll.u32 %v7277_v12, 30  ;;  %v3318_v51 = vor.u32 %v3317_v26, %v3316_v50  ;;  %v3188_v57 = vshrl.u32 %v3187_v42, 23  ;;  %vm8921_vm0 = vcmp.lt.s32.totalorder %v6884_v5, 0 }
 0x298   : > { %v3303_v0 = vshrl.u32 %v8966_v23, %v3302_v16  ;;  %vm3319_vm3 = vcmp.lt.s32.totalorder %v3300_v45, 1  ;;  %vm3322_vm6 = vcmp.lt.s32.totalorder %v3300_v45, 4  ;;  %vm3321_vm9 = vcmp.lt.s32.totalorder %v3300_v45, 3 }
 0x299   : > { %v7285_v47 = vsub.s32 %v3038_v49, %v3041_v52  ;;  %v3324_v18 = vsel %vm3322_vm6, %v3312_v31, 2102212464  ;;  %v3327_v56 = vsel %vm3319_vm3, %v3306_v34, %v3309_v35  ;;  %v3328_v39 = vsel %vm3322_vm6, %v3315_v44, 920167782 }
 0x29a   : > { %vm3320_vm14 = vcmp.lt.s32.totalorder %v3300_v45, 2  ;;  %v3329_v9 = vsel %vm3321_vm9, %v3312_v31, %v3328_v39  ;;  %v3331_v15 = vsel %vm3319_vm3, %v3309_v35, %v3312_v31  ;;  %vm4756_vm2 = vcmp.lt.s32.totalorder %v4755_v43, 0 }
 0x29b   : > { %v3044_v58 = vsub.s32 0, %v7285_v47  ;;  %v3330_v26 = vsel %vm3320_vm14, %v3327_v56, %v3329_v9  ;;  %v3332_v37 = vsel %vm3322_vm6, %v3318_v51, 1326507024  ;;  %v4757_v42 = vadd.s32 4294967169, %v3188_v57 }
 0x29c   : > { %v3323_v49 = vsel %vm3319_vm3, %v3303_v0, %v3306_v34  ;;  %v3325_v16 = vsel %vm3321_vm9, %v3309_v35, %v3324_v18  ;;  %v3333_v48 = vsel %vm3321_vm9, %v3315_v44, %v3332_v37  ;;  %v7296_v50 = vsel %vm4756_vm2, 0, %v4755_v43  ;;  %v456_v44 = vpop.permute.xlu1 %455 }
 0x29d   : > { %v4750_v52 = vmin.u32 %v3044_v58, %v7285_v47  ;;  %v3334_v1 = vsel %vm3320_vm14, %v3331_v15, %v3333_v48  ;;  %v7292_v20 = vmul.u32.u64.low %v3335_v14, %v3330_v26  ;;  %v7293_v7 = vmul.u32.u64.high %v3335_v14, %v3330_v26, %v7292_v20 }
 0x29e   : > { %v3194_v63 = vadd.s32 1, %v4757_v42  ;;  %v7298_v39 = vmul.u32.u64.low %v3335_v14, %v3334_v1  ;;  %v7299_v12 = vmul.u32.u64.high %v3335_v14, %v3334_v1, %v7298_v39  ;;  %v2957_v57 = vcvt.s32.f32 %v7262_v30 }
 0x29f   : > { %v3046_v31 = vclz %v4750_v52  ;;  %v7302_v51 = vor.u32 %v2846_v62, %v2845_v29  ;;  %v3326_v34 = vsel %vm3320_vm14, %v3323_v49, %v3325_v16  ;;  %v7305_v35 = vor.u32 4788187, %v2850_v59 }
 0x2a0   : > { %vm3195_vm3 = vcmp.gt.s32.totalorder %v3194_v63, 0  ;;  %v9035_v18 = vand.u32 2147483647, %v7251_v27  ;;  %v9036_v58 = vxor.u32 2147483648, %v7224_v17  ;;  %v3157_v30 = vsub.s32 4294967266, %v7296_v50 }
 0x2a1   : > { %v4751_v0 = vadd.s32 4294967294, %v3046_v31  ;;  %v3196_v43 = vsel %vm3195_vm3, %v3194_v63, 0  ;;  %v3345_v29 = vadd.s32 1, %v7293_v7  ;;  %v9038_v59 = vand.u32 2147483647, %v7244_v10 }
 0x2a2   : > { %v3191_v56 = vand.u32 8388607, %v9035_v18  ;;  %v7314_v9 = vsel %vm8921_vm0, %v9036_v58, %v7224_v17  ;;  %v3198_v45 = vand.u32 31, %v3196_v43  ;;  %v3342_v15 = vmul.u32 %v3335_v14, %v3326_v34 }
 0x2a3   : > { %9037 = vst [vmem:[#allocation71_spill] sm:$0xff] %v7314_v9  ;;  %v7320_v62 = vmul.f32 %v2957_v57, %v9038_v59  ;;  %vm3344_vm2 = vc.u32 %v7299_v12, %v7292_v20  ;;  %v7325_v26 = vmul.f32 %v7010_v36, %v456_v44  ;;  %v3137_v17 = vadd.s32 %v7168_v4, %v7176_v53 }
 0x2a4   : > { %v3346_v42 = vsel %vm3344_vm2, %v3345_v29, %v7293_v7  ;;  %v3199_v52 = vsub.s32 32, %v3198_v45  ;;  %vm4752_vm6 = vcmp.lt.s32.totalorder %v4751_v0, 0  ;;  %v3192_v16 = vor.u32 8388608, %v3191_v56 }
 0x2a5   : > { %v3347_v10 = vadd.s32 %v3346_v42, %v3342_v15  ;;  %v3153_v14 = vsub.s32 32, %v7296_v50  ;;  %v3158_v48 = vadd.s32 127, %v3157_v30  ;;  %v3197_v39 = vshrl.u32 %v3196_v43, 5 }
 0x2a6   : > { %v3202_v1 = vshrl.u32 %v8963_v46, %v3199_v52  ;;  %v3205_v63 = vshrl.u32 %v8964_v8, %v3199_v52  ;;  %v3201_v57 = vshll.u32 %v8966_v23, %v3198_v45  ;;  %v3496_v4 = vand.u32 2139095040, %v7325_v26 }
 0x2a7   : > { %v3348_v31 = vadd.s32 536870912, %v3347_v10  ;;  %v7337_v53 = vsel %vm4752_vm6, 0, %v4751_v0  ;;  %v3204_v7 = vshll.u32 %v8963_v46, %v3198_v45  ;;  %v3207_v34 = vshll.u32 %v8964_v8, %v3198_v45 }
 0x2a8   : > { %v3208_v44 = vshrl.u32 %v8965_v19, %v3199_v52  ;;  %v3203_v56 = vor.u32 %v3202_v1, %v3201_v57  ;;  %v3210_v58 = vshll.u32 %v8965_v19, %v3198_v45  ;;  %v3211_v30 = vshrl.u32 %v8958_v2, %v3199_v52 }
 0x2a9   : > { %v7342_v18 = vshrl.u32 %v3348_v31, 30  ;;  %v3206_v43 = vor.u32 %v3205_v63, %v3204_v7  ;;  %v3213_v59 = vshll.u32 %v8958_v2, %v3198_v45  ;;  %v3214_v0 = vshrl.u32 %v8959_v11, %v3199_v52 }
 0x2aa   : > { %v3209_v29 = vor.u32 %v3208_v44, %v3207_v34  ;;  %v3154_v15 = vshll.u32 %v7229_v41, %v7296_v50  ;;  %v3155_v42 = vshrl.u32 %v3137_v17, %v3153_v14  ;;  %v3212_v49 = vor.u32 %v3211_v30, %v3210_v58 }
 0x2ab   : > { %9039 = vst [vmem:[#allocation72_spill] sm:$0xff] %v7342_v18  ;;  %v3350_v37 = vshll.u32 %v7342_v18, 30  ;;  %v3159_v31 = vshll.u32 %v3158_v48, 23  ;;  %v3054_v1 = vsub.s32 4294967266, %v7337_v53  ;;  %v3215_v57 = vor.u32 %v3214_v0, %v3213_v59 }
 0x2ac   : > { %v3497_v9 = vshrl.u32 %v3496_v4, 23  ;;  %v3200_v63 = vshrl.u32 %v8966_v23, %v3199_v52  ;;  %vm3216_vm9 = vcmp.lt.s32.totalorder %v3197_v39, 1  ;;  %vm3219_vm14 = vcmp.lt.s32.totalorder %v3197_v39, 4 }
 0x2ad   : > { %v7352_v5 = vsub.s32 %v3347_v10, %v3350_v37  ;;  %vm3218_vm3 = vcmp.lt.s32.totalorder %v3197_v39, 3  ;;  %v3221_v45 = vsel %vm3219_vm14, %v3209_v29, 2102212464  ;;  %v3224_v7 = vsel %vm3216_vm9, %v3203_v56, %v3206_v43 }
 0x2ae   : > { %v3225_v34 = vsel %vm3219_vm14, %v3212_v49, 920167782  ;;  %vm3217_vm2 = vcmp.lt.s32.totalorder %v3197_v39, 2  ;;  %v3228_v17 = vsel %vm3216_vm9, %v3206_v43, %v3209_v29  ;;  %v3229_v48 = vsel %vm3219_vm14, %v3215_v57, 1326507024 }
 0x2af   : > { %v3353_v41 = vsub.s32 0, %v7352_v5  ;;  %v3226_v50 = vsel %vm3218_vm3, %v3209_v29, %v3225_v34  ;;  %v3232_v44 = vshll.u32 %v3192_v16, 8  ;;  %v4769_v4 = vadd.s32 4294967169, %v3497_v9 }
 0x2b0   : > { %v3227_v14 = vsel %vm3217_vm2, %v3224_v7, %v3226_v50  ;;  %v3220_v10 = vsel %vm3216_vm9, %v3200_v63, %v3203_v56  ;;  %v3222_v52 = vsel %vm3218_vm3, %v3206_v43, %v3221_v45  ;;  %v3230_v58 = vsel %vm3218_vm3, %v3212_v49, %v3229_v48  ;;  %v451_v49 = vpop.permute.xlu0 %450 }
 0x2b1   : > { %v4762_v37 = vmin.u32 %v3353_v41, %v7352_v5  ;;  %v3231_v30 = vsel %vm3217_vm2, %v3228_v17, %v3230_v58  ;;  %v7359_v59 = vmul.u32.u64.low %v3232_v44, %v3227_v14  ;;  %v7360_v0 = vmul.u32.u64.high %v3232_v44, %v3227_v14, %v7359_v59 }
 0x2b2   : > { %v3503_v18 = vadd.s32 1, %v4769_v4  ;;  %v3055_v22 = vadd.s32 127, %v3054_v1  ;;  %v7363_v29 = vmul.u32.u64.low %v3232_v44, %v3231_v30  ;;  %v7364_v33 = vmul.u32.u64.high %v3232_v44, %v3231_v30, %v7363_v29 }
 0x2b3   : > { %v3355_v34 = vclz %v4762_v37  ;;  %v7367_v9 = vor.u32 %v3155_v42, %v3154_v15  ;;  %v3223_v56 = vsel %vm3217_vm2, %v3220_v10, %v3222_v52  ;;  %v9040_v43 = vand.u32 2147483647, %v7305_v35 }
 0x2b4   : > { %vm3504_vm6 = vcmp.gt.s32.totalorder %v3503_v18, 0  ;;  %v9041_v57 = vcvt.s32.f32 %v7302_v51  ;;  %v7376_v45 = vor.u32 4788187, %v3159_v31  ;;  %v8917_v1 = vand.u32 2147483647, %v7325_v26 }
 0x2b5   : > { %v3505_v7 = vsel %vm3504_vm6, %v3503_v18, 0  ;;  %v3050_v41 = vsub.s32 32, %v7337_v53  ;;  %v4763_v50 = vadd.s32 4294967294, %v3355_v34  ;;  %v3242_v15 = vadd.s32 1, %v7360_v0 }
 0x2b6   : > { %v7374_v63 = vmul.f32 %v9041_v57, %v9040_v43  ;;  %v3507_v39 = vand.u32 31, %v3505_v7  ;;  %v3056_v42 = vshll.u32 %v3055_v22, 23  ;;  %v3239_v17 = vmul.u32 %v3232_v44, %v3223_v56 }
 0x2b7   : > { %vm3241_vm9 = vc.u32 %v7364_v33, %v7359_v59  ;;  %v7384_v51 = vmul.f32 %v7010_v36, %v451_v49  ;;  %v3034_v31 = vadd.s32 %v7234_v32, %v7242_v13  ;;  %v3161_v48 = vand.u32 2147483647, %v7376_v45 }
 0x2b8   : > { %v3243_v18 = vsel %vm3241_vm9, %v3242_v15, %v7360_v0  ;;  %v3508_v14 = vsub.s32 32, %v3507_v39  ;;  %v3051_v22 = vshll.u32 %v7285_v47, %v7337_v53  ;;  %v3500_v4 = vand.u32 8388607, %v8917_v1 }
 0x2b9   : > { %v3244_v44 = vadd.s32 %v3243_v18, %v3239_v17  ;;  %v3052_v37 = vshrl.u32 %v3034_v31, %v3050_v41  ;;  %vm4764_vm14 = vcmp.lt.s32.totalorder %v4763_v50, 0  ;;  %v3057_v52 = vor.u32 4788187, %v3056_v42 }
 0x2ba   : > { %v3511_v36 = vshrl.u32 %v8963_v46, %v3508_v14  ;;  %v3514_v10 = vshrl.u32 %v8964_v8, %v3508_v14  ;;  %v3510_v13 = vshll.u32 %v8966_v23, %v3507_v39  ;;  %v3393_v58 = vand.u32 2139095040, %v7384_v51 }
 0x2bb   : > { %v3245_v32 = vadd.s32 536870912, %v3244_v44  ;;  %v3506_v30 = vshrl.u32 %v3505_v7, 5  ;;  %v3513_v0 = vshll.u32 %v8963_v46, %v3507_v39  ;;  %v3516_v47 = vshll.u32 %v8964_v8, %v3507_v39 }
 0x2bc   : > { %v3517_v53 = vshrl.u32 %v8965_v19, %v3508_v14  ;;  %v7402_v34 = vsel %vm4764_vm14, 0, %v4763_v50  ;;  %v3512_v29 = vor.u32 %v3511_v36, %v3510_v13  ;;  %v3519_v56 = vshll.u32 %v8965_v19, %v3507_v39 }
 0x2bd   : > { %v3520_v49 = vshrl.u32 %v8958_v2, %v3508_v14  ;;  %v3515_v43 = vor.u32 %v3514_v10, %v3513_v0  ;;  %v3522_v45 = vshll.u32 %v8958_v2, %v3507_v39  ;;  %v3523_v41 = vshrl.u32 %v8959_v11, %v3508_v14 }
 0x2be   : > { %v3518_v57 = vor.u32 %v3517_v53, %v3516_v47  ;;  %vm8920_vm3 = vcmp.lt.s32.totalorder %v6934_v55, 0  ;;  %v3053_v7 = vor.u32 %v3052_v37, %v3051_v22  ;;  %v7409_v15 = vshrl.u32 %v3245_v32, 30 }
 0x2bf   : > { %v3521_v42 = vor.u32 %v3520_v49, %v3519_v56  ;;  %v3058_v17 = vand.u32 2147483647, %v3057_v52  ;;  %v3501_v31 = vor.u32 8388608, %v3500_v4  ;;  %v3524_v18 = vor.u32 %v3523_v41, %v3522_v45 }
 0x2c0   : > { %9042 = vst [vmem:[#allocation73_spill] sm:$0xff] %v7409_v15  ;;  %v3394_v36 = vshrl.u32 %v3393_v58, 23  ;;  %v3363_v13 = vsub.s32 4294967266, %v7402_v34  ;;  %v3509_v10 = vshrl.u32 %v8966_v23, %v3508_v14  ;;  %vm3525_vm2 = vcmp.lt.s32.totalorder %v3506_v30, 1 }
 0x2c1   : > { %vm3528_vm6 = vcmp.lt.s32.totalorder %v3506_v30, 4  ;;  %vm3527_vm9 = vcmp.lt.s32.totalorder %v3506_v30, 3  ;;  %v3533_v0 = vsel %vm3525_vm2, %v3512_v29, %v3515_v43  ;;  %v3247_v22 = vshll.u32 %v7409_v15, 30 }
 0x2c2   : > { %v3530_v39 = vsel %vm3528_vm6, %v3518_v57, 2102212464  ;;  %v3534_v47 = vsel %vm3528_vm6, %v3521_v42, 920167782  ;;  %vm3526_vm14 = vcmp.lt.s32.totalorder %v3506_v30, 2  ;;  %v3537_v32 = vsel %vm3525_vm2, %v3515_v43, %v3518_v57 }
 0x2c3   : > { %v3535_v37 = vsel %vm3527_vm9, %v3518_v57, %v3534_v47  ;;  %v3538_v4 = vsel %vm3528_vm6, %v3524_v18, 1326507024  ;;  %v3541_v53 = vshll.u32 %v3501_v31, 8  ;;  %v4765_v58 = vadd.s32 4294967169, %v3394_v36 }
 0x2c4   : > { %v3536_v52 = vsel %vm3526_vm14, %v3533_v0, %v3535_v37  ;;  %v3364_v56 = vadd.s32 127, %v3363_v13  ;;  %v3529_v49 = vsel %vm3525_vm2, %v3509_v10, %v3512_v29  ;;  %v3531_v45 = vsel %vm3527_vm9, %v3515_v43, %v3530_v39 }
 0x2c5   : > { %v3539_v14 = vsel %vm3527_vm9, %v3521_v42, %v3538_v4  ;;  %v7417_v1 = vmul.u32.u64.low %v3541_v53, %v3536_v52  ;;  %v7418_v50 = vmul.u32.u64.high %v3541_v53, %v3536_v52, %v7417_v1  ;;  %v3400_v35 = vadd.s32 1, %v4765_v58 }
 0x2c6   : > { %v3540_v41 = vsel %vm3526_vm14, %v3537_v32, %v3539_v14  ;;  %v3060_v16 = vcvt.s32.f32 %v3053_v7  ;;  %v7421_v15 = vsub.s32 %v3244_v44, %v3247_v22  ;;  %v9043_v31 = vxor.u32 2147483648, %v7320_v62  ;;  %v466_v7 = vpop.permute.xlu1 %465 }
 0x2c7   : > { %v7423_v57 = vmul.u32.u64.low %v3541_v53, %v3540_v41  ;;  %v7424_v47 = vmul.u32.u64.high %v3541_v53, %v3540_v41, %v7423_v57  ;;  %v9044_v43 = vcvt.s32.f32 %v7367_v9  ;;  %v3532_v18 = vsel %vm3526_vm14, %v3529_v49, %v3531_v45 }
 0x2c8   : > { %v7431_v29 = vsel %vm8920_vm3, %v9043_v31, %v7320_v62  ;;  %vm3401_vm2 = vcmp.gt.s32.totalorder %v3400_v35, 0  ;;  %v2856_v44 = vxor.u32 2147483648, %v7374_v63  ;;  %v7439_v36 = vmul.f32 %v3060_v16, %v3058_v17  ;;  %v7451_v16 = vld [vmem:[%s8776_s2] ss:$0 sm:$0xff] }
 0x2c9   : > { %v7435_v42 = vmul.f32 %v9044_v43, %v3161_v48  ;;  %v9045_v13 = vand.u32 2147483647, %v7384_v51  ;;  %v3402_v39 = vsel %vm3401_vm2, %v3400_v35, 0  ;;  %v3359_v0 = vsub.s32 32, %v7402_v34 }
 0x2ca   : > { %v3365_v62 = vshll.u32 %v3364_v56, 23  ;;  %v3551_v22 = vadd.s32 1, %v7418_v50  ;;  %v3404_v9 = vand.u32 31, %v3402_v39  ;;  %v3250_v48 = vsub.s32 0, %v7421_v15 }
 0x2cb   : > { %v3397_v10 = vand.u32 8388607, %v9045_v13  ;;  %v3548_v30 = vmul.u32 %v3541_v53, %v3532_v18  ;;  %vm3550_vm6 = vc.u32 %v7424_v47, %v7417_v1  ;;  %v7454_v17 = vmul.f32 %v7451_v16, %v466_v7 }
 0x2cc   : > { %v3343_v37 = vadd.s32 %v7292_v20, %v7299_v12  ;;  %v3552_v32 = vsel %vm3550_vm6, %v3551_v22, %v7418_v50  ;;  %v3405_v52 = vsub.s32 32, %v3404_v9  ;;  %v3360_v53 = vshll.u32 %v7352_v5, %v7402_v34 }
 0x2cd   : > { %v3553_v58 = vadd.s32 %v3552_v32, %v3548_v30  ;;  %v3398_v56 = vor.u32 8388608, %v3397_v10  ;;  %v7463_v45 = vor.u32 4788187, %v3365_v62  ;;  %v4758_v57 = vmin.u32 %v3250_v48, %v7421_v15 }
 0x2ce   : > { %v3361_v49 = vshrl.u32 %v3343_v37, %v3359_v0  ;;  %v3408_v14 = vshrl.u32 %v8963_v46, %v3405_v52  ;;  %v3411_v41 = vshrl.u32 %v8964_v8, %v3405_v52  ;;  %v3407_v20 = vshll.u32 %v8966_v23, %v3404_v9 }
 0x2cf   : > { %v3554_v12 = vadd.s32 536870912, %v3553_v58  ;;  %v3702_v50 = vand.u32 2139095040, %v7454_v17  ;;  %v3403_v31 = vshrl.u32 %v3402_v39, 5  ;;  %v3410_v43 = vshll.u32 %v8963_v46, %v3404_v9 }
 0x2d0   : > { %v3413_v5 = vshll.u32 %v8964_v8, %v3404_v9  ;;  %v3414_v34 = vshrl.u32 %v8965_v19, %v3405_v52  ;;  %v3409_v7 = vor.u32 %v3408_v14, %v3407_v20  ;;  %v3416_v13 = vshll.u32 %v8965_v19, %v3404_v9 }
 0x2d1   : > { %v7473_v18 = vshrl.u32 %v3554_v12, 30  ;;  %v3417_v10 = vshrl.u32 %v8958_v2, %v3405_v52  ;;  %v3412_v0 = vor.u32 %v3411_v41, %v3410_v43  ;;  %v3419_v22 = vshll.u32 %v8958_v2, %v3404_v9 }
 0x2d2   : > { %v3415_v62 = vor.u32 %v3414_v34, %v3413_v5  ;;  %v3420_v48 = vshrl.u32 %v8959_v11, %v3405_v52  ;;  %v3362_v39 = vor.u32 %v3361_v49, %v3360_v53  ;;  %v3367_v30 = vand.u32 2147483647, %v7463_v45 }
 0x2d3   : > { %9046 = vst [vmem:[#allocation74_spill] sm:$0xff] %v7473_v18  ;;  %v3556_v37 = vshll.u32 %v7473_v18, 30  ;;  %v3418_v32 = vor.u32 %v3417_v10, %v3416_v13  ;;  %v3252_v4 = vclz %v4758_v57  ;;  %v7481_v35 = vshll.u32 %v3398_v56, 8 }
 0x2d4   : > { %v3421_v12 = vor.u32 %v3420_v48, %v3419_v22  ;;  %v3703_v14 = vshrl.u32 %v3702_v50, 23  ;;  %vm8937_vm9 = vcmp.lt.s32.totalorder %v7013_v21, 0  ;;  %v3406_v41 = vshrl.u32 %v8966_v23, %v3405_v52  ;;  %v461_v22 = vpop.permute.xlu0 %460  ;;  %v3836_v48 = vld [vmem:[%s8778_s4] sm:$0xff] }
 0x2d5   : > { %v7484_v20 = vsub.s32 %v3553_v58, %v3556_v37  ;;  %vm3422_vm14 = vcmp.lt.s32.totalorder %v3403_v31, 1  ;;  %vm3425_vm2 = vcmp.lt.s32.totalorder %v3403_v31, 4  ;;  %vm3424_vm6 = vcmp.lt.s32.totalorder %v3403_v31, 3 }
 0x2d6   : > { %v3427_v9 = vsel %vm3425_vm2, %v3415_v62, 2102212464  ;;  %v3430_v53 = vsel %vm3422_vm14, %v3409_v7, %v3412_v0  ;;  %v3431_v49 = vsel %vm3425_vm2, %v3418_v32, 920167782  ;;  %vm8926_vm3 = vcmp.lt.s32.totalorder %v7075_v60, 0 }
 0x2d7   : > { %vm8927_vm0 = vcmp.lt.s32.totalorder %v7118_v24, 0  ;;  %v3559_v56 = vsub.s32 0, %v7484_v20  ;;  %vm3423_vm15 = vcmp.lt.s32.totalorder %v3403_v31, 2  ;;  %v3432_v45 = vsel %vm3424_vm6, %v3415_v62, %v3431_v49 }
 0x2d8   : > { %v3434_v58 = vsel %vm3422_vm14, %v3412_v0, %v3415_v62  ;;  %v4759_v57 = vadd.s32 4294967294, %v3252_v4  ;;  %v3433_v52 = vsel %vm3423_vm15, %v3430_v53, %v3432_v45  ;;  %v3435_v50 = vsel %vm3425_vm2, %v3421_v12, 1326507024 }
 0x2d9   : > { %v4777_v43 = vadd.s32 4294967169, %v3703_v14  ;;  %v3426_v5 = vsel %vm3422_vm14, %v3406_v41, %v3409_v7  ;;  %v3428_v34 = vsel %vm3424_vm6, %v3412_v0, %v3427_v9  ;;  %v3436_v13 = vsel %vm3424_vm6, %v3418_v32, %v3435_v50  ;;  %v3837_v7 = vld [vmem:[%s8778_s4 + $0x8] sm:$0xff]  ;;  %v3834_v0 = vld [vmem:[%s8777_s3] sm:$0xff] }
 0x2da   : > { %v8923_v10 = vand.u32 2147483647, %v7454_v17  ;;  %v3437_v62 = vsel %vm3423_vm15, %v3434_v58, %v3436_v13  ;;  %v7503_v4 = vmul.u32.u64.low %v7481_v35, %v3433_v52  ;;  %v7504_v37 = vmul.u32.u64.high %v7481_v35, %v3433_v52, %v7503_v4  ;;  %v3835_v32 = vld [vmem:[%s8777_s3 + $0x8] sm:$0xff] }
 0x2db   : > { %v3709_v12 = vadd.s32 1, %v4777_v43  ;;  %v3369_v14 = vcvt.s32.f32 %v3362_v39  ;;  %v4770_v41 = vmin.u32 %v3559_v56, %v7484_v20  ;;  %vm4760_vm14 = vcmp.lt.s32.totalorder %v4759_v57, 0 }
 0x2dc   : > { %v7518_v9 = vmul.u32.u64.low %v7481_v35, %v3437_v62  ;;  %v7519_v53 = vmul.u32.u64.high %v7481_v35, %v3437_v62, %v7518_v9  ;;  %v3429_v49 = vsel %vm3423_vm15, %v3426_v5, %v3428_v34  ;;  %v7523_v45 = vmul.f32 %v7451_v16, %v461_v22 }
 0x2dd   : > { %vm3710_vm2 = vcmp.gt.s32.totalorder %v3709_v12, 0  ;;  %v7525_v58 = vmul.f32 %v3369_v14, %v3367_v30  ;;  %v5030_v50 = vpack.c.bf16 %v3837_v7, %v3836_v48  ;;  %v5038_v43 = vpack.c.bf16 %v3835_v32, %v3834_v0 }
 0x2de   : > { %v3711_v52 = vsel %vm3710_vm2, %v3709_v12, 0  ;;  %v7532_v39 = vsel %vm8937_vm9, %v2856_v44, %v7374_v63  ;;  %v3448_v56 = vadd.s32 1, %v7504_v37  ;;  %v3706_v31 = vand.u32 8388607, %v8923_v10 }
 0x2df   : > { %v3713_v5 = vand.u32 31, %v3711_v52  ;;  %v7537_v16 = vsel %vm4760_vm14, 0, %v4759_v57  ;;  %v3561_v30 = vclz %v4770_v41  ;;  %v3445_v34 = vmul.u32 %v7481_v35, %v3429_v49  ;;  %5031 = vmatprep.subr.bf16.mxu1 %v5030_v50  ;;  %5039 = vmatprep.subr.bf16.mxu0 %v5038_v43 }
 0x2e0   : > { %vm3447_vm15 = vc.u32 %v7519_v53, %v7503_v4  ;;  %v9047_v63 = vxor.u32 2147483648, %v7435_v42  ;;  %v9049_v13 = vxor.u32 2147483648, %v7439_v36  ;;  %5033 = vmatpush3.bf16.msra.mxu1 %v5030_v50  ;;  %5041 = vmatpush3.bf16.msra.mxu0 %v5038_v43  ;;  %v3240_v62 = vadd.s32 %v7359_v59, %v7364_v33 }
 0x2e1   : > { %v3449_v35 = vsel %vm3447_vm15, %v3448_v56, %v7504_v37  ;;  %v3714_v22 = vsub.s32 32, %v3713_v5  ;;  %v3260_v7 = vsub.s32 4294967266, %v7537_v16  ;;  %v3707_v0 = vor.u32 8388608, %v3706_v31 }
 0x2e2   : > { %v7547_v44 = vsel %vm8926_vm3, %v9047_v63, %v7435_v42  ;;  %v7554_v57 = vsel %vm8927_vm0, %v9049_v13, %v7439_v36  ;;  %v3450_v12 = vadd.s32 %v3449_v35, %v3445_v34  ;;  %v4771_v14 = vadd.s32 4294967294, %v3561_v30 }
 0x2e3   : > { %9048 = vst [vmem:[#allocation75_spill] sm:$0xff] %v7547_v44  ;;  %v3717_v32 = vshrl.u32 %v8963_v46, %v3714_v22  ;;  %v3720_v36 = vshrl.u32 %v8964_v8, %v3714_v22  ;;  %v3716_v41 = vshll.u32 %v8966_v23, %v3713_v5  ;;  %v3599_v9 = vand.u32 2139095040, %v7523_v45 }
 0x2e4   : > { %v3451_v37 = vadd.s32 536870912, %v3450_v12  ;;  %v3712_v49 = vshrl.u32 %v3711_v52, 5  ;;  %v3719_v50 = vshll.u32 %v8963_v46, %v3713_v5  ;;  %v3722_v33 = vshll.u32 %v8964_v8, %v3713_v5 }
 0x2e5   : > { %v3723_v59 = vshrl.u32 %v8965_v19, %v3714_v22  ;;  %v3718_v56 = vor.u32 %v3717_v32, %v3716_v41  ;;  %v3725_v31 = vshll.u32 %v8965_v19, %v3713_v5  ;;  %v3726_v34 = vshrl.u32 %v8958_v2, %v3714_v22 }
 0x2e6   : > { %v7569_v43 = vshrl.u32 %v3451_v37, 30  ;;  %v3721_v30 = vor.u32 %v3720_v36, %v3719_v50  ;;  %v3728_v13 = vshll.u32 %v8958_v2, %v3713_v5  ;;  %v3729_v35 = vshrl.u32 %v8959_v11, %v3714_v22 }
 0x2e7   : > { %v3724_v63 = vor.u32 %v3723_v59, %v3722_v33  ;;  %v3256_v52 = vsub.s32 32, %v7537_v16  ;;  %v3261_v10 = vadd.s32 127, %v3260_v7  ;;  %v3727_v48 = vor.u32 %v3726_v34, %v3725_v31 }
 0x2e8   : > { %9050 = vst [vmem:[#allocation76_spill] sm:$0xff] %v7569_v43  ;;  %v3453_v42 = vshll.u32 %v7569_v43, 30  ;;  %vm8932_vm6 = vcmp.lt.s32.totalorder %v7196_v38, 0  ;;  %vm4772_vm14 = vcmp.lt.s32.totalorder %v4771_v14, 0  ;;  %v3730_v32 = vor.u32 %v3729_v35, %v3728_v13  ;;  %v3838_v43 = vld [vmem:[%s8778_s4 + $0x10] sm:$0xff] }
 0x2e9   : > { %v3747_v37 = vshll.u32 %v3707_v0, 8  ;;  %v3600_v41 = vshrl.u32 %v3599_v9, 23  ;;  %v3715_v36 = vshrl.u32 %v8966_v23, %v3714_v22  ;;  %vm3731_vm2 = vcmp.lt.s32.totalorder %v3712_v49, 1 }
 0x2ea   : > { %v7578_v18 = vsub.s32 %v3450_v12, %v3453_v42  ;;  %vm3734_vm15 = vcmp.lt.s32.totalorder %v3712_v49, 4  ;;  %vm3733_vm3 = vcmp.lt.s32.totalorder %v3712_v49, 3  ;;  %v3739_v50 = vsel %vm3731_vm2, %v3718_v56, %v3721_v30 }
 0x2eb   : > { %v3736_v5 = vsel %vm3734_vm15, %v3724_v63, 2102212464  ;;  %v3740_v33 = vsel %vm3734_vm15, %v3727_v48, 920167782  ;;  %vm3732_vm0 = vcmp.lt.s32.totalorder %v3712_v49, 2  ;;  %v3743_v31 = vsel %vm3731_vm2, %v3721_v30, %v3724_v63 }
 0x2ec   : > { %v3456_v7 = vsub.s32 0, %v7578_v18  ;;  %v3741_v59 = vsel %vm3733_vm3, %v3724_v63, %v3740_v33  ;;  %v7583_v34 = vsel %vm4772_vm14, 0, %v4771_v14  ;;  %v3744_v12 = vsel %vm3734_vm15, %v3730_v32, 1326507024  ;;  %v3839_v63 = vld [vmem:[%s8778_s4 + $0x18] sm:$0xff] }
 0x2ed   : > { %v3742_v0 = vsel %vm3732_vm0, %v3739_v50, %v3741_v59  ;;  %v4773_v42 = vadd.s32 4294967169, %v3600_v41  ;;  %v3735_v9 = vsel %vm3731_vm2, %v3715_v36, %v3718_v56  ;;  %v3737_v13 = vsel %vm3733_vm3, %v3721_v30, %v3736_v5 }
 0x2ee   : > { %v4766_v22 = vmin.u32 %v3456_v7, %v7578_v18  ;;  %v3745_v35 = vsel %vm3733_vm3, %v3727_v48, %v3744_v12  ;;  %v7594_v33 = vmul.u32.u64.low %v3747_v37, %v3742_v0  ;;  %v7595_v44 = vmul.u32.u64.high %v3747_v37, %v3742_v0, %v7594_v33 }
 0x2ef   : > { %v3746_v14 = vsel %vm3732_vm0, %v3743_v31, %v3745_v35  ;;  %v3606_v32 = vadd.s32 1, %v4773_v42  ;;  %v3258_v41 = vshrl.u32 %v3240_v62, %v3256_v52  ;;  %v3569_v56 = vsub.s32 4294967266, %v7583_v34 }
 0x2f0   : > { %v7599_v30 = vmul.u32.u64.low %v3747_v37, %v3746_v14  ;;  %v7600_v48 = vmul.u32.u64.high %v3747_v37, %v3746_v14, %v7599_v30  ;;  %v3458_v36 = vclz %v4766_v22  ;;  %v3738_v5 = vsel %vm3732_vm0, %v3735_v9, %v3737_v13 }
 0x2f1   : > { %vm3607_vm3 = vcmp.gt.s32.totalorder %v3606_v32, 0  ;;  %v5034_v50 = vpack.c.bf16 %v3839_v63, %v3838_v43  ;;  %v9051_v7 = vxor.u32 2147483648, %v7525_v58  ;;  %v3262_v31 = vshll.u32 %v3261_v10, 23 }
 0x2f2   : > { %v9052_v62 = vand.u32 2147483647, %v7523_v45  ;;  %v3608_v0 = vsel %vm3607_vm3, %v3606_v32, 0  ;;  %v3257_v12 = vshll.u32 %v7421_v15, %v7537_v16  ;;  %v3565_v49 = vsub.s32 32, %v7583_v34 }
 0x2f3   : > { %v7608_v59 = vsel %vm8932_vm6, %v9051_v7, %v7525_v58  ;;  %v3757_v42 = vadd.s32 1, %v7595_v44  ;;  %v3610_v43 = vand.u32 31, %v3608_v0  ;;  %5035 = vmatprep.subr.bf16.mxu1 %v5034_v50  ;;  %v3549_v22 = vadd.s32 %v7417_v1, %v7424_v47 }
 0x2f4   : > { %v3603_v52 = vand.u32 8388607, %v9052_v62  ;;  %v3570_v9 = vadd.s32 127, %v3569_v56  ;;  %v3754_v58 = vmul.u32 %v3747_v37, %v3738_v5  ;;  %vm3756_vm0 = vc.u32 %v7600_v48, %v7594_v33  ;;  %5037 = vmatpush3.bf16.msra.mxu1 %v5034_v50 }
 0x2f5   : > { %v7620_v10 = vor.u32 %v3258_v41, %v3257_v12  ;;  %v4767_v13 = vadd.s32 4294967294, %v3458_v36  ;;  %v3758_v15 = vsel %vm3756_vm0, %v3757_v42, %v7595_v44  ;;  %v3611_v16 = vsub.s32 32, %v3610_v43 }
 0x2f6   : > { %v7623_v35 = vor.u32 4788187, %v3262_v31  ;;  %v7627_v63 = vadd.s32 %v7503_v4, %v7519_v53  ;;  %v3759_v14 = vadd.s32 %v3758_v15, %v3754_v58  ;;  %v3604_v1 = vor.u32 8388608, %v3603_v52 }
 0x2f7   : > { %v7631_v37 = vshrl.u32 %v3549_v22, %v3565_v49  ;;  %v3614_v32 = vshrl.u32 %v8963_v46, %v3611_v16  ;;  %v3617_v41 = vshrl.u32 %v8964_v8, %v3611_v16  ;;  %v3571_v56 = vshll.u32 %v3570_v9, 23 }
 0x2f8   : > { %v3760_v44 = vadd.s32 536870912, %v3759_v14  ;;  %v3609_v30 = vshrl.u32 %v3608_v0, 5  ;;  %v3613_v36 = vshll.u32 %v8966_v23, %v3610_v43  ;;  %vm4768_vm14 = vcmp.lt.s32.totalorder %v4767_v13, 0 }
 0x2f9   : > { %v3616_v4 = vshll.u32 %v8963_v46, %v3610_v43  ;;  %v3619_v53 = vshll.u32 %v8964_v8, %v3610_v43  ;;  %v3620_v5 = vshrl.u32 %v8965_v19, %v3611_v16  ;;  %v3622_v31 = vshll.u32 %v8965_v19, %v3610_v43 }
 0x2fa   : > { %v7639_v50 = vshrl.u32 %v3760_v44, 30  ;;  %v3615_v7 = vor.u32 %v3614_v32, %v3613_v36  ;;  %v3623_v62 = vshrl.u32 %v8958_v2, %v3611_v16  ;;  %v3625_v0 = vshll.u32 %v8958_v2, %v3610_v43 }
 0x2fb   : > { %v3618_v52 = vor.u32 %v3617_v41, %v3616_v4  ;;  %v3621_v12 = vor.u32 %v3620_v5, %v3619_v53  ;;  %v3626_v49 = vshrl.u32 %v8959_v11, %v3611_v16  ;;  %v7645_v42 = vor.u32 4788187, %v3571_v56 }
 0x2fc   : > { %9053 = vst [vmem:[#allocation77_spill] sm:$0xff] %v7639_v50  ;;  %v3762_v22 = vshll.u32 %v7639_v50, 30  ;;  %v3624_v9 = vor.u32 %v3623_v62, %v3622_v31  ;;  %v3644_v58 = vshll.u32 %v3604_v1, 8  ;;  %vm3631_vm2 = vcmp.lt.s32.totalorder %v3609_v30, 4 }
 0x2fd   : > { %v3627_v15 = vor.u32 %v3626_v49, %v3625_v0  ;;  %v506_v32 = vand.u32 2147483647, %v5654_v28  ;;  %v523_v44 = vshll.u32 %v8966_v23, %v5759_v54  ;;  %v7652_v41 = vsel %vm4768_vm14, 0, %v4767_v13 }
 0x2fe   : > { %v7654_v36 = vsub.s32 %v3759_v14, %v3762_v22  ;;  %vm3628_vm15 = vcmp.lt.s32.totalorder %v3609_v30, 1  ;;  %v3633_v2 = vsel %vm3631_vm2, %v3621_v12, 2102212464  ;;  %v3612_v11 = vshrl.u32 %v8966_v23, %v3611_v16 }
 0x2ff   : > { %vm3630_vm3 = vcmp.lt.s32.totalorder %v3609_v30, 3  ;;  %v3636_v43 = vsel %vm3628_vm15, %v3615_v7, %v3618_v52  ;;  %v3637_v1 = vsel %vm3631_vm2, %v3624_v9, 920167782  ;;  %vm3629_vm0 = vcmp.lt.s32.totalorder %v3609_v30, 2 }
 0x300   : > { %v3765_v56 = vsub.s32 0, %v7654_v36  ;;  %v3638_v4 = vsel %vm3630_vm3, %v3621_v12, %v3637_v1  ;;  %v3640_v53 = vsel %vm3628_vm15, %v3618_v52, %v3621_v12  ;;  %v3632_v5 = vsel %vm3628_vm15, %v3612_v11, %v3615_v7 }
 0x301   : > { %v3634_v31 = vsel %vm3630_vm3, %v3618_v52, %v3633_v2  ;;  %v3639_v13 = vsel %vm3629_vm0, %v3636_v43, %v3638_v4  ;;  %v3641_v14 = vsel %vm3631_vm2, %v3627_v15, 1326507024  ;;  %v513_v16 = vand.u32 8388607, %v506_v32 }
 0x302   : > { %v4778_v62 = vmin.u32 %v3765_v56, %v7654_v36  ;;  %v3642_v0 = vsel %vm3630_vm3, %v3624_v9, %v3641_v14  ;;  %v524_v49 = vshrl.u32 %v8963_v46, %v5790_v40  ;;  %v3466_v22 = vsub.s32 4294967266, %v7652_v41  ;;  %v9056_v14 = vld [vmem:[#allocation17_spill] sm:$0xff] }
 0x303   : > { %v3643_v47 = vsel %vm3629_vm0, %v3640_v53, %v3642_v0  ;;  %v7667_v50 = vmul.u32.u64.low %v3644_v58, %v3639_v13  ;;  %v7668_v1 = vmul.u32.u64.high %v3644_v58, %v3639_v13, %v7667_v50  ;;  %v3635_v52 = vsel %vm3629_vm0, %v3632_v5, %v3634_v31 }
 0x304   : > { %v3767_v7 = vclz %v4778_v62  ;;  %v7671_v30 = vmul.u32.u64.low %v3644_v58, %v3643_v47  ;;  %v7672_v12 = vmul.u32.u64.high %v3644_v58, %v3643_v47, %v7671_v30  ;;  %v526_v9 = vshll.u32 %v8963_v46, %v5759_v54 }
 0x305   : > { %v527_v15 = vshrl.u32 %v8964_v8, %v5790_v40  ;;  %v529_v2 = vshll.u32 %v8964_v8, %v5759_v54  ;;  %v530_v11 = vshrl.u32 %v8965_v19, %v5790_v40  ;;  %v3755_v43 = vadd.s32 %v7594_v33, %v7600_v48  ;;  %v9054_v33 = vld [vmem:[#allocation13_spill] sm:$0xff] }
 0x306   : > { %v4779_v56 = vadd.s32 4294967294, %v3767_v7  ;;  %v522_v47 = vshrl.u32 %v8966_v23, %v5790_v40  ;;  %v525_v4 = vor.u32 %v524_v49, %v523_v44  ;;  %v3467_v53 = vadd.s32 127, %v3466_v22  ;;  %v9055_v44 = vld [vmem:[#allocation19_spill] sm:$0xff] }
 0x307   : > { %v3654_v46 = vadd.s32 1, %v7668_v1  ;;  %v528_v5 = vor.u32 %v527_v15, %v526_v9  ;;  %v531_v31 = vor.u32 %v530_v11, %v529_v2  ;;  %v3651_v13 = vmul.u32 %v3644_v58, %v3635_v52 }
 0x308   : > { %vm4780_vm14 = vcmp.lt.s32.totalorder %v4779_v56, 0  ;;  %vm3653_vm2 = vc.u32 %v7672_v12, %v7667_v50  ;;  %v514_v54 = vor.u32 8388608, %v513_v16  ;;  %vm538_vm15 = vcmp.lt.s32.totalorder %v9054_v33, 1  ;;  %v9057_v16 = vld [vmem:[#allocation18_spill] sm:$0xff] }
 0x309   : > { %v3770_v8 = vsel %vm4780_vm14, 0, %v4779_v56  ;;  %v3655_v19 = vsel %vm3653_vm2, %v3654_v46, %v7668_v1  ;;  %vm540_vm3 = vcmp.lt.s32.totalorder %v9054_v33, 3  ;;  %v546_v48 = vsel %vm538_vm15, %v525_v4, %v528_v5 }
 0x30a   : > { %v3775_v40 = vsub.s32 4294967266, %v3770_v8  ;;  %v3656_v23 = vadd.s32 %v3655_v19, %v3651_v13  ;;  %v552_v58 = vsel %vm540_vm3, %v9056_v14, %v9055_v44  ;;  %v3462_v62 = vsub.s32 32, %v7652_v41 }
 0x30b   : > { %v543_v0 = vsel %vm541_vm8, %v531_v31, 2102212464  ;;  %v548_v49 = vsel %vm540_vm3, %v531_v31, %v9057_v16  ;;  %v550_v22 = vsel %vm538_vm15, %v528_v5, %v531_v31  ;;  %v3468_v1 = vshll.u32 %v3467_v53, 23  ;;  %v3802_v31 = vld [vmem:[%s7711_s12] sm:$0xff] }
 0x30c   : > { %v3776_v7 = vadd.s32 127, %v3775_v40  ;;  %v3657_v52 = vadd.s32 536870912, %v3656_v23  ;;  %vm539_vm8 = vcmp.lt.s32.totalorder %v9054_v33, 2  ;;  %v3771_v30 = vsub.s32 32, %v3770_v8  ;;  %v3805_v33 = vld [vmem:[%s7711_s12 + $0x18] sm:$0xff] }
 0x30d   : > { %v549_v9 = vsel %vm539_vm8, %v546_v48, %v548_v49  ;;  %v553_v15 = vsel %vm539_vm8, %v550_v22, %v552_v58  ;;  %v554_v2 = vshll.u32 %v514_v54, 8  ;;  %v542_v46 = vsel %vm538_vm15, %v522_v47, %v525_v4  ;;  %v3803_v48 = vld [vmem:[%s7711_s12 + $0x8] sm:$0xff]  ;;  %v3804_v4 = vld [vmem:[%s7711_s12 + $0x10] sm:$0xff]  ;;  %v3806_v22 = vld [vmem:[%s7711_s12 + $0x20] sm:$0xff] }
 0x30e   : > { %v3777_v11 = vshll.u32 %v3776_v7, 23  ;;  %v7718_v56 = vshrl.u32 %v3657_v52, 30  ;;  %v544_v53 = vsel %vm540_vm3, %v528_v5, %v543_v0  ;;  %v3266_v54 = vcvt.s32.f32 %v7620_v10 }
 0x30f   : > { %v7725_v13 = vmul.u32.u64.low %v554_v2, %v553_v15  ;;  %v7726_v19 = vmul.u32.u64.high %v554_v2, %v553_v15, %v7725_v13  ;;  %v7728_v40 = vmul.u32.u64.low %v554_v2, %v549_v9  ;;  %v7729_v44 = vmul.u32.u64.high %v554_v2, %v549_v9, %v7728_v40 }
 0x310   : > { %v9058_v14 = vshll.u32 %v7484_v20, %v7583_v34  ;;  %v3659_v47 = vshll.u32 %v7718_v56, 30  ;;  %vm4162_vm0 = vcmask 130048   ;;  %v3264_v5 = vand.u32 2147483647, %v7623_v35 }
 0x311   : > { %v3464_v0 = vshrl.u32 %v7627_v63, %v3462_v62  ;;  %v3773_v16 = vshrl.u32 %v3755_v43, %v3771_v30  ;;  %v545_v49 = vsel %vm539_vm8, %v542_v46, %v544_v53  ;;  %4982 = vmatprep.mubr.msk.f32.mxu0 %vm4162_vm0, %v3802_v31  ;;  %v3573_v20 = vand.u32 2147483647, %v7645_v42  ;;  %v3807_v53 = vld [vmem:[%s7711_s12 + $0x28] sm:$0xff] }
 0x312   : > { %v3568_v58 = vor.u32 %v7631_v37, %v9058_v14  ;;  %v3463_v34 = vshll.u32 %v7578_v18, %v7652_v41  ;;  %v3469_v10 = vor.u32 4788187, %v3468_v1  ;;  %v7748_v37 = vsub.s32 %v3656_v23, %v3659_v47  ;;  %4983 = vmatmul.mubr.msk.f32.vlgmr.msra.gmra.mrb[0].mxu0 %vm4162_vm0, %v3803_v48  ;;  %v9059_v23 = vld [vmem:[#allocation12_spill] sm:$0xff]  ;;  %v9065_v48 = vld [vmem:[#allocation5_spill] sm:$0xff]  ;;  %v9075_v30 = vld [vmem:[#allocation10_spill] sm:$0xff] }
 0x313   : > { %v3772_v35 = vshll.u32 %v7654_v36, %v3770_v8  ;;  %v3778_v63 = vor.u32 4788187, %v3777_v11  ;;  %vm563_vm14 = vc.u32 %v7726_v19, %v7728_v40  ;;  %v564_v43 = vadd.s32 1, %v7729_v44  ;;  %4985 = vmatprep.mubr.msk.f32.mxu0 %vm4162_vm0, %v3804_v4  ;;  %v9060_v8 = vld [vmem:[#allocation7_spill] sm:$0xff] }
 0x314   : > { %v3575_v42 = vcvt.s32.f32 %v3568_v58  ;;  %v3662_v18 = vsub.s32 0, %v7748_v37  ;;  %v561_v41 = vmul.u32 %v554_v2, %v545_v49  ;;  %v695_v62 = vsub.s32 4, %v9059_v23  ;;  %v9064_v11 = vld [vmem:[#allocation27_spill] sm:$0xff] }
 0x315   : > { %v3465_v1 = vor.u32 %v3464_v0, %v3463_v34  ;;  %v3774_v7 = vor.u32 %v3773_v16, %v3772_v35  ;;  %v565_v36 = vsel %vm563_vm14, %v564_v43, %v7729_v44  ;;  %v9061_v52 = vand.u32 2147483647, %v9060_v8  ;;  %v3808_v16 = vld [vmem:[%s7711_s12 + $0x30] sm:$0xff]  ;;  %v9070_v34 = vld [vmem:[#allocation20_spill] sm:$0xff] }
 0x316   : > { %vm8936_vm15 = vcmp.lt.s32.totalorder %v7251_v27, 0  ;;  %v3267_v9 = vmul.f32 %v3266_v54, %v3264_v5  ;;  %vm8934_vm3 = vcmp.lt.s32.totalorder %v7325_v26, 0  ;;  %v4774_v15 = vmin.u32 %v3662_v18, %v7748_v37  ;;  %4986 = vmatmul.mubr.msk.f32.gmra.mrb[2].mxu0 %vm4162_vm0, %v3805_v33  ;;  %v9069_v5 = vld [vmem:[#allocation8_spill] sm:$0xff] }
 0x317   : > { %vm7763_vm2 = vcmp.le.f32.partialorder %v9061_v52, 0.7853982  ;;  %v566_v2 = vadd.s32 %v565_v36, %v561_v41  ;;  %v3576_v31 = vmul.f32 %v3575_v42, %v3573_v20  ;;  %v3470_v13 = vand.u32 2147483647, %v3469_v10  ;;  %4988 = vmatprep.mubr.msk.f32.mxu0 %vm4162_vm0, %v3806_v22  ;;  %v9071_v36 = vld [vmem:[#allocation6_spill] sm:$0xff] }
 0x318   : > { %v697_v46 = vsel %vm7763_vm2, %v9060_v8, %v9064_v11  ;;  %v3779_v44 = vand.u32 2147483647, %v3778_v63  ;;  %v9066_v14 = vand.u32 2147483647, %v9065_v48  ;;  %v3664_v58 = vclz %v4774_v15 }
 0x319   : > { %v567_v47 = vadd.s32 536870912, %v566_v2  ;;  %v696_v4 = vsel %vm611_vm1, %v695_v62, %v9059_v23  ;;  %v798_v0 = vsub.s32 4, %v9069_v5  ;;  %v3472_v49 = vcvt.s32.f32 %v3465_v1  ;;  %v3809_v23 = vld [vmem:[%s7711_s12 + $0x38] sm:$0xff]  ;;  %v3810_v1 = vld [vmem:[%s7711_s12 + $0x40] sm:$0xff] }
 0x31a   : > { %vm7778_vm8 = vcmp.le.f32.partialorder %v9066_v14, 0.7853982  ;;  %v3781_v20 = vcvt.s32.f32 %v3774_v7  ;;  %5252 = vcosq.f32 %v697_v46  ;;  %v3268_v35 = vxor.u32 2147483648, %v3267_v9  ;;  %4989 = vmatmul.mubr.msk.f32.gmra.mrb[4].mxu0 %vm4162_vm0, %v3807_v53 }
 0x31b   : > { %v800_v10 = vsel %vm7778_vm8, %v9065_v48, %v9070_v34  ;;  %vm8935_vm14 = vcmp.lt.s32.totalorder %v7384_v51, 0  ;;  %v4775_v63 = vadd.s32 4294967294, %v3664_v58  ;;  %v568_v43 = vshrl.u32 %v567_v47, 30  ;;  %4991 = vmatprep.mubr.msk.f32.mxu0 %vm4162_vm0, %v3808_v16 }
 0x31c   : > { %5254 = vsinq.f32 %v697_v46  ;;  %v3577_v33 = vxor.u32 2147483648, %v3576_v31  ;;  %v3473_v42 = vmul.f32 %v3472_v49, %v3470_v13  ;;  %v3782_v18 = vmul.f32 %v3781_v20, %v3779_v44  ;;  %v9076_v13 = vld [vmem:[#allocation23_spill] sm:$0xff] }
 0x31d   : > { %v698_v41 = vsel %vm7763_vm2, 0, %v696_v4  ;;  %vm4776_vm1 = vcmp.lt.s32.totalorder %v4775_v63, 0  ;;  %v569_v62 = vshll.u32 %v568_v43, 30  ;;  %v799_v22 = vsel %vm714_vm7, %v798_v0, %v9069_v5  ;;  %v3812_v20 = vld [vmem:[%s7711_s12 + $0x50] sm:$0xff] }
 0x31e   : > { %5256 = vsinq.f32 %v800_v10  ;;  %v3667_v7 = vsel %vm4776_vm1, 0, %v4775_v63  ;;  %v9072_v52 = vand.u32 2147483647, %v9071_v36  ;;  %v901_v11 = vsub.s32 4, %v9075_v30  ;;  %4992 = vmatmul.mubr.msk.f32.gmra.mrb[6].mxu0 %vm4162_vm0, %v3809_v23 }
 0x31f   : > { %5258 = vcosq.f32 %v800_v10  ;;  %vm8933_vm2 = vcmp.lt.s32.totalorder %v7454_v17, 0  ;;  %v3672_v46 = vsub.s32 4294967266, %v3667_v7  ;;  %v7810_v53 = vsub.s32 %v566_v2, %v569_v62  ;;  %4994 = vmatprep.mubr.msk.f32.mxu0 %vm4162_vm0, %v3810_v1  ;;  %v3811_v2 = vld [vmem:[%s7711_s12 + $0x48] sm:$0xff]  ;;  %v3814_v1 = vld [vmem:[%s7711_s12 + $0x60] sm:$0xff] }
 0x320   : > { %vm7804_vm6 = vcmp.le.f32.partialorder %v9072_v52, 0.7853982  ;;  %v7819_v14 = vsel %vm8936_vm15, %v3268_v35, %v3267_v9  ;;  %v7823_v58 = vsel %vm8934_vm3, %v3577_v33, %v3576_v31  ;;  %v3474_v47 = vxor.u32 2147483648, %v3473_v42  ;;  %v9105_v33 = vld [vmem:[#allocation41_spill] sm:$0xff] }
 0x321   : > { %v903_v44 = vsel %vm7804_vm6, %v9071_v36, %v9076_v13  ;;  %v592_v4 = vsub.s32 4, %v568_v43  ;;  %v3668_v5 = vsub.s32 32, %v3667_v7  ;;  %v572_v0 = vsub.s32 0, %v7810_v53 }
 0x322   : > { %v7828_v16 = vand.u32 3, %v698_v41  ;;  %v801_v49 = vsel %vm7778_vm8, 0, %v799_v22  ;;  %v3783_v9 = vxor.u32 2147483648, %v3782_v18  ;;  %v3673_v34 = vadd.s32 127, %v3672_v46  ;;  %4995 = vmatmul.mubr.msk.f32.gmra.mrb[8].mxu0 %vm4162_vm0, %v3811_v2  ;;  %v3813_v41 = vld [vmem:[%s7711_s12 + $0x58] sm:$0xff]  ;;  %v9083_v2 = vld [vmem:[#allocation31_spill] sm:$0xff] }
 0x323   : > { %v902_v31 = vsel %vm817_vm12, %v901_v11, %v9075_v30  ;;  %5260 = vcosq.f32 %v903_v44  ;;  %v3652_v10 = vadd.s32 %v7667_v50, %v7672_v12  ;;  %vm508_vm7 = vcmp.lt.s32.totalorder %v5654_v28, 0  ;;  %4997 = vmatprep.mubr.msk.f32.mxu0 %vm4162_vm0, %v3812_v20 }
 0x324   : > { %v4654_v35 = vmin.u32 %v572_v0, %v7810_v53  ;;  %5262 = vsinq.f32 %v903_v44  ;;  %v5253_v54 = vpop.eup %5252  ;;  %v7843_v63 = vsel %vm8935_vm14, %v3474_v47, %v3473_v42  ;;  %vm7847_vm12 = vcmp.le.f32.partialorder %v506_v32, 0.7853982  ;;  %v9079_v44 = vld [vmem:[#allocation11_spill] sm:$0xff] }
 0x325   : > { %v593_v50 = vsel %vm508_vm7, %v592_v4, %v568_v43  ;;  %v7853_v12 = vand.u32 3, %v801_v49  ;;  %v3670_v62 = vshrl.u32 %v3652_v10, %v3668_v5  ;;  %v562_v42 = vadd.s32 %v7728_v40, %v7726_v19  ;;  %v3816_v0 = vld [vmem:[%s7711_s12 + $0x70] sm:$0xff] }
 0x326   : > { %v5255_v23 = vpop.eup %5254  ;;  %v574_v22 = vclz %v4654_v35  ;;  %v904_v32 = vsel %vm7804_vm6, 0, %v902_v31  ;;  %v7864_v52 = vsel %vm8933_vm2, %v3783_v9, %v3782_v18  ;;  %v3674_v43 = vshll.u32 %v3673_v34, 23  ;;  %4998 = vmatmul.mubr.msk.f32.gmra.mrb[10].mxu0 %vm4162_vm0, %v3813_v41 }
 0x327   : > { %vm704_vm8 = vcmp.eq.s32.totalorder %v7828_v16, 0  ;;  %vm707_vm1 = vcmp.eq.s32.totalorder %v7828_v16, 2  ;;  %v3669_v11 = vshll.u32 %v7748_v37, %v3667_v7  ;;  %v595_v19 = vsel %vm7847_vm12, 0, %v593_v50  ;;  %5000 = vmatprep.mubr.msk.f32.mxu0 %vm4162_vm0, %v3814_v1  ;;  %v3815_v7 = vld [vmem:[%s7711_s12 + $0x68] sm:$0xff]  ;;  %v3817_v1 = vld [vmem:[%s7711_s12 + $0x78] sm:$0xff] }
 0x328   : > { %v5257_v30 = vpop.eup %5256  ;;  %v4655_v46 = vadd.s32 4294967294, %v574_v22  ;;  %v708_v40 = vxor.u32 2147483648, %v5253_v54  ;;  %vm703_vm6 = vcmp.lt.s32.totalorder %v7828_v16, 2  ;;  %v705_v18 = vxor.u32 2147483648, %v5255_v23  ;;  %v9084_v22 = vld [vmem:[#allocation15_spill] sm:$0xff]  ;;  %v3821_v37 = vld [vmem:[%s7711_s12 + $0x98] sm:$0xff] }
 0x329   : > { %v5259_v15 = vpop.eup %5258  ;;  %vm807_vm2 = vcmp.eq.s32.totalorder %v7853_v12, 0  ;;  %v7874_v13 = vand.u32 3, %v904_v32  ;;  %v9080_v47 = vand.u32 2147483647, %v9079_v44  ;;  %v3671_v4 = vor.u32 %v3670_v62, %v3669_v11 }
 0x32a   : > { %vm4656_vm14 = vcmp.lt.s32.totalorder %v4655_v46, 0  ;;  %vm806_vm15 = vcmp.lt.s32.totalorder %v7853_v12, 2  ;;  %vm810_vm9 = vcmp.eq.s32.totalorder %v7853_v12, 2  ;;  %v3675_v49 = vor.u32 4788187, %v3674_v43  ;;  %5001 = vmatmul.mubr.msk.f32.gmra.mrb[12].mxu0 %vm4162_vm0, %v3815_v7 }
 0x32b   : > { %vm7878_vm3 = vcmp.le.f32.partialorder %v9080_v47, 0.7853982  ;;  %v577_v20 = vsel %vm4656_vm14, 0, %v4655_v46  ;;  %v7891_v9 = vand.u32 3, %v595_v19  ;;  %v808_v34 = vxor.u32 2147483648, %v5257_v30  ;;  %5003 = vmatprep.mubr.msk.f32.mxu0 %vm4162_vm0, %v3816_v0  ;;  %v9089_v0 = vld [vmem:[#allocation29_spill] sm:$0xff] }
 0x32c   : > { %v1006_v5 = vsel %vm7878_vm3, %v9079_v44, %v9083_v2  ;;  %v578_v31 = vsub.s32 32, %v577_v20  ;;  %v582_v10 = vsub.s32 4294967266, %v577_v20  ;;  %v709_v35 = vsel %vm707_vm1, %v708_v40, %v5255_v23  ;;  %v3818_v40 = vld [vmem:[%s7711_s12 + $0x80] sm:$0xff] }
 0x32d   : > { %v811_v50 = vxor.u32 2147483648, %v5259_v15  ;;  %v5261_v41 = vpop.eup %5260  ;;  %v706_v62 = vsel %vm704_vm8, %v5253_v54, %v705_v18  ;;  %vm910_vm11 = vcmp.eq.s32.totalorder %v7874_v13, 0  ;;  %v1004_v32 = vsub.s32 4, %v9084_v22  ;;  %v9085_v18 = vld [vmem:[#allocation9_spill] sm:$0xff] }
 0x32e   : > { %5264 = vcosq.f32 %v1006_v5  ;;  %v5263_v43 = vpop.eup %5262  ;;  %v3678_v11 = vcvt.s32.f32 %v3671_v4  ;;  %v579_v23 = vshll.u32 %v7810_v53, %v577_v20  ;;  %v580_v46 = vshrl.u32 %v562_v42, %v578_v31  ;;  %5004 = vmatmul.mubr.msk.f32.gmra.mrb[14].mxu0 %vm4162_vm0, %v3817_v1  ;;  %v3820_v1 = vld [vmem:[%s7711_s12 + $0x90] sm:$0xff] }
 0x32f   : > { %v583_v19 = vadd.s32 127, %v582_v10  ;;  %vm701_vm14 = vweird.f32 %v9060_v8  ;;  %v3676_v47 = vand.u32 2147483647, %v3675_v49  ;;  %vm804_vm8 = vweird.f32 %v9065_v48  ;;  %5006 = vmatprep.mubr.msk.f32.mxu0 %vm4162_vm0, %v3818_v40  ;;  %v3823_v48 = vld [vmem:[%s7711_s12 + $0xa8] sm:$0xff] }
 0x330   : > { %v809_v54 = vsel %vm807_vm2, %v5259_v15, %v808_v34  ;;  %5266 = vsinq.f32 %v1006_v5  ;;  %v9086_v7 = vand.u32 2147483647, %v9085_v18  ;;  %v581_v53 = vor.u32 %v580_v46, %v579_v23  ;;  %v9090_v34 = vld [vmem:[#allocation14_spill] sm:$0xff] }
 0x331   : > { %v584_v42 = vshll.u32 %v583_v19, 23  ;;  %v812_v4 = vsel %vm810_vm9, %v811_v50, %v5257_v30  ;;  %vm909_vm10 = vcmp.lt.s32.totalorder %v7874_v13, 2  ;;  %v911_v5 = vxor.u32 2147483648, %v5263_v43  ;;  %v3819_v30 = vld [vmem:[%s7711_s12 + $0x88] sm:$0xff] }
 0x332   : > { %vm7910_vm1 = vcmp.le.f32.partialorder %v9086_v7, 0.7853982  ;;  %v914_v49 = vxor.u32 2147483648, %v5261_v41  ;;  %v1005_v20 = vsel %vm920_vm13, %v1004_v32, %v9084_v22  ;;  %v1107_v31 = vsub.s32 4, %v9090_v34  ;;  %5007 = vmatmul.mubr.msk.f32.gmra.mrb[16].mxu0 %vm4162_vm0, %v3819_v30 }
 0x333   : > { %v1109_v15 = vsel %vm7910_vm1, %v9085_v18, %v9089_v0  ;;  %v585_v10 = vor.u32 4788187, %v584_v42  ;;  %v710_v50 = vsel %vm703_vm6, %v706_v62, %v709_v35  ;;  %vm913_vm9 = vcmp.eq.s32.totalorder %v7874_v13, 2  ;;  %5009 = vmatprep.mubr.msk.f32.mxu0 %vm4162_vm0, %v3820_v1  ;;  %v9098_v42 = vld [vmem:[#allocation21_spill] sm:$0xff] }
 0x334   : > { %5268 = vcosq.f32 %v1109_v15  ;;  %v7932_v23 = vmul.f32 %v3678_v11, %v3676_v47  ;;  %v813_v46 = vsel %vm806_vm15, %v809_v54, %v812_v4  ;;  %v9091_v22 = vand.u32 2147483647, %v5896_v3  ;;  %v9094_v47 = vld [vmem:[#allocation25_spill] sm:$0xff] }
 0x335   : > { %5270 = vsinq.f32 %v1109_v15  ;;  %v586_v16 = vand.u32 2147483647, %v585_v10  ;;  %v588_v35 = vcvt.s32.f32 %v581_v53  ;;  %v1007_v62 = vsel %vm7878_vm3, 0, %v1005_v20 }
 0x336   : > { %vm7938_vm13 = vcmp.le.f32.partialorder %v9091_v22, 0.7853982  ;;  %v912_v12 = vsel %vm910_vm11, %v5261_v41, %v911_v5  ;;  %v915_v19 = vsel %vm913_vm9, %v914_v49, %v5263_v43  ;;  %v1108_v40 = vsel %vm1023_vm5, %v1107_v31, %v9090_v34  ;;  %v3822_v43 = vld [vmem:[%s7711_s12 + $0xa0] sm:$0xff]  ;;  %5010 = vmatmul.mubr.msk.f32.gmra.mrb[18].mxu0 %vm4162_vm0, %v3821_v37  ;;  %v3824_v22 = vld [vmem:[%s7711_s12 + $0xb0] sm:$0xff] }
 0x337   : > { %v1212_v11 = vsel %vm7938_vm13, %v5896_v3, %v6518_v25  ;;  %v1210_v54 = vsub.s32 4, %v9094_v47  ;;  %v589_v7 = vmul.f32 %v588_v35, %v586_v16  ;;  %v9095_v53 = vand.u32 2147483647, %v5777_v61  ;;  %v9099_v5 = vld [vmem:[#allocation37_spill] sm:$0xff]  ;;  %5012 = vmatprep.mubr.msk.f32.mxu0 %vm4162_vm0, %v3822_v43  ;;  %v9106_v43 = vld [vmem:[#allocation28_spill] sm:$0xff] }
 0x338   : > { %5272 = vcosq.f32 %v1212_v11  ;;  %v1313_v41 = vsub.s32 4, %v9098_v42  ;;  %v5265_v4 = vpop.eup %5264  ;;  %v7967_v0 = vsel %vm701_vm14, nan, %v710_v50  ;;  %v1011_v15 = vand.u32 3, %v1007_v62  ;;  %v9101_v62 = vld [vmem:[#allocation22_spill] sm:$0xff] }
 0x339   : > { %vm7959_vm15 = vcmp.le.f32.partialorder %v9095_v53, 0.7853982  ;;  %5274 = vsinq.f32 %v1212_v11  ;;  %v3680_v20 = vxor.u32 2147483648, %v7932_v23  ;;  %v590_v34 = vxor.u32 2147483648, %v589_v7  ;;  %v3825_v53 = vld [vmem:[%s7711_s12 + $0xb8] sm:$0xff] }
 0x33a   : > { %v1315_v49 = vsel %vm7959_vm15, %v5777_v61, %v9099_v5  ;;  %v7976_v31 = vsel %vm804_vm8, nan, %v813_v46  ;;  %v1110_v8 = vsel %vm7910_vm1, 0, %v1108_v40  ;;  %v5267_v30 = vpop.eup %5266  ;;  %v7983_v10 = vsel %vm909_vm10, %v912_v12, %v915_v19  ;;  %5013 = vmatmul.mubr.msk.f32.gmra.mrb[20].mxu0 %vm4162_vm0, %v3823_v48 }
 0x33b   : > { %v1017_v50 = vxor.u32 2147483648, %v5265_v4  ;;  %v1211_v1 = vsel %vm1126_vm4, %v1210_v54, %v9094_v47  ;;  %5276 = vcosq.f32 %v1315_v49  ;;  %v591_v2 = vsel %vm508_vm7, %v590_v34, %v589_v7  ;;  %5015 = vmatprep.mubr.msk.f32.mxu0 %vm4162_vm0, %v3824_v22 }
 0x33c   : > { %vm907_vm5 = vweird.f32 %v9071_v36  ;;  %v1014_v46 = vxor.u32 2147483648, %v5267_v30  ;;  %vm9100_vm11 = vcmp.lt.s32.totalorder %v5777_v61, 0  ;;  %5278 = vsinq.f32 %v1315_v49  ;;  %v3826_v49 = vld [vmem:[%s7711_s12 + $0xc0] sm:$0xff] }
 0x33d   : > { %v1314_v13 = vsel %vm9100_vm11, %v1313_v41, %v9098_v42  ;;  %v594_v16 = vsel %vm7847_vm12, %v5654_v28, %v591_v2  ;;  %vm1012_vm10 = vcmp.lt.s32.totalorder %v1011_v15, 2  ;;  %v1114_v35 = vand.u32 3, %v1110_v8 }
 0x33e   : > { %v9102_v11 = vand.u32 2147483647, %v9101_v62  ;;  %v5269_v19 = vpop.eup %5268  ;;  %5280 = vcosq.f32 %v594_v16  ;;  %vm1010_vm3 = vweird.f32 %v9079_v44  ;;  %vm1013_vm2 = vcmp.eq.s32.totalorder %v1011_v15, 0  ;;  %5016 = vmatmul.mubr.msk.f32.gmra.mrb[22].mxu0 %vm4162_vm0, %v3825_v53  ;;  %v3833_v44 = vld [vmem:[%s7711_s12 + $0xf8] sm:$0xff] }
 0x33f   : > { %v1213_v40 = vsel %vm7938_vm13, 0, %v1211_v1  ;;  %v5271_v54 = vpop.eup %5270  ;;  %5282 = vsinq.f32 %v594_v16  ;;  %vm1016_vm7 = vcmp.eq.s32.totalorder %v1011_v15, 2  ;;  %v1120_v37 = vxor.u32 2147483648, %v5269_v19  ;;  %v9107_v1 = vld [vmem:[#allocation16_spill] sm:$0xff]  ;;  %5018 = vmatprep.mubr.msk.f32.mxu0 %vm4162_vm0, %v3826_v49 }
 0x340   : > { %vm8002_vm4 = vcmp.le.f32.partialorder %v9102_v11, 0.7853982  ;;  %v1316_v7 = vsel %vm7959_vm15, 0, %v1314_v13  ;;  %v1015_v42 = vsel %vm1013_vm2, %v5265_v4, %v1014_v46  ;;  %v1018_v32 = vsel %vm1016_vm7, %v1017_v50, %v5267_v30  ;;  %v9111_v30 = vld [vmem:[#allocation26_spill] sm:$0xff]  ;;  %v9112_v16 = vld [vmem:[#allocation40_spill] sm:$0xff] }
 0x341   : > { %v1418_v47 = vsel %vm8002_vm4, %v9101_v62, %v9105_v33  ;;  %v1117_v41 = vxor.u32 2147483648, %v5271_v54  ;;  %v1416_v5 = vsub.s32 4, %v9106_v43  ;;  %vm1116_vm12 = vcmp.eq.s32.totalorder %v1114_v35, 0 }
 0x342   : > { %vm1119_vm6 = vcmp.eq.s32.totalorder %v1114_v35, 2  ;;  %v8020_v34 = vand.u32 3, %v1213_v40  ;;  %5284 = vcosq.f32 %v1418_v47  ;;  %v5273_v8 = vpop.eup %5272  ;;  %vm604_vm14 = vcmp.eq.s32.totalorder %v7891_v9, 2  ;;  %v3827_v40 = vld [vmem:[%s7711_s12 + $0xc8] sm:$0xff] }
 0x343   : > { %v8023_v25 = vand.u32 3, %v1316_v7  ;;  %5286 = vsinq.f32 %v1418_v47  ;;  %v9108_v48 = vand.u32 2147483647, %v9107_v1  ;;  %v1519_v50 = vsub.s32 4, %v9111_v30  ;;  %v5275_v2 = vpop.eup %5274  ;;  %5019 = vmatmul.mubr.msk.f32.gmra.mrb[24].mxu0 %vm4162_vm0, %v3827_v40 }
 0x344   : > { %vm601_vm1 = vcmp.eq.s32.totalorder %v7891_v9, 0  ;;  %v1019_v46 = vsel %vm1012_vm10, %v1015_v42, %v1018_v32  ;;  %v1121_v13 = vsel %vm1119_vm6, %v1120_v37, %v5271_v54  ;;  %v1223_v22 = vxor.u32 2147483648, %v5273_v8  ;;  %v3828_v54 = vld [vmem:[%s7711_s12 + $0xd0] sm:$0xff]  ;;  %v3829_v32 = vld [vmem:[%s7711_s12 + $0xd8] sm:$0xff] }
 0x345   : > { %vm8027_vm8 = vcmp.le.f32.partialorder %v9108_v48, 0.7853982  ;;  %vm600_vm9 = vcmp.lt.s32.totalorder %v7891_v9, 2  ;;  %v1118_v33 = vsel %vm1116_vm12, %v5269_v19, %v1117_v41  ;;  %v1220_v47 = vxor.u32 2147483648, %v5275_v2  ;;  %v5277_v37 = vpop.eup %5276  ;;  %5021 = vmatprep.mubr.msk.f32.mxu0 %vm4162_vm0, %v3828_v54  ;;  %v9118_v48 = vld [vmem:[#allocation34_spill] sm:$0xff]  ;;  %v9123_v9 = vld [vmem:[#allocation24_spill] sm:$0xff] }
 0x346   : > { %v1521_v11 = vsel %vm8027_vm8, %v9107_v1, %v9112_v16  ;;  %vm9113_vm15 = vcmp.lt.s32.totalorder %v9101_v62, 0  ;;  %vm598_vm11 = vweird.f32 %v5654_v28  ;;  %v8051_v7 = vsel %vm907_vm5, nan, %v7983_v10  ;;  %v5279_v19 = vpop.eup %5278  ;;  %v3831_v54 = vld [vmem:[%s7711_s12 + $0xe8] sm:$0xff] }
 0x347   : > { %v1417_v15 = vsel %vm9113_vm15, %v1416_v5, %v9106_v43  ;;  %5288 = vcosq.f32 %v1521_v11  ;;  %vm1113_vm10 = vweird.f32 %v9085_v18  ;;  %vm1115_vm2 = vcmp.lt.s32.totalorder %v1114_v35, 2  ;;  %5022 = vmatmul.mubr.msk.f32.gmra.mrb[26].mxu0 %vm4162_vm0, %v3829_v32 }
 0x348   : > { %vm1218_vm7 = vcmp.lt.s32.totalorder %v8020_v34, 2  ;;  %vm1219_vm12 = vcmp.eq.s32.totalorder %v8020_v34, 0  ;;  %vm1222_vm6 = vcmp.eq.s32.totalorder %v8020_v34, 2  ;;  %vm9114_vm15 = vcmp.lt.s32.totalorder %v9107_v1, 0  ;;  %v5281_v41 = vpop.eup %5280 }
 0x349   : > { %v1520_v53 = vsel %vm9114_vm15, %v1519_v50, %v9111_v30  ;;  %5290 = vsinq.f32 %v1521_v11  ;;  %v8063_v36 = vsel %vm1010_vm3, nan, %v1019_v46  ;;  %v1122_v10 = vsel %vm1115_vm2, %v1118_v33, %v1121_v13  ;;  %v3830_v50 = vld [vmem:[%s7711_s12 + $0xe0] sm:$0xff] }
 0x34a   : > { %vm1216_vm5 = vweird.f32 %v5896_v3  ;;  %v1224_v35 = vsel %vm1222_vm6, %v1223_v22, %v5275_v2  ;;  %vm1321_vm13 = vcmp.lt.s32.totalorder %v8023_v25, 2  ;;  %v1419_v42 = vsel %vm8002_vm4, 0, %v1417_v15  ;;  %v5283_v2 = vpop.eup %5282  ;;  %v9119_v22 = vld [vmem:[#allocation49_spill] sm:$0xff]  ;;  %5024 = vmatprep.mubr.msk.f32.mxu0 %vm4162_vm0, %v3830_v50 }
 0x34b   : > { %v1221_v43 = vsel %vm1219_vm12, %v5273_v8, %v1220_v47  ;;  %v1326_v5 = vxor.u32 2147483648, %v5277_v37  ;;  %v9115_v49 = vand.u32 2147483647, %v6107_v6  ;;  %v1622_v30 = vsub.s32 4, %v9118_v48  ;;  %5025 = vmatmul.mubr.msk.f32.gmra.mrb[28].mxu0 %vm4162_vm0, %v3831_v54 }
 0x34c   : > { %v605_v46 = vxor.u32 2147483648, %v5281_v41  ;;  %v1323_v12 = vxor.u32 2147483648, %v5279_v19  ;;  %v1522_v13 = vsel %vm8027_vm8, 0, %v1520_v53  ;;  %v602_v16 = vxor.u32 2147483648, %v5283_v2  ;;  %v5285_v40 = vpop.eup %5284 }
 0x34d   : > { %vm8073_vm15 = vcmp.le.f32.partialorder %v9115_v49, 0.7853982  ;;  %vm1322_vm4 = vcmp.eq.s32.totalorder %v8023_v25, 0  ;;  %vm1325_vm3 = vcmp.eq.s32.totalorder %v8023_v25, 2  ;;  %v8087_v11 = vand.u32 3, %v1419_v42  ;;  %v5287_v53 = vpop.eup %5286 }
 0x34e   : > { %v1624_v8 = vsel %vm8073_vm15, %v6107_v6, %v9119_v22  ;;  %v606_v4 = vsel %vm604_vm14, %v605_v46, %v5283_v2  ;;  %v8094_v33 = vsel %vm1113_vm10, nan, %v1122_v10  ;;  %v1225_v47 = vsel %vm1218_vm7, %v1221_v43, %v1224_v35  ;;  %v3832_v10 = vld [vmem:[%s7711_s12 + $0xf0] sm:$0xff] }
 0x34f   : > { %vm1319_vm8 = vweird.f32 %v5777_v61  ;;  %vm9120_vm2 = vcmp.lt.s32.totalorder %v6107_v6, 0  ;;  %v603_v42 = vsel %vm601_vm1, %v5281_v41, %v602_v16  ;;  %v1327_v32 = vsel %vm1325_vm3, %v1326_v5, %v5279_v19  ;;  %5027 = vmatprep.mubr.msk.f32.mxu0 %vm4162_vm0, %v3832_v10 }
 0x350   : > { %v1623_v15 = vsel %vm9120_vm2, %v1622_v30, %v9118_v48  ;;  %v8106_v18 = vand.u32 3, %v1522_v13  ;;  %5292 = vcosq.f32 %v1624_v8  ;;  %v607_v34 = vsel %vm600_vm9, %v603_v42, %v606_v4  ;;  %v9121_v48 = vld [vmem:[#allocation32_spill] sm:$0xff]  ;;  %v9128_v13 = vld [vmem:[#allocation43_spill] sm:$0xff]  ;;  %v9131_v4 = vld [vmem:[#allocation33_spill] sm:$0xff]  ;;  %5028 = vmatmul.mubr.msk.f32.gmra.mrb[30].mxu0 %vm4162_vm0, %v3833_v44 }
 0x351   : > { %v1324_v35 = vsel %vm1322_vm4, %v5277_v37, %v1323_v12  ;;  %v1625_v43 = vsel %vm8073_vm15, 0, %v1623_v15  ;;  %5294 = vsinq.f32 %v1624_v8  ;;  %v5289_v49 = vpop.eup %5288  ;;  %v608_v41 = vsel %vm598_vm11, nan, %v607_v34 }
 0x352   : > { %v1426_v19 = vxor.u32 2147483648, %v5287_v53  ;;  %v1429_v5 = vxor.u32 2147483648, %v5285_v40  ;;  %v1725_v30 = vsub.s32 4, %v9121_v48  ;;  %vm9122_vm14 = vcmask 261120  }
 0x353   : > { %4930 = vmatprep.mubr.msk.f32.mxu1 %vm9122_vm14, %v608_v41  ;;  %vm1422_vm1 = vweird.f32 %v9101_v62  ;;  %vm1424_vm9 = vcmp.lt.s32.totalorder %v8087_v11, 2  ;;  %vm1425_vm10 = vcmp.eq.s32.totalorder %v8087_v11, 0  ;;  %vm1428_vm7 = vcmp.eq.s32.totalorder %v8087_v11, 2  ;;  %v5291_v50 = vpop.eup %5290  ;;  %vm9127_vm11 = vmmov %vm9122_vm14  ;;  %v9149_v62 = vld [vmem:[#allocation38_spill] sm:$0xff] }
 0x354   : > { %v9124_v37 = vand.u32 2147483647, %v9123_v9  ;;  %4931 = vmatmul.mubr.msk.f32.vlgmr.msra.gmra.mrb[0].mxu1 %vm9127_vm11, %v7967_v0  ;;  %v1226_v2 = vsel %vm1216_vm5, nan, %v1225_v47  ;;  %v1328_v46 = vsel %vm1321_vm13, %v1324_v35, %v1327_v32  ;;  %v1629_v12 = vand.u32 3, %v1625_v43  ;;  %vm9129_vm6 = vmmov %vm9127_vm11  ;;  %v9140_v43 = vld [vmem:[#allocation30_spill] sm:$0xff] }
 0x355   : > { %4933 = vmatprep.mubr.msk.f32.mxu1 %vm9129_vm6, %v7976_v31  ;;  %vm1527_vm15 = vcmp.lt.s32.totalorder %v8106_v18, 2  ;;  %v1529_v8 = vxor.u32 2147483648, %v5291_v50  ;;  %v1532_v16 = vxor.u32 2147483648, %v5289_v49  ;;  %vm9130_vm4 = vcmp.lt.s32.totalorder %v9123_v9, 0  ;;  %v9135_v31 = vld [vmem:[#allocation39_spill] sm:$0xff]  ;;  %vm9137_vm2 = vmmov %vm9129_vm6 }
 0x356   : > { %vm8126_vm12 = vcmp.le.f32.partialorder %v9124_v37, 0.7853982  ;;  %v1726_v3 = vsel %vm9130_vm4, %v1725_v30, %v9121_v48  ;;  %v1427_v0 = vsel %vm1425_vm10, %v5285_v40, %v1426_v19  ;;  %v1430_v25 = vsel %vm1428_vm7, %v1429_v5, %v5287_v53  ;;  %v9136_v40 = vld [vmem:[#allocation53_spill] sm:$0xff]  ;;  %vm9138_vm7 = vmmov %vm9137_vm2  ;;  %v9144_v5 = vld [vmem:[#allocation36_spill] sm:$0xff] }
 0x357   : > { %v1727_v22 = vsel %vm8126_vm12, %v9123_v9, %v9128_v13  ;;  %v9132_v47 = vand.u32 2147483647, %v9131_v4  ;;  %vm1525_vm5 = vweird.f32 %v9107_v1  ;;  %vm1528_vm3 = vcmp.eq.s32.totalorder %v8106_v18, 0  ;;  %v9145_v30 = vld [vmem:[#allocation51_spill] sm:$0xff]  ;;  %vm9147_vm4 = vmmov %vm9137_vm2 }
 0x358   : > { %5296 = vcosq.f32 %v1727_v22  ;;  %v1828_v54 = vsub.s32 4, %v9135_v31  ;;  %4934 = vmatmul.mubr.msk.f32.gmra.mrb[2].mxu1 %vm9137_vm2, %v8051_v7  ;;  %v1329_v42 = vsel %vm1319_vm8, nan, %v1328_v46  ;;  %vm1531_vm0 = vcmp.eq.s32.totalorder %v8106_v18, 2  ;;  %v9153_v18 = vld [vmem:[#allocation46_spill] sm:$0xff]  ;;  %v9158_v1 = vld [vmem:[#allocation35_spill] sm:$0xff] }
 0x359   : > { %vm8154_vm13 = vcmp.le.f32.partialorder %v9132_v47, 0.7853982  ;;  %5298 = vsinq.f32 %v1727_v22  ;;  %vm1628_vm14 = vweird.f32 %v6107_v6  ;;  %vm1630_vm10 = vcmp.lt.s32.totalorder %v1629_v12, 2  ;;  %4936 = vmatprep.mubr.msk.f32.mxu1 %vm9138_vm7, %v8063_v36 }
 0x35a   : > { %v1830_v53 = vsel %vm8154_vm13, %v9131_v4, %v9136_v40  ;;  %v1728_v32 = vsel %vm8126_vm12, 0, %v1726_v3  ;;  %v1431_v10 = vsel %vm1424_vm9, %v1427_v0, %v1430_v25  ;;  %v1530_v34 = vsel %vm1528_vm3, %v5289_v49, %v1529_v8  ;;  %v5293_v7 = vpop.eup %5292  ;;  %vm9146_vm9 = vmmov %vm9137_vm2  ;;  %v9154_v0 = vld [vmem:[#allocation60_spill] sm:$0xff] }
 0x35b   : > { %v1533_v35 = vsel %vm1531_vm0, %v1532_v16, %v5291_v50  ;;  %5300 = vcosq.f32 %v1830_v53  ;;  %vm9139_vm8 = vcmp.lt.s32.totalorder %v9131_v4, 0  ;;  %v9141_v41 = vand.u32 2147483647, %v9140_v43  ;;  %v5295_v48 = vpop.eup %5294  ;;  %vm9155_vm0 = vmmov %vm9147_vm4 }
 0x35c   : > { %v1829_v61 = vsel %vm9139_vm8, %v1828_v54, %v9135_v31  ;;  %5302 = vsinq.f32 %v1830_v53  ;;  %v1931_v36 = vsub.s32 4, %v9144_v5  ;;  %vm1631_vm12 = vcmp.eq.s32.totalorder %v1629_v12, 0  ;;  %4937 = vmatmul.mubr.msk.f32.gmra.mrb[4].mxu1 %vm9146_vm9, %v8094_v33  ;;  %vm9165_vm9 = vmmov %vm9155_vm0 }
 0x35d   : > { %vm8183_vm11 = vcmp.le.f32.partialorder %v9141_v41, 0.7853982  ;;  %v1635_v11 = vxor.u32 2147483648, %v5293_v7  ;;  %v1732_v49 = vand.u32 3, %v1728_v32  ;;  %v1432_v28 = vsel %vm1422_vm1, nan, %v1431_v10  ;;  %4939 = vmatprep.mubr.msk.f32.mxu1 %vm9147_vm4, %v1226_v2 }
 0x35e   : > { %v1933_v37 = vsel %vm8183_vm11, %v9140_v43, %v9145_v30  ;;  %v1632_v44 = vxor.u32 2147483648, %v5295_v48  ;;  %vm1634_vm6 = vcmp.eq.s32.totalorder %v1629_v12, 2  ;;  %v1534_v50 = vsel %vm1527_vm15, %v1530_v34, %v1533_v35  ;;  %v9162_v35 = vld [vmem:[#allocation44_spill] sm:$0xff] }
 0x35f   : > { %5304 = vcosq.f32 %v1933_v37  ;;  %v1636_v46 = vsel %vm1634_vm6, %v1635_v11, %v5295_v48  ;;  %v1831_v13 = vsel %vm8154_vm13, 0, %v1829_v61  ;;  %vm9148_vm3 = vcmp.lt.s32.totalorder %v9140_v43, 0 }
 0x360   : > { %v1932_v22 = vsel %vm9148_vm3, %v1931_v36, %v9144_v5  ;;  %v1633_v33 = vsel %vm1631_vm12, %v5293_v7, %v1632_v44  ;;  %vm1731_vm2 = vweird.f32 %v9123_v9  ;;  %5306 = vsinq.f32 %v1933_v37  ;;  %4940 = vmatmul.mubr.msk.f32.gmra.mrb[6].mxu1 %vm9155_vm0, %v1329_v42  ;;  %v9163_v5 = vld [vmem:[#allocation56_spill] sm:$0xff]  ;;  %v9169_v9 = vld [vmem:[#allocation45_spill] sm:$0xff] }
 0x361   : > { %v9150_v8 = vand.u32 2147483647, %v9149_v62  ;;  %v2034_v2 = vsub.s32 4, %v9153_v18  ;;  %v1637_v3 = vsel %vm1630_vm10, %v1633_v33, %v1636_v46  ;;  %vm1733_vm15 = vcmp.lt.s32.totalorder %v1732_v49, 2  ;;  %vm9157_vm10 = vmmov %vm9155_vm0 }
 0x362   : > { %vm1734_vm13 = vcmp.eq.s32.totalorder %v1732_v49, 0  ;;  %v5297_v47 = vpop.eup %5296  ;;  %v1535_v15 = vsel %vm1525_vm5, nan, %v1534_v50  ;;  %vm1737_vm7 = vcmp.eq.s32.totalorder %v1732_v49, 2  ;;  %vm9156_vm8 = vcmp.lt.s32.totalorder %v9149_v62, 0  ;;  %4942 = vmatprep.mubr.msk.f32.mxu1 %vm9157_vm10, %v1432_v28 }
 0x363   : > { %vm8207_vm1 = vcmp.le.f32.partialorder %v9150_v8, 0.7853982  ;;  %v2035_v31 = vsel %vm9156_vm8, %v2034_v2, %v9153_v18  ;;  %v5299_v12 = vpop.eup %5298  ;;  %v1638_v54 = vsel %vm1628_vm14, nan, %v1637_v3  ;;  %v1738_v40 = vxor.u32 2147483648, %v5297_v47  ;;  %vm9164_vm14 = vmmov %vm9155_vm0  ;;  %v9168_v2 = vld [vmem:[#allocation52_spill] sm:$0xff] }
 0x364   : > { %v2036_v25 = vsel %vm8207_vm1, %v9149_v62, %v9154_v0  ;;  %v1835_v53 = vand.u32 3, %v1831_v13  ;;  %v1934_v42 = vsel %vm8183_vm11, 0, %v1932_v22  ;;  %v1735_v32 = vxor.u32 2147483648, %v5299_v12  ;;  %4943 = vmatmul.mubr.msk.f32.gmra.mrb[8].mxu1 %vm9164_vm14, %v1535_v15  ;;  %vm9180_vm14 = vmmov %vm9155_vm0 }
 0x365   : > { %5308 = vcosq.f32 %v2036_v25  ;;  %v9159_v10 = vand.u32 2147483647, %v9158_v1  ;;  %v2137_v7 = vsub.s32 4, %v9162_v35  ;;  %v5301_v61 = vpop.eup %5300  ;;  %v1739_v41 = vsel %vm1737_vm7, %v1738_v40, %v5299_v12  ;;  %4945 = vmatprep.mubr.msk.f32.mxu1 %vm9165_vm9, %v1638_v54  ;;  %v9173_v54 = vld [vmem:[#allocation63_spill] sm:$0xff] }
 0x366   : > { %5310 = vsinq.f32 %v2036_v25  ;;  %vm1834_vm12 = vweird.f32 %v9131_v4  ;;  %v2037_v6 = vsel %vm8207_vm1, 0, %v2035_v31  ;;  %v5303_v36 = vpop.eup %5302  ;;  %v1736_v48 = vsel %vm1734_vm13, %v5297_v47, %v1735_v32  ;;  %vm9167_vm13 = vmmov %vm9155_vm0 }
 0x367   : > { %vm8230_vm5 = vcmp.le.f32.partialorder %v9159_v10, 0.7853982  ;;  %v1841_v11 = vxor.u32 2147483648, %v5301_v61  ;;  %vm1937_vm11 = vweird.f32 %v9140_v43  ;;  %v1938_v30 = vand.u32 3, %v1934_v42 }
 0x368   : > { %v2139_v19 = vsel %vm8230_vm5, %v9158_v1, %v9163_v5  ;;  %v1740_v37 = vsel %vm1733_vm15, %v1736_v48, %v1739_v41  ;;  %v1838_v28 = vxor.u32 2147483648, %v5303_v36  ;;  %vm1840_vm6 = vcmp.eq.s32.totalorder %v1835_v53, 2 }
 0x369   : > { %5312 = vcosq.f32 %v2139_v19  ;;  %vm9166_vm4 = vcmp.lt.s32.totalorder %v9158_v1, 0  ;;  %v5305_v50 = vpop.eup %5304  ;;  %vm1836_vm3 = vcmp.lt.s32.totalorder %v1835_v53, 2  ;;  %vm1837_vm1 = vcmp.eq.s32.totalorder %v1835_v53, 0 }
 0x36a   : > { %v2138_v44 = vsel %vm9166_vm4, %v2137_v7, %v9162_v35  ;;  %v1842_v46 = vsel %vm1840_vm6, %v1841_v11, %v5303_v36  ;;  %v2041_v13 = vand.u32 3, %v2037_v6  ;;  %v1741_v22 = vsel %vm1731_vm2, nan, %v1740_v37  ;;  %v5307_v16 = vpop.eup %5306  ;;  %v9175_v35 = vld [vmem:[#allocation42_spill] sm:$0xff] }
 0x36b   : > { %v1839_v33 = vsel %vm1837_vm1, %v5301_v61, %v1838_v28  ;;  %v1944_v8 = vxor.u32 2147483648, %v5305_v50  ;;  %5314 = vsinq.f32 %v2139_v19  ;;  %4946 = vmatmul.mubr.msk.f32.gmra.mrb[10].mxu1 %vm9167_vm13, %v1741_v22  ;;  %vm1943_vm15 = vcmp.eq.s32.totalorder %v1938_v30, 2  ;;  %v9179_v19 = vld [vmem:[#allocation48_spill] sm:$0xff]  ;;  %vm9188_vm13 = vmmov %vm9155_vm0 }
 0x36c   : > { %v1843_v49 = vsel %vm1836_vm3, %v1839_v33, %v1842_v46  ;;  %v2140_v18 = vsel %vm8230_vm5, 0, %v2138_v44  ;;  %v2240_v3 = vsub.s32 4, %v9168_v2  ;;  %v1941_v25 = vxor.u32 2147483648, %v5307_v16  ;;  %v9183_v33 = vld [vmem:[#allocation50_spill] sm:$0xff] }
 0x36d   : > { %v1844_v0 = vsel %vm1834_vm12, nan, %v1843_v49  ;;  %v1945_v47 = vsel %vm1943_vm15, %v1944_v8, %v5307_v16  ;;  %v9170_v15 = vand.u32 2147483647, %v9169_v9  ;;  %vm1939_vm7 = vcmp.lt.s32.totalorder %v1938_v30, 2  ;;  %v9187_v49 = vld [vmem:[#allocation58_spill] sm:$0xff] }
 0x36e   : > { %4948 = vmatprep.mubr.msk.f32.mxu1 %vm9155_vm0, %v1844_v0  ;;  %vm1940_vm8 = vcmp.eq.s32.totalorder %v1938_v30, 0  ;;  %vm2046_vm10 = vcmp.eq.s32.totalorder %v2041_v13, 2  ;;  %vm9174_vm5 = vcmp.lt.s32.totalorder %v9169_v9, 0  ;;  %v2144_v34 = vand.u32 3, %v2140_v18  ;;  %v9181_v30 = vld [vmem:[#allocation61_spill] sm:$0xff]  ;;  %v9189_v0 = vld [vmem:[#allocation67_spill] sm:$0xff] }
 0x36f   : > { %vm8260_vm2 = vcmp.le.f32.partialorder %v9170_v15, 0.7853982  ;;  %v5309_v12 = vpop.eup %5308  ;;  %v1942_v40 = vsel %vm1940_vm8, %v5305_v50, %v1941_v25  ;;  %v2241_v42 = vsel %vm9174_vm5, %v2240_v3, %v9168_v2  ;;  %v9176_v7 = vand.u32 2147483647, %v9175_v35 }
 0x370   : > { %v2242_v4 = vsel %vm8260_vm2, %v9169_v9, %v9173_v54  ;;  %v2047_v53 = vxor.u32 2147483648, %v5309_v12  ;;  %v5311_v32 = vpop.eup %5310  ;;  %v1946_v10 = vsel %vm1939_vm7, %v1942_v40, %v1945_v47  ;;  %v2343_v36 = vsub.s32 4, %v9179_v19 }
 0x371   : > { %5316 = vcosq.f32 %v2242_v4  ;;  %vm8274_vm12 = vcmp.le.f32.partialorder %v9176_v7, 0.7853982  ;;  %v1947_v41 = vsel %vm1937_vm11, nan, %v1946_v10  ;;  %v2044_v6 = vxor.u32 2147483648, %v5311_v32  ;;  %v9196_v7 = vld [vmem:[#allocation66_spill] sm:$0xff] }
 0x372   : > { %5318 = vsinq.f32 %v2242_v4  ;;  %v2048_v5 = vsel %vm2046_vm10, %v2047_v53, %v5311_v32  ;;  %4949 = vmatmul.mubr.msk.f32.gmra.mrb[12].mxu1 %vm9180_vm14, %v1947_v41  ;;  %vm2042_vm9 = vcmp.lt.s32.totalorder %v2041_v13, 2  ;;  %vm2043_vm6 = vcmp.eq.s32.totalorder %v2041_v13, 0  ;;  %v9191_v4 = vld [vmem:[#allocation47_spill] sm:$0xff] }
 0x373   : > { %v5313_v48 = vpop.eup %5312  ;;  %v2243_v11 = vsel %vm8260_vm2, 0, %v2241_v42  ;;  %v2345_v37 = vsel %vm8274_vm12, %v9175_v35, %v9181_v30  ;;  %v2045_v28 = vsel %vm2043_vm6, %v5309_v12, %v2044_v6  ;;  %vm9182_vm11 = vcmp.lt.s32.totalorder %v9175_v35, 0 }
 0x374   : > { %v2150_v43 = vxor.u32 2147483648, %v5313_v48  ;;  %v2344_v44 = vsel %vm9182_vm11, %v2343_v36, %v9179_v19  ;;  %5320 = vcosq.f32 %v2345_v37  ;;  %vm2040_vm4 = vweird.f32 %v9149_v62 }
 0x375   : > { %v2049_v50 = vsel %vm2042_vm9, %v2045_v28, %v2048_v5  ;;  %v2346_v46 = vsel %vm8274_vm12, 0, %v2344_v44  ;;  %5322 = vsinq.f32 %v2345_v37  ;;  %v5315_v13 = vpop.eup %5314  ;;  %vm2149_vm3 = vcmp.eq.s32.totalorder %v2144_v34, 2  ;;  %vm9197_vm12 = vmmov %vm9188_vm13  ;;  %v9203_v28 = vld [vmem:[#allocation62_spill] sm:$0xff] }
 0x376   : > { %v2050_v22 = vsel %vm2040_vm4, nan, %v2049_v50  ;;  %v9184_v8 = vand.u32 2147483647, %v9183_v33  ;;  %v2446_v18 = vsub.s32 4, %v9187_v49  ;;  %v2147_v2 = vxor.u32 2147483648, %v5315_v13 }
 0x377   : > { %4951 = vmatprep.mubr.msk.f32.mxu1 %vm9188_vm13, %v2050_v22  ;;  %v2151_v62 = vsel %vm2149_vm3, %v2150_v43, %v5315_v13  ;;  %v2247_v3 = vand.u32 3, %v2243_v11  ;;  %vm2143_vm15 = vweird.f32 %v9158_v1  ;;  %vm2146_vm2 = vcmp.eq.s32.totalorder %v2144_v34, 0  ;;  %v9195_v1 = vld [vmem:[#allocation55_spill] sm:$0xff]  ;;  %v9199_v11 = vld [vmem:[#allocation57_spill] sm:$0xff] }
 0x378   : > { %vm8296_vm1 = vcmp.le.f32.partialorder %v9184_v8, 0.7853982  ;;  %vm2246_vm0 = vweird.f32 %v9169_v9  ;;  %v2350_v47 = vand.u32 3, %v2346_v46  ;;  %vm2145_vm7 = vcmp.lt.s32.totalorder %v2144_v34, 2  ;;  %v9204_v22 = vld [vmem:[#allocation71_spill] sm:$0xff] }
 0x379   : > { %v2448_v25 = vsel %vm8296_vm1, %v9183_v33, %v9189_v0  ;;  %v2148_v15 = vsel %vm2146_vm2, %v5313_v48, %v2147_v2  ;;  %vm9190_vm8 = vcmp.lt.s32.totalorder %v9183_v33, 0  ;;  %v9192_v40 = vand.u32 2147483647, %v9191_v4 }
 0x37a   : > { %v2447_v31 = vsel %vm9190_vm8, %v2446_v18, %v9187_v49  ;;  %5324 = vcosq.f32 %v2448_v25  ;;  %v2152_v54 = vsel %vm2145_vm7, %v2148_v15, %v2151_v62  ;;  %v2549_v42 = vsub.s32 4, %v9195_v1 }
 0x37b   : > { %v5317_v12 = vpop.eup %5316  ;;  %5326 = vsinq.f32 %v2448_v25  ;;  %vm8313_vm10 = vcmp.le.f32.partialorder %v9192_v40, 0.7853982  ;;  %v2153_v10 = vsel %vm2143_vm15, nan, %v2152_v54  ;;  %vm2248_vm5 = vcmp.lt.s32.totalorder %v2247_v3, 2 }
 0x37c   : > { %v5319_v32 = vpop.eup %5318  ;;  %v2253_v34 = vxor.u32 2147483648, %v5317_v12  ;;  %v2551_v61 = vsel %vm8313_vm10, %v9191_v4, %v9196_v7  ;;  %4952 = vmatmul.mubr.msk.f32.gmra.mrb[14].mxu1 %vm9197_vm12, %v2153_v10  ;;  %vm2249_vm14 = vcmp.eq.s32.totalorder %v2247_v3, 0  ;;  %vm2252_vm9 = vcmp.eq.s32.totalorder %v2247_v3, 2 }
 0x37d   : > { %v2250_v41 = vxor.u32 2147483648, %v5319_v32  ;;  %vm2355_vm6 = vcmp.eq.s32.totalorder %v2350_v47, 2  ;;  %v2449_v5 = vsel %vm8296_vm1, 0, %v2447_v31  ;;  %vm9198_vm11 = vcmp.lt.s32.totalorder %v9191_v4, 0  ;;  %vm9206_vm1 = vmmov %vm9197_vm12  ;;  %v9207_v31 = vld [vmem:[#allocation54_spill] sm:$0xff] }
 0x37e   : > { %v2254_v6 = vsel %vm2252_vm9, %v2253_v34, %v5319_v32  ;;  %v2550_v19 = vsel %vm9198_vm11, %v2549_v42, %v9195_v1  ;;  %5328 = vcosq.f32 %v2551_v61  ;;  %v5321_v36 = vpop.eup %5320  ;;  %v9200_v30 = vand.u32 2147483647, %v9199_v11  ;;  %v9212_v42 = vld [vmem:[#allocation68_spill] sm:$0xff] }
 0x37f   : > { %v2251_v48 = vsel %vm2249_vm14, %v5317_v12, %v2250_v41  ;;  %5330 = vsinq.f32 %v2551_v61  ;;  %v2652_v43 = vsub.s32 4, %v9203_v28  ;;  %v5323_v44 = vpop.eup %5322  ;;  %v2356_v46 = vxor.u32 2147483648, %v5321_v36 }
 0x380   : > { %vm8330_vm4 = vcmp.le.f32.partialorder %v9200_v30, 0.7853982  ;;  %v2255_v50 = vsel %vm2248_vm5, %v2251_v48, %v2254_v6  ;;  %v2552_v13 = vsel %vm8313_vm10, 0, %v2550_v19  ;;  %v2353_v49 = vxor.u32 2147483648, %v5323_v44  ;;  %vm9213_vm10 = vmmov %vm9206_vm1  ;;  %v9217_v19 = vld [vmem:[#allocation65_spill] sm:$0xff] }
 0x381   : > { %v2654_v8 = vsel %vm8330_vm4, %v9199_v11, %v9204_v22  ;;  %v2256_v16 = vsel %vm2246_vm0, nan, %v2255_v50  ;;  %vm9205_vm3 = vcmp.lt.s32.totalorder %v9199_v11, 0  ;;  %vm2349_vm13 = vweird.f32 %v9175_v35 }
 0x382   : > { %v2653_v18 = vsel %vm9205_vm3, %v2652_v43, %v9203_v28  ;;  %5332 = vcosq.f32 %v2654_v8  ;;  %4954 = vmatprep.mubr.msk.f32.mxu1 %vm9206_vm1, %v2256_v16  ;;  %vm2352_vm15 = vcmp.eq.s32.totalorder %v2350_v47, 0  ;;  %v2357_v2 = vsel %vm2355_vm6, %v2356_v46, %v5323_v44  ;;  %vm9220_vm3 = vmmov %vm9206_vm1 }
 0x383   : > { %v2453_v62 = vand.u32 3, %v2449_v5  ;;  %vm2351_vm2 = vcmp.lt.s32.totalorder %v2350_v47, 2  ;;  %v2354_v3 = vsel %vm2352_vm15, %v5321_v36, %v2353_v49  ;;  %v2556_v0 = vand.u32 3, %v2552_v13  ;;  %v9211_v47 = vld [vmem:[#allocation59_spill] sm:$0xff] }
 0x384   : > { %5334 = vsinq.f32 %v2654_v8  ;;  %v5325_v9 = vpop.eup %5324  ;;  %v2358_v25 = vsel %vm2351_vm2, %v2354_v3, %v2357_v2  ;;  %vm2452_vm0 = vweird.f32 %v9183_v33  ;;  %v2655_v15 = vsel %vm8330_vm4, 0, %v2653_v18 }
 0x385   : > { %v9208_v12 = vand.u32 2147483647, %v9207_v31  ;;  %v5327_v35 = vpop.eup %5326  ;;  %v2359_v40 = vsel %vm2349_vm13, nan, %v2358_v25  ;;  %v2459_v53 = vxor.u32 2147483648, %v5325_v9  ;;  %v2755_v1 = vsub.s32 4, %v9211_v47 }
 0x386   : > { %vm3598_vm8 = vcmp.lt.s32.totalorder %v7523_v45, 0  ;;  %4955 = vmatmul.mubr.msk.f32.gmra.mrb[16].mxu1 %vm9213_vm10, %v2359_v40  ;;  %vm2454_vm5 = vcmp.lt.s32.totalorder %v2453_v62, 2  ;;  %vm2455_vm12 = vcmp.eq.s32.totalorder %v2453_v62, 0  ;;  %v2456_v10 = vxor.u32 2147483648, %v5327_v35 }
 0x387   : > { %vm8355_vm7 = vcmp.le.f32.partialorder %v9208_v12, 0.7853982  ;;  %vm2458_vm14 = vcmp.eq.s32.totalorder %v2453_v62, 2  ;;  %vm2561_vm9 = vcmp.eq.s32.totalorder %v2556_v0, 2  ;;  %v2659_v7 = vand.u32 3, %v2655_v15 }
 0x388   : > { %v2757_v32 = vsel %vm8355_vm7, %v9207_v31, %v9212_v42  ;;  %v2460_v34 = vsel %vm2458_vm14, %v2459_v53, %v5327_v35  ;;  %v5329_v61 = vpop.eup %5328  ;;  %v2457_v41 = vsel %vm2455_vm12, %v5325_v9, %v2456_v10  ;;  %v9214_v6 = vand.u32 2147483647, %v7013_v21  ;;  %v9224_v9 = vld [vmem:[#allocation64_spill] sm:$0xff]  ;;  %v9230_v10 = vld [vmem:[#allocation70_spill] sm:$0xff] }
 0x389   : > { %5336 = vcosq.f32 %v2757_v32  ;;  %v2858_v36 = vsub.s32 4, %v9217_v19  ;;  %v5331_v48 = vpop.eup %5330  ;;  %v2461_v30 = vsel %vm2454_vm5, %v2457_v41, %v2460_v34  ;;  %v2562_v37 = vxor.u32 2147483648, %v5329_v61 }
 0x38a   : > { %5338 = vsinq.f32 %v2757_v32  ;;  %vm8368_vm6 = vcmp.le.f32.partialorder %v9214_v6, 0.7853982  ;;  %vm9218_vm11 = vcmp.lt.s32.totalorder %v9207_v31, 0  ;;  %v2462_v44 = vsel %vm2452_vm0, nan, %v2461_v30 }
 0x38b   : > { %v2756_v28 = vsel %vm9218_vm11, %v2755_v1, %v9211_v47  ;;  %v2860_v43 = vsel %vm8368_vm6, %v7013_v21, %v7532_v39  ;;  %v2559_v50 = vxor.u32 2147483648, %v5331_v48  ;;  %vm9219_vm4 = vcmp.lt.s32.totalorder %v7013_v21, 0  ;;  %4957 = vmatprep.mubr.msk.f32.mxu1 %vm9220_vm3, %v2462_v44 }
 0x38c   : > { %v2859_v46 = vsel %vm9219_vm4, %v2858_v36, %v9217_v19  ;;  %5340 = vcosq.f32 %v2860_v43  ;;  %v5333_v13 = vpop.eup %5332  ;;  %vm2555_vm1 = vweird.f32 %v9191_v4  ;;  %vm2557_vm13 = vcmp.lt.s32.totalorder %v2556_v0, 2 }
 0x38d   : > { %vm2558_vm15 = vcmp.eq.s32.totalorder %v2556_v0, 0  ;;  %v2563_v22 = vsel %vm2561_vm9, %v2562_v37, %v5331_v48  ;;  %v2665_v39 = vxor.u32 2147483648, %v5333_v13  ;;  %v2758_v33 = vsel %vm8355_vm7, 0, %v2756_v28  ;;  %vm9225_vm7 = vmmov %vm9220_vm3  ;;  %v9233_v37 = vld [vmem:[#allocation69_spill] sm:$0xff] }
 0x38e   : > { %v2560_v8 = vsel %vm2558_vm15, %v5329_v61, %v2559_v50  ;;  %5342 = vsinq.f32 %v2860_v43  ;;  %v5335_v16 = vpop.eup %5334  ;;  %vm2664_vm2 = vcmp.eq.s32.totalorder %v2659_v7, 2  ;;  %v2861_v18 = vsel %vm8368_vm6, 0, %v2859_v46  ;;  %vm9231_vm6 = vmmov %vm9220_vm3 }
 0x38f   : > { %v2564_v49 = vsel %vm2557_vm13, %v2560_v8, %v2563_v22  ;;  %v9221_v2 = vand.u32 2147483647, %v6934_v55  ;;  %v2662_v3 = vxor.u32 2147483648, %v5335_v16  ;;  %v2666_v0 = vsel %vm2664_vm2, %v2665_v39, %v5335_v16  ;;  %v9238_v22 = vld [vmem:[#allocation75_spill] sm:$0xff] }
 0x390   : > { %v2565_v62 = vsel %vm2555_vm1, nan, %v2564_v49  ;;  %v2961_v25 = vsub.s32 4, %v9224_v9  ;;  %v8404_v15 = vsel %vm3598_vm8, %v3680_v20, %v7932_v23  ;;  %vm2661_vm10 = vcmp.eq.s32.totalorder %v2659_v7, 0  ;;  %v9240_v49 = vld [vmem:[#allocation73_spill] sm:$0xff] }
 0x391   : > { %vm8394_vm0 = vcmp.le.f32.partialorder %v9221_v2, 0.7853982  ;;  %4958 = vmatmul.mubr.msk.f32.gmra.mrb[18].mxu1 %vm9225_vm7, %v2565_v62  ;;  %v2762_v12 = vand.u32 3, %v2758_v33  ;;  %vm2660_vm5 = vcmp.lt.s32.totalorder %v2659_v7, 2  ;;  %v2663_v35 = vsel %vm2661_vm10, %v5333_v13, %v2662_v3 }
 0x392   : > { %v2963_v54 = vsel %vm8394_vm0, %v6934_v55, %v7431_v29  ;;  %v2865_v40 = vand.u32 3, %v2861_v18  ;;  %vm2658_vm12 = vweird.f32 %v9199_v11  ;;  %v2667_v47 = vsel %vm2660_vm5, %v2663_v35, %v2666_v0 }
 0x393   : > { %5344 = vcosq.f32 %v2963_v54  ;;  %v5337_v53 = vpop.eup %5336  ;;  %vm9226_vm14 = vcmp.lt.s32.totalorder %v6934_v55, 0  ;;  %v2668_v1 = vsel %vm2658_vm12, nan, %v2667_v47  ;;  %v9227_v32 = vand.u32 2147483647, %v7118_v24 }
 0x394   : > { %v2962_v23 = vsel %vm9226_vm14, %v2961_v25, %v9224_v9  ;;  %5346 = vsinq.f32 %v2963_v54  ;;  %v5339_v20 = vpop.eup %5338  ;;  %v2768_v42 = vxor.u32 2147483648, %v5337_v53  ;;  %v3064_v34 = vsub.s32 4, %v9230_v10  ;;  %4960 = vmatprep.mubr.msk.f32.mxu1 %vm9231_vm6, %v2668_v1  ;;  %v9249_v1 = vld [vmem:[#allocation72_spill] sm:$0xff] }
 0x395   : > { %vm8417_vm9 = vcmp.le.f32.partialorder %v9227_v32, 0.7853982  ;;  %vm2761_vm11 = vweird.f32 %v9207_v31  ;;  %v2765_v11 = vxor.u32 2147483648, %v5339_v20  ;;  %vm2767_vm4 = vcmp.eq.s32.totalorder %v2762_v12, 2 }
 0x396   : > { %v3066_v7 = vsel %vm8417_vm9, %v7118_v24, %v7554_v57  ;;  %v5341_v61 = vpop.eup %5340  ;;  %vm2763_vm3 = vcmp.lt.s32.totalorder %v2762_v12, 2  ;;  %vm2764_vm1 = vcmp.eq.s32.totalorder %v2762_v12, 0  ;;  %v2769_v41 = vsel %vm2767_vm4, %v2768_v42, %v5339_v20 }
 0x397   : > { %vm2870_vm13 = vcmp.eq.s32.totalorder %v2865_v40, 2  ;;  %v2766_v6 = vsel %vm2764_vm1, %v5337_v53, %v2765_v11  ;;  %v2871_v5 = vxor.u32 2147483648, %v5341_v61  ;;  %v2964_v19 = vsel %vm8394_vm0, 0, %v2962_v23  ;;  %vm9237_vm0 = vmmov %vm9231_vm6 }
 0x398   : > { %5348 = vcosq.f32 %v3066_v7  ;;  %v5343_v36 = vpop.eup %5342  ;;  %v2770_v48 = vsel %vm2763_vm3, %v2766_v6, %v2769_v41  ;;  %vm9232_vm15 = vcmp.lt.s32.totalorder %v7118_v24, 0  ;;  %v3167_v57 = vsub.s32 4, %v9233_v37 }
 0x399   : > { %v3065_v30 = vsel %vm9232_vm15, %v3064_v34, %v9230_v10  ;;  %5350 = vsinq.f32 %v3066_v7  ;;  %v2771_v28 = vsel %vm2761_vm11, nan, %v2770_v48  ;;  %v2868_v43 = vxor.u32 2147483648, %v5343_v36 }
 0x39a   : > { %v2872_v44 = vsel %vm2870_vm13, %v2871_v5, %v5343_v36  ;;  %v9234_v50 = vand.u32 2147483647, %v7075_v60  ;;  %4961 = vmatmul.mubr.msk.f32.gmra.mrb[20].mxu1 %vm9237_vm0, %v2771_v28  ;;  %vm2864_vm7 = vweird.f32 %v7013_v21  ;;  %vm2867_vm10 = vcmp.eq.s32.totalorder %v2865_v40, 0 }
 0x39b   : > { %v2968_v13 = vand.u32 3, %v2964_v19  ;;  %vm2866_vm5 = vcmp.lt.s32.totalorder %v2865_v40, 2  ;;  %v2869_v8 = vsel %vm2867_vm10, %v5341_v61, %v2868_v43  ;;  %vm2967_vm12 = vweird.f32 %v6934_v55  ;;  %v9254_v19 = vld [vmem:[#allocation76_spill] sm:$0xff] }
 0x39c   : > { %vm8438_vm2 = vcmp.le.f32.partialorder %v9234_v50, 0.7853982  ;;  %v3067_v39 = vsel %vm8417_vm9, 0, %v3065_v30  ;;  %v2873_v16 = vsel %vm2866_vm5, %v2869_v8, %v2872_v44  ;;  %vm9239_vm14 = vcmp.lt.s32.totalorder %v7075_v60, 0  ;;  %vm9244_vm9 = vmmov %vm9237_vm0 }
 0x39d   : > { %v3169_v31 = vsel %vm8438_vm2, %v7075_v60, %v9238_v22  ;;  %v5345_v33 = vpop.eup %5344  ;;  %v3168_v21 = vsel %vm9239_vm14, %v3167_v57, %v9233_v37  ;;  %v3270_v18 = vsub.s32 4, %v9240_v49  ;;  %v2874_v4 = vsel %vm2864_vm7, nan, %v2873_v16 }
 0x39e   : > { %5352 = vcosq.f32 %v3169_v31  ;;  %v5347_v2 = vpop.eup %5346  ;;  %v2974_v62 = vxor.u32 2147483648, %v5345_v33  ;;  %v9241_v3 = vand.u32 2147483647, %v7251_v27  ;;  %4963 = vmatprep.mubr.msk.f32.mxu1 %vm9244_vm9, %v2874_v4  ;;  %vm2973_vm11 = vcmp.eq.s32.totalorder %v2968_v13, 2 }
 0x39f   : > { %5354 = vsinq.f32 %v3169_v31  ;;  %v2971_v9 = vxor.u32 2147483648, %v5347_v2  ;;  %v3071_v25 = vand.u32 3, %v3067_v39  ;;  %vm2969_vm4 = vcmp.lt.s32.totalorder %v2968_v13, 2 }
 0x3a0   : > { %vm8457_vm6 = vcmp.le.f32.partialorder %v9241_v3, 0.7853982  ;;  %vm2970_vm3 = vcmp.eq.s32.totalorder %v2968_v13, 0  ;;  %v2975_v54 = vsel %vm2973_vm11, %v2974_v62, %v5347_v2  ;;  %vm3070_vm1 = vweird.f32 %v7118_v24  ;;  %vm9255_vm11 = vmmov %vm9237_vm0 }
 0x3a1   : > { %v3272_v12 = vsel %vm8457_vm6, %v7251_v27, %v7819_v14  ;;  %v2972_v35 = vsel %vm2970_vm3, %v5345_v33, %v2971_v9  ;;  %v3170_v40 = vsel %vm8438_vm2, 0, %v3168_v21  ;;  %vm9245_vm13 = vcmp.lt.s32.totalorder %v7251_v27, 0  ;;  %v9260_v33 = vld [vmem:[#allocation74_spill] sm:$0xff] }
 0x3a2   : > { %v3271_v53 = vsel %vm9245_vm13, %v3270_v18, %v9240_v49  ;;  %5356 = vcosq.f32 %v3272_v12  ;;  %v5349_v47 = vpop.eup %5348  ;;  %v2976_v23 = vsel %vm2969_vm4, %v2972_v35, %v2975_v54  ;;  %v9246_v20 = vand.u32 2147483647, %v7196_v38 }
 0x3a3   : > { %5358 = vsinq.f32 %v3272_v12  ;;  %v3373_v42 = vsub.s32 4, %v9249_v1  ;;  %v5351_v32 = vpop.eup %5350  ;;  %v2977_v29 = vsel %vm2967_vm12, nan, %v2976_v23  ;;  %vm3072_vm2 = vcmp.lt.s32.totalorder %v3071_v25, 2 }
 0x3a4   : > { %vm8474_vm15 = vcmp.le.f32.partialorder %v9246_v20, 0.7853982  ;;  %v3077_v10 = vxor.u32 2147483648, %v5349_v47  ;;  %4964 = vmatmul.mubr.msk.f32.gmra.mrb[22].mxu1 %vm9237_vm0, %v2977_v29  ;;  %v3074_v11 = vxor.u32 2147483648, %v5351_v32  ;;  %vm3076_vm7 = vcmp.eq.s32.totalorder %v3071_v25, 2 }
 0x3a5   : > { %v3375_v34 = vsel %vm8474_vm15, %v7196_v38, %v7608_v59  ;;  %vm3173_vm10 = vweird.f32 %v7075_v60  ;;  %v3174_v7 = vand.u32 3, %v3170_v40  ;;  %v3273_v61 = vsel %vm8457_vm6, 0, %v3271_v53 }
 0x3a6   : > { %vm3073_vm5 = vcmp.eq.s32.totalorder %v3071_v25, 0  ;;  %v3078_v55 = vsel %vm3076_vm7, %v3077_v10, %v5351_v32  ;;  %vm9250_vm12 = vcmp.lt.s32.totalorder %v7196_v38, 0  ;;  %5360 = vcosq.f32 %v3375_v34  ;;  %vm9261_vm7 = vmmov %vm9255_vm11 }
 0x3a7   : > { %v3374_v41 = vsel %vm9250_vm12, %v3373_v42, %v9249_v1  ;;  %v3075_v6 = vsel %vm3073_vm5, %v5349_v47, %v3074_v11  ;;  %5362 = vsinq.f32 %v3375_v34  ;;  %v9251_v59 = vand.u32 2147483647, %v7384_v51 }
 0x3a8   : > { %v3476_v36 = vsub.s32 4, %v9254_v19  ;;  %v5353_v48 = vpop.eup %5352  ;;  %v3079_v30 = vsel %vm3072_vm2, %v3075_v6, %v3078_v55  ;;  %v3277_v37 = vand.u32 3, %v3273_v61  ;;  %v3376_v57 = vsel %vm8474_vm15, 0, %v3374_v41  ;;  %v9270_v6 = vld [vmem:[#allocation77_spill] sm:$0xff] }
 0x3a9   : > { %vm8494_vm14 = vcmp.le.f32.partialorder %v9251_v59, 0.7853982  ;;  %v5355_v43 = vpop.eup %5354  ;;  %v3080_v44 = vsel %vm3070_vm1, nan, %v3079_v30  ;;  %vm3175_vm6 = vcmp.lt.s32.totalorder %v3174_v7, 2  ;;  %v3180_v50 = vxor.u32 2147483648, %v5353_v48 }
 0x3aa   : > { %v3478_v28 = vsel %vm8494_vm14, %v7384_v51, %v7843_v63  ;;  %vm3276_vm9 = vweird.f32 %v7251_v27  ;;  %4966 = vmatprep.mubr.msk.f32.mxu1 %vm9255_vm11, %v3080_v44  ;;  %vm3176_vm4 = vcmp.eq.s32.totalorder %v3174_v7, 0  ;;  %v3177_v46 = vxor.u32 2147483648, %v5355_v43 }
 0x3ab   : > { %5364 = vcosq.f32 %v3478_v28  ;;  %vm3179_vm3 = vcmp.eq.s32.totalorder %v3174_v7, 2  ;;  %vm9256_vm13 = vcmp.lt.s32.totalorder %v7384_v51, 0  ;;  %v3380_v63 = vand.u32 3, %v3376_v57 }
 0x3ac   : > { %v3477_v13 = vsel %vm9256_vm13, %v3476_v36, %v9254_v19  ;;  %v3181_v22 = vsel %vm3179_vm3, %v3180_v50, %v5355_v43  ;;  %5366 = vsinq.f32 %v3478_v28  ;;  %v9257_v24 = vand.u32 2147483647, %v7325_v26  ;;  %v5357_v8 = vpop.eup %5356 }
 0x3ad   : > { %v3178_v39 = vsel %vm3176_vm4, %v5353_v48, %v3177_v46  ;;  %vm3278_vm15 = vcmp.lt.s32.totalorder %v3277_v37, 2  ;;  %v3579_v16 = vsub.s32 4, %v9260_v33  ;;  %v5359_v49 = vpop.eup %5358  ;;  %v3283_v2 = vxor.u32 2147483648, %v5357_v8 }
 0x3ae   : > { %vm8515_vm1 = vcmp.le.f32.partialorder %v9257_v24, 0.7853982  ;;  %v3182_v18 = vsel %vm3175_vm6, %v3178_v39, %v3181_v22  ;;  %v3479_v4 = vsel %vm8494_vm14, 0, %v3477_v13  ;;  %vm3279_vm2 = vcmp.eq.s32.totalorder %v3277_v37, 0 }
 0x3af   : > { %v3581_v21 = vsel %vm8515_vm1, %v7325_v26, %v7823_v58  ;;  %v3183_v62 = vsel %vm3173_vm10, nan, %v3182_v18  ;;  %v3280_v3 = vxor.u32 2147483648, %v5359_v49  ;;  %vm3282_vm0 = vcmp.eq.s32.totalorder %v3277_v37, 2  ;;  %vm9266_vm10 = vmmov %vm9261_vm7 }
 0x3b0   : > { %5368 = vcosq.f32 %v3581_v21  ;;  %4967 = vmatmul.mubr.msk.f32.gmra.mrb[24].mxu1 %vm9261_vm7, %v3183_v62  ;;  %v3284_v0 = vsel %vm3282_vm0, %v3283_v2, %v5359_v49  ;;  %vm3385_vm5 = vcmp.eq.s32.totalorder %v3380_v63, 2  ;;  %vm9262_vm12 = vcmp.lt.s32.totalorder %v7325_v26, 0  ;;  %v5361_v9 = vpop.eup %5360 }
 0x3b1   : > { %v3580_v58 = vsel %vm9262_vm12, %v3579_v16, %v9260_v33  ;;  %5370 = vsinq.f32 %v3581_v21  ;;  %v3281_v25 = vsel %vm3279_vm2, %v5357_v8, %v3280_v3  ;;  %v3483_v12 = vand.u32 3, %v3479_v4  ;;  %v5363_v40 = vpop.eup %5362 }
 0x3b2   : > { %v9263_v54 = vand.u32 2147483647, %v7523_v45  ;;  %v3682_v35 = vsub.s32 4, %v7718_v56  ;;  %v3285_v53 = vsel %vm3278_vm15, %v3281_v25, %v3284_v0  ;;  %v3386_v47 = vxor.u32 2147483648, %v5361_v9 }
 0x3b3   : > { %v3582_v23 = vsel %vm8515_vm1, 0, %v3580_v58  ;;  %v3286_v14 = vsel %vm3276_vm9, nan, %v3285_v53  ;;  %v3383_v1 = vxor.u32 2147483648, %v5363_v40  ;;  %vm3379_vm6 = vweird.f32 %v7196_v38  ;;  %vm9271_vm9 = vmmov %vm9261_vm7 }
 0x3b4   : > { %vm8535_vm14 = vcmp.le.f32.partialorder %v9263_v54, 0.7853982  ;;  %v3683_v42 = vsel %vm3598_vm8, %v3682_v35, %v7718_v56  ;;  %4969 = vmatprep.mubr.msk.f32.mxu1 %vm9266_vm10, %v3286_v14  ;;  %vm3381_vm11 = vcmp.lt.s32.totalorder %v3380_v63, 2  ;;  %vm3382_vm4 = vcmp.eq.s32.totalorder %v3380_v63, 0 }
 0x3b5   : > { %v3684_v20 = vsel %vm8535_vm14, %v7523_v45, %v8404_v15  ;;  %v5365_v32 = vpop.eup %5364  ;;  %v3387_v29 = vsel %vm3385_vm5, %v3386_v47, %v5363_v40  ;;  %v3384_v10 = vsel %vm3382_vm4, %v5361_v9, %v3383_v1  ;;  %vm3488_vm3 = vcmp.eq.s32.totalorder %v3483_v12, 2 }
 0x3b6   : > { %5372 = vcosq.f32 %v3684_v20  ;;  %v3489_v15 = vxor.u32 2147483648, %v5365_v32  ;;  %v5367_v27 = vpop.eup %5366  ;;  %v3388_v34 = vsel %vm3381_vm11, %v3384_v10, %v3387_v29  ;;  %v3586_v11 = vand.u32 3, %v3582_v23 }
 0x3b7   : > { %5374 = vsinq.f32 %v3684_v20  ;;  %v3685_v56 = vsel %vm8535_vm14, 0, %v3683_v42  ;;  %v9267_v7 = vand.u32 2147483647, %v7454_v17  ;;  %v3389_v38 = vsel %vm3379_vm6, nan, %v3388_v34  ;;  %vm9273_vm6 = vmmov %vm9261_vm7 }
 0x3b8   : > { %v3486_v55 = vxor.u32 2147483648, %v5367_v27  ;;  %v3490_v41 = vsel %vm3488_vm3, %v3489_v15, %v5367_v27  ;;  %v3785_v59 = vsub.s32 4, %v9270_v6  ;;  %4970 = vmatmul.mubr.msk.f32.gmra.mrb[26].mxu1 %vm9271_vm9, %v3389_v38  ;;  %vm3482_vm13 = vweird.f32 %v7384_v51  ;;  %vm9274_vm9 = vmmov %vm9273_vm6 }
 0x3b9   : > { %vm8559_vm8 = vcmp.le.f32.partialorder %v9267_v7, 0.7853982  ;;  %vm3485_vm1 = vcmp.eq.s32.totalorder %v3483_v12, 0  ;;  %vm3484_vm15 = vcmp.lt.s32.totalorder %v3483_v12, 2  ;;  %vm3591_vm2 = vcmp.eq.s32.totalorder %v3586_v11, 2 }
 0x3ba   : > { %v5369_v5 = vpop.eup %5368  ;;  %v3787_v19 = vsel %vm8559_vm8, %v7454_v17, %v7864_v52  ;;  %v3487_v36 = vsel %vm3485_vm1, %v5365_v32, %v3486_v55  ;;  %v3689_v57 = vand.u32 3, %v3685_v56  ;;  %vm9272_vm0 = vcmp.lt.s32.totalorder %v7454_v17, 0 }
 0x3bb   : > { %v3592_v48 = vxor.u32 2147483648, %v5369_v5  ;;  %5376 = vcosq.f32 %v3787_v19  ;;  %v5371_v30 = vpop.eup %5370  ;;  %v3491_v37 = vsel %vm3484_vm15, %v3487_v36, %v3490_v41  ;;  %v3786_v51 = vsel %vm9272_vm0, %v3785_v59, %v9270_v6  ;;  %v8628_v59 = vld [vmem:[%s8779_s5] ss:$0 sm:$0xff] }
 0x3bc   : > { %5378 = vsinq.f32 %v3787_v19  ;;  %v3492_v28 = vsel %vm3482_vm13, nan, %v3491_v37  ;;  %v3589_v43 = vxor.u32 2147483648, %v5371_v30  ;;  %vm3588_vm5 = vcmp.eq.s32.totalorder %v3586_v11, 0 }
 0x3bd   : > { %v3593_v44 = vsel %vm3591_vm2, %v3592_v48, %v5371_v30  ;;  %4972 = vmatprep.mubr.msk.f32.mxu1 %vm9261_vm7, %v3492_v28  ;;  %vm3587_vm12 = vcmp.lt.s32.totalorder %v3586_v11, 2  ;;  %vm3585_vm14 = vweird.f32 %v7325_v26  ;;  %v3788_v22 = vsel %vm8559_vm8, 0, %v3786_v51  ;;  %vm9275_vm2 = vmmov %vm9273_vm6 }
 0x3be   : > { %v3590_v50 = vsel %vm3588_vm5, %v5369_v5, %v3589_v43  ;;  %vm3694_vm10 = vcmp.eq.s32.totalorder %v3689_v57, 2  ;;  %vm3691_vm11 = vcmp.eq.s32.totalorder %v3689_v57, 0  ;;  %v3792_v39 = vand.u32 3, %v3788_v22 }
 0x3bf   : > { %v3594_v46 = vsel %vm3587_vm12, %v3590_v50, %v3593_v44  ;;  %vm3690_vm4 = vcmp.lt.s32.totalorder %v3689_v57, 2  ;;  %vm3688_vm3 = vweird.f32 %v7523_v45  ;;  %vm3791_vm15 = vweird.f32 %v7454_v17 }
 0x3c0   : > { %v5373_v52 = vpop.eup %5372  ;;  %v3595_v24 = vsel %vm3585_vm14, nan, %v3594_v46  ;;  %vm3797_vm8 = vcmp.eq.s32.totalorder %v3792_v39, 2  ;;  %vm3794_vm13 = vcmp.eq.s32.totalorder %v3792_v39, 0  ;;  %vm3793_vm1 = vcmp.lt.s32.totalorder %v3792_v39, 2 }
 0x3c1   : > { %v3695_v13 = vxor.u32 2147483648, %v5373_v52  ;;  %v5375_v63 = vpop.eup %5374  ;;  %4973 = vmatmul.mubr.msk.f32.gmra.mrb[28].mxu1 %vm9273_vm6, %v3595_v24 }
 0x3c2   : > { %v3692_v31 = vxor.u32 2147483648, %v5375_v63 }
 0x3c3   : > { %v3696_v8 = vsel %vm3694_vm10, %v3695_v13, %v5375_v63 }
 0x3c4   : > { %v3693_v33 = vsel %vm3691_vm11, %v5373_v52, %v3692_v31 }
 0x3c5   : > { %v5377_v16 = vpop.eup %5376  ;;  %v3697_v26 = vsel %vm3690_vm4, %v3693_v33, %v3696_v8 }
 0x3c6   : > { %v5379_v21 = vpop.eup %5378  ;;  %v3698_v49 = vsel %vm3688_vm3, nan, %v3697_v26  ;;  %v3798_v18 = vxor.u32 2147483648, %v5377_v16 }
 0x3c7   : > { %4975 = vmatprep.mubr.msk.f32.mxu1 %vm9274_vm9, %v3698_v49  ;;  %v3795_v2 = vxor.u32 2147483648, %v5379_v21 }
 0x3c8   : > { %v3799_v4 = vsel %vm3797_vm8, %v3798_v18, %v5379_v21 }
 0x3c9   : > { %v3796_v62 = vsel %vm3794_vm13, %v5377_v16, %v3795_v2 }
 0x3ca   : > { %v3800_v3 = vsel %vm3793_vm1, %v3796_v62, %v3799_v4 }
 0x3cb   : > { %v3801_v0 = vsel %vm3791_vm15, nan, %v3800_v3 }
 0x3cc   : > { %4976 = vmatmul.mubr.msk.f32.gmra.mrb[30].mxu1 %vm9275_vm2, %v3801_v0 }
 0x3e5   : > { %v4984_v58 = vpop.f32.mrb[0].mxu0 }
 0x3e6   : > { %v4325_v45 = vpop.f32.mrb[1].mxu0 }
 0x3e9   : > { %v4987_v9 = vpop.f32.mrb[2].mxu0 }
 0x3ea   : > { %v4335_v25 = vpop.f32.mrb[3].mxu0 }
 0x3ed   : > { %v4990_v12 = vpop.f32.mrb[4].mxu0 }
 0x3ee   : > { %v4345_v54 = vpop.f32.mrb[5].mxu0 }
 0x3f1   : > { %v4993_v60 = vpop.f32.mrb[6].mxu0 }
 0x3f2   : > { %v4355_v35 = vpop.f32.mrb[7].mxu0 }
 0x3f5   : > { %v4996_v40 = vpop.f32.mrb[8].mxu0 }
 0x3f6   : > { %v4365_v53 = vpop.f32.mrb[9].mxu0 }
 0x3f9   : > { %v8582_v47 = vpop.f32.mrb[10].mxu0 }
 0x3fa   : > { %v8584_v23 = vpop.f32.mrb[11].mxu0 }
 0x3fd   : > { %v8586_v20 = vpop.f32.mrb[12].mxu0 }
 0x3fe   : > { %v8588_v17 = vpop.f32.mrb[13].mxu0 }
 0x401   : > { %v8590_v14 = vpop.f32.mrb[14].mxu0 }
 0x402   : > { %v8592_v1 = vpop.f32.mrb[15].mxu0 }
 0x405   : > { %v8594_v42 = vpop.f32.mrb[16].mxu0 }
 0x406   : > { %v8596_v32 = vpop.f32.mrb[17].mxu0 }
 0x409   : > { %v8598_v29 = vpop.f32.mrb[18].mxu0 }
 0x40a   : > { %v8600_v10 = vpop.f32.mrb[19].mxu0 }
 0x40d   : > { %v8602_v15 = vpop.f32.mrb[20].mxu0 }
 0x40e   : > { %v8604_v27 = vpop.f32.mrb[21].mxu0 }
 0x411   : > { %v8606_v34 = vpop.f32.mrb[22].mxu0 }
 0x412   : > { %v8608_v11 = vpop.f32.mrb[23].mxu0 }
 0x416   : > { %v8610_v56 = vpop.f32.mrb[24].mxu0 }
 0x417   : > { %v8612_v7 = vpop.f32.mrb[25].mxu0 }
 0x41a   : > { %v8614_v61 = vpop.f32.mrb[26].mxu0 }
 0x41b   : > { %v8616_v38 = vpop.f32.mrb[27].mxu0 }
 0x41e   : > { %v8619_v55 = vpop.f32.mrb[28].mxu0 }
 0x41f   : > { %v8623_v41 = vpop.f32.mrb[29].mxu0 }
 0x423   : > { %v8630_v48 = vpop.f32.mrb[30].mxu0 }
 0x424   : > { %v8633_v37 = vpop.f32.mrb[31].mxu0 }
 0x427   : > { %v4932_v6 = vpop.f32.mrb[0].mxu1 }
 0x428   : > { %v4331_v5 = vadd.f32 %v4984_v58, %v4932_v6  ;;  %v4003_v19 = vpop.f32.mrb[1].mxu1 }
 0x429   : > { %v4326_v36 = vadd.f32 %v4325_v45, %v4003_v19 }
 0x42a   : > { %v4492_v30 = vadd.f32 %v8628_v59, %v4331_v5 }
 0x42b   : > { %v4491_v57 = vadd.f32 %v8628_v59, %v4326_v36  ;;  %v4935_v28 = vpop.f32.mrb[2].mxu1 }
 0x42c   : > { %4524 = vst [vmem:[%s8636_s15 + $0x8] sm:$0xff] %v4492_v30  ;;  %v4341_v43 = vadd.f32 %v4987_v9, %v4935_v28  ;;  %v4013_v44 = vpop.f32.mrb[3].mxu1 }
 0x42d   : > { %4523 = vst [vmem:[%s8636_s15] sm:$0xff] %v4491_v57  ;;  %v4336_v51 = vadd.f32 %v4335_v25, %v4013_v44 }
 0x42e   : > { %v4494_v52 = vadd.f32 %v8628_v59, %v4341_v43 }
 0x42f   : > { %v4493_v50 = vadd.f32 %v8628_v59, %v4336_v51  ;;  %v4938_v46 = vpop.f32.mrb[4].mxu1 }
 0x430   : > { %4526 = vst [vmem:[%s8636_s15 + $0x18] sm:$0xff] %v4494_v52  ;;  %v4351_v13 = vadd.f32 %v4990_v12, %v4938_v46  ;;  %v4023_v22 = vpop.f32.mrb[5].mxu1 }
 0x431   : > { %4525 = vst [vmem:[%s8636_s15 + $0x10] sm:$0xff] %v4493_v50  ;;  %v4346_v63 = vadd.f32 %v4345_v54, %v4023_v22 }
 0x432   : > { %v4496_v24 = vadd.f32 %v8628_v59, %v4351_v13 }
 0x433   : > { %v4495_v31 = vadd.f32 %v8628_v59, %v4346_v63  ;;  %v4941_v8 = vpop.f32.mrb[6].mxu1 }
 0x434   : > { %4528 = vst [vmem:[%s8636_s15 + $0x28] sm:$0xff] %v4496_v24  ;;  %v4361_v39 = vadd.f32 %v4993_v60, %v4941_v8  ;;  %v4033_v33 = vpop.f32.mrb[7].mxu1 }
 0x435   : > { %4527 = vst [vmem:[%s8636_s15 + $0x20] sm:$0xff] %v4495_v31  ;;  %v4356_v16 = vadd.f32 %v4355_v35, %v4033_v33 }
 0x436   : > { %v4498_v26 = vadd.f32 %v8628_v59, %v4361_v39 }
 0x437   : > { %v4497_v21 = vadd.f32 %v8628_v59, %v4356_v16  ;;  %v4944_v49 = vpop.f32.mrb[8].mxu1 }
 0x438   : > { %4530 = vst [vmem:[%s8636_s15 + $0x38] sm:$0xff] %v4498_v26  ;;  %v4371_v18 = vadd.f32 %v4996_v40, %v4944_v49  ;;  %v4043_v2 = vpop.f32.mrb[9].mxu1 }
 0x439   : > { %4529 = vst [vmem:[%s8636_s15 + $0x30] sm:$0xff] %v4497_v21  ;;  %v4366_v4 = vadd.f32 %v4365_v53, %v4043_v2 }
 0x43a   : > { %v4500_v62 = vadd.f32 %v8628_v59, %v4371_v18 }
 0x43b   : > { %v4499_v3 = vadd.f32 %v8628_v59, %v4366_v4 }
 0x43c   : > { %4532 = vst [vmem:[%s8636_s15 + $0x48] sm:$0xff] %v4500_v62 }
 0x43d   : > { %4531 = vst [vmem:[%s8636_s15 + $0x40] sm:$0xff] %v4499_v3 }
 0x43e   : > { %v4947_v0 = vpop.f32.mrb[10].mxu1 }
 0x43f   : > { %v4381_v58 = vadd.f32 %v8582_v47, %v4947_v0  ;;  %v4053_v45 = vpop.f32.mrb[11].mxu1 }
 0x440   : > { %v4376_v9 = vadd.f32 %v8584_v23, %v4053_v45 }
 0x441   : > { %v4502_v25 = vadd.f32 %v8628_v59, %v4381_v58 }
 0x442   : > { %v4501_v12 = vadd.f32 %v8628_v59, %v4376_v9 }
 0x443   : > { %4534 = vst [vmem:[%s8636_s15 + $0x58] sm:$0xff] %v4502_v25 }
 0x444   : > { %4533 = vst [vmem:[%s8636_s15 + $0x50] sm:$0xff] %v4501_v12 }
 0x445   : > { %v4950_v54 = vpop.f32.mrb[12].mxu1 }
 0x446   : > { %v4391_v60 = vadd.f32 %v8586_v20, %v4950_v54  ;;  %v4063_v35 = vpop.f32.mrb[13].mxu1 }
 0x447   : > { %v4386_v40 = vadd.f32 %v8588_v17, %v4063_v35 }
 0x448   : > { %v4504_v53 = vadd.f32 %v8628_v59, %v4391_v60 }
 0x449   : > { %v4503_v47 = vadd.f32 %v8628_v59, %v4386_v40 }
 0x44a   : > { %4536 = vst [vmem:[%s8636_s15 + $0x68] sm:$0xff] %v4504_v53 }
 0x44b   : > { %4535 = vst [vmem:[%s8636_s15 + $0x60] sm:$0xff] %v4503_v47 }
 0x44f   : > { %v4953_v23 = vpop.f32.mrb[14].mxu1 }
 0x450   : > { %v4401_v6 = vadd.f32 %v8590_v14, %v4953_v23  ;;  %v4073_v5 = vpop.f32.mrb[15].mxu1 }
 0x451   : > { %v4396_v19 = vadd.f32 %v8592_v1, %v4073_v5 }
 0x452   : > { %v4506_v36 = vadd.f32 %v8628_v59, %v4401_v6 }
 0x453   : > { %v4505_v20 = vadd.f32 %v8628_v59, %v4396_v19 }
 0x454   : > { %4538 = vst [vmem:[%s8636_s15 + $0x78] sm:$0xff] %v4506_v36 }
 0x455   : > { %4537 = vst [vmem:[%s8636_s15 + $0x70] sm:$0xff] %v4505_v20 }
 0x459   : > { %v4956_v17 = vpop.f32.mrb[16].mxu1 }
 0x45a   : > { %v4411_v30 = vadd.f32 %v8594_v42, %v4956_v17  ;;  %v4083_v57 = vpop.f32.mrb[17].mxu1 }
 0x45b   : > { %v4406_v28 = vadd.f32 %v8596_v32, %v4083_v57 }
 0x45c   : > { %v4508_v43 = vadd.f32 %v8628_v59, %v4411_v30 }
 0x45d   : > { %v4507_v14 = vadd.f32 %v8628_v59, %v4406_v28 }
 0x45e   : > { %4540 = vst [vmem:[%s8636_s15 + $0x88] sm:$0xff] %v4508_v43 }
 0x45f   : > { %4539 = vst [vmem:[%s8636_s15 + $0x80] sm:$0xff] %v4507_v14 }
 0x464   : > { %v4959_v1 = vpop.f32.mrb[18].mxu1 }
 0x465   : > { %v4421_v44 = vadd.f32 %v8598_v29, %v4959_v1  ;;  %v4093_v51 = vpop.f32.mrb[19].mxu1 }
 0x466   : > { %v4416_v52 = vadd.f32 %v8600_v10, %v4093_v51 }
 0x467   : > { %v4510_v50 = vadd.f32 %v8628_v59, %v4421_v44 }
 0x468   : > { %v4509_v42 = vadd.f32 %v8628_v59, %v4416_v52 }
 0x469   : > { %4542 = vst [vmem:[%s8636_s15 + $0x98] sm:$0xff] %v4510_v50 }
 0x46a   : > { %4541 = vst [vmem:[%s8636_s15 + $0x90] sm:$0xff] %v4509_v42 }
 0x46d   : > { %v4962_v32 = vpop.f32.mrb[20].mxu1 }
 0x46e   : > { %v4431_v46 = vadd.f32 %v8602_v15, %v4962_v32  ;;  %v4103_v13 = vpop.f32.mrb[21].mxu1 }
 0x46f   : > { %v4426_v22 = vadd.f32 %v8604_v27, %v4103_v13 }
 0x470   : > { %v4512_v63 = vadd.f32 %v8628_v59, %v4431_v46 }
 0x471   : > { %v4511_v29 = vadd.f32 %v8628_v59, %v4426_v22 }
 0x472   : > { %4544 = vst [vmem:[%s8636_s15 + $0xa8] sm:$0xff] %v4512_v63 }
 0x473   : > { %4543 = vst [vmem:[%s8636_s15 + $0xa0] sm:$0xff] %v4511_v29 }
 0x477   : > { %v4965_v10 = vpop.f32.mrb[22].mxu1 }
 0x478   : > { %v4441_v24 = vadd.f32 %v8606_v34, %v4965_v10  ;;  %v4113_v31 = vpop.f32.mrb[23].mxu1 }
 0x479   : > { %v4436_v8 = vadd.f32 %v8608_v11, %v4113_v31 }
 0x47a   : > { %v4514_v39 = vadd.f32 %v8628_v59, %v4441_v24 }
 0x47b   : > { %v4513_v15 = vadd.f32 %v8628_v59, %v4436_v8 }
 0x47c   : > { %4546 = vst [vmem:[%s8636_s15 + $0xb8] sm:$0xff] %v4514_v39 }
 0x47d   : > { %4545 = vst [vmem:[%s8636_s15 + $0xb0] sm:$0xff] %v4513_v15 }
 0x483   : > { %v4968_v27 = vpop.f32.mrb[24].mxu1 }
 0x484   : > { %v4451_v33 = vadd.f32 %v8610_v56, %v4968_v27  ;;  %v4123_v16 = vpop.f32.mrb[25].mxu1 }
 0x485   : > { %v4446_v26 = vadd.f32 %v8612_v7, %v4123_v16 }
 0x486   : > { %v4516_v21 = vadd.f32 %v8628_v59, %v4451_v33 }
 0x487   : > { %v4515_v34 = vadd.f32 %v8628_v59, %v4446_v26 }
 0x488   : > { %4548 = vst [vmem:[%s8636_s15 + $0xc8] sm:$0xff] %v4516_v21 }
 0x489   : > { %4547 = vst [vmem:[%s8636_s15 + $0xc0] sm:$0xff] %v4515_v34 }
 0x48b   : > { %v4971_v11 = vpop.f32.mrb[26].mxu1 }
 0x48c   : > { %v4461_v49 = vadd.f32 %v8614_v61, %v4971_v11  ;;  %v4133_v18 = vpop.f32.mrb[27].mxu1 }
 0x48d   : > { %v4456_v2 = vadd.f32 %v8616_v38, %v4133_v18 }
 0x48e   : > { %v4518_v56 = vadd.f32 %v8628_v59, %v4461_v49 }
 0x48f   : > { %v4517_v7 = vadd.f32 %v8628_v59, %v4456_v2 }
 0x490   : > { %4550 = vst [vmem:[%s8636_s15 + $0xd8] sm:$0xff] %v4518_v56 }
 0x491   : > { %4549 = vst [vmem:[%s8636_s15 + $0xd0] sm:$0xff] %v4517_v7 }
 0x494   : > { %v4974_v4 = vpop.f32.mrb[28].mxu1 }
 0x495   : > { %v4471_v62 = vadd.f32 %v8619_v55, %v4974_v4  ;;  %v4143_v3 = vpop.f32.mrb[29].mxu1 }
 0x496   : > { %v4466_v0 = vadd.f32 %v8623_v41, %v4143_v3 }
 0x497   : > { %v4520_v61 = vadd.f32 %v8628_v59, %v4471_v62 }
 0x498   : > { %v4519_v58 = vadd.f32 %v8628_v59, %v4466_v0 }
 0x499   : > { %4552 = vst [vmem:[%s8636_s15 + $0xe8] sm:$0xff] %v4520_v61 }
 0x49a   : > { %4551 = vst [vmem:[%s8636_s15 + $0xe0] sm:$0xff] %v4519_v58 }
 0x49f   : > { %v4977_v38 = vpop.f32.mrb[30].mxu1 }
 0x4a0   : > { %v4481_v45 = vadd.f32 %v8630_v48, %v4977_v38  ;;  %v4153_v9 = vpop.f32.mrb[31].mxu1 }
 0x4a1   : > { %v4476_v55 = vadd.f32 %v8633_v37, %v4153_v9 }
 0x4a2   : > { %v4522_v25 = vadd.f32 %v8628_v59, %v4481_v45 }
 0x4a3   : > { %v4521_v41 = vadd.f32 %v8628_v59, %v4476_v55 }
 0x4a4   : > { %4554 = vst [vmem:[%s8636_s15 + $0xf8] sm:$0xff] %v4522_v25 }
 0x4a5   : > { %4553 = vst [vmem:[%s8636_s15 + $0xf0] sm:$0xff] %v4521_v41 }
 0x4a6   : > { %5397 = shalt.err (!%p5394_p3)
}
 0x4a7   : > { %s5398_s12 = scalar_lea.hbm %s8724_s20, 4096  ;;  %s5402_s13 = scalar_lea.hbm %s8780_s6, 32768 }
 0x4a8   : > { %p5399_p4 = scmp.ne.s32.totalorder %s8724_s20, %s5398_s12  ;;  %p5403_p9 = scmp.lt.u32.totalorder %s8724_s20, %s8780_s6 }
 0x4a9   : > { %p5404_p10 = scmp.lt.u32.totalorder %s5402_s13, %s5398_s12  ;;  %p5406_p12 = scmp.lt.u32.totalorder %s5398_s12, %s8724_s20 }
 0x4aa   : > { %p5400_p7 = pnand %p5399_p4, %p5531_p5 }
 0x4ab   : > { %p5405_p11 = por %p5404_p10, %p5403_p9 }
 0x4ac   : > { %p5401_p8 = pneg %p5400_p7 }
 0x4ad   : > { %p5407_p13 = por %p5406_p12, %p5405_p11 }
 0x4af   : > { %p5408_p0 = pnand %p5407_p13, %p5401_p8 }
 0x4b1   : > { %5411 = shalt.err (!%p5408_p0)
}
 0x4b2   : > { %s5456_s16 = smov 128   ;;  %s5457_s18 = smov 8  }
 0x4b3   : > { %5202 = dma.vmem_to_hbm [thread:$0]  (%p5531_p5), %s8726_s17, 4096, %s8724_s20, %s8733_s25, %s5456_s16, %s5456_s16, %s5457_s18  }
 0x4b4 PF: > { %p5208_p1 = scmp.ge.s32.totalorder %s5446_s24, 2  ;;  %s4584_s19 = sand.u32 1, %s5434_s21  }
 0x4b5   : > { %s4585_s26 = scalar_lea.sflag [#allocation3], %s4584_s19 }
 0x4b6   : > { %p5205_p2 = pnand %p5208_p1, %p5535_p6 }
 0x4b8   : > { %5429 = dma.done.wait (!%p5205_p2), %s4585_s26, 4096  }
 0x4b9   : > { %5431 = vsyncadd (!%p5205_p2), %s4585_s26, 4294963200  ;;  %p16_p3 = scmp.ge.s32.totalorder %s5518_s27, 10   ;;  %s9276_s21 = smov %s5438_s22 }
 0x4ba   : > { %s9277_s22 = smov %s5442_s23  ;;  %s9278_s23 = smov %s5529_s30 }
 0x4bb   : > { %s9279_s24 = smov %s5518_s27  ;;  %18 = sbr.rel (!%p16_p3) target bundleno = 3 (0x3), region = 82 }
 0x4c2   :  { %4590 = vsyncpa [#allocation3], 1 }
 0x4c3   :  { %4592 = vsyncpa [#allocation3 + $0x1], 1 }

</bundles_post_ra>
